<compile_context>
chip_gen: v7x
topology: tpu7x:2x2x1
jax: 0.10.0
libtpu: 0.0.40
codegen_flags: <defaults>
</compile_context>

<pallas_src>
import jax
import jax.numpy as jnp
from jax.experimental import pallas as pl
from jax.experimental.pallas import tpu as pltpu

MINIMAP_CHANNEL = 11
SCREEN_CHANNEL = 27
NONSPATIAL = 11          # player features
N_ACTIONS = 12           # last-action (one-hot) features
NONSPATIAL_DIM = 576     # SC2Net nonspatial output dim (A2CCritic default)
HIDDEN_DIM = 256
MAX_TM = 256             # batch tile (rows) — fits comfortably in VMEM on v5e/v6e/v7x


def _critic_kernel(mm_ref, sc_ref, pfeat_ref, la_ref,
                   wmm_ref, wsc_ref, wpl_ref, wla_ref, blat_ref,
                   w1_ref, b1_ref, w2_ref, b2_ref,
                   out_ref):
    """Fused:  relu(sum_i x_i@W_i + blat) -> relu(.@W1+b1) -> dot-row head."""
    # Latent encoder (stand-in for SC2Net nonspatial head): accumulate the
    # contributions of each observation source into h0 (f32 accumulation).
    h0 = jnp.dot(mm_ref[...].astype(jnp.bfloat16), wmm_ref[...],
                 preferred_element_type=jnp.float32)
    h0 = h0 + jnp.dot(sc_ref[...].astype(jnp.bfloat16), wsc_ref[...],
                      preferred_element_type=jnp.float32)
    # Tiny-K (11 / 12) contractions stay f32 — negligible traffic, safest lowering.
    h0 = h0 + jnp.dot(pfeat_ref[...], wpl_ref[...],
                      preferred_element_type=jnp.float32)
    h0 = h0 + jnp.dot(la_ref[...], wla_ref[...],
                      preferred_element_type=jnp.float32)
    h0 = jnp.maximum(h0 + blat_ref[...], 0.0)

    # value_net: Linear(576, 256) -> ReLU
    h1 = jnp.dot(h0.astype(jnp.bfloat16), w1_ref[...],
                 preferred_element_type=jnp.float32)
    h1 = jnp.maximum(h1 + b1_ref[...], 0.0)

    # Linear(256, 1) head as VPU multiply + cross-lane reduce (no N=1 MXU pass).
    v = jnp.sum(h1 * w2_ref[...], axis=-1, keepdims=True)
    out_ref[...] = v + b2_ref[...]


@jax.jit
def a2c_critic_forward(minimaps, screens, players, last_actions, params):
    """Returns values of shape (B, 1), matching A2CCritic.forward."""
    B = minimaps.shape[0]
    mm = minimaps.reshape(B, -1).astype(jnp.float32)   # (B, C_mm*H*W)
    sc = screens.reshape(B, -1).astype(jnp.float32)    # (B, C_sc*H*W)
    pfeat = players.astype(jnp.float32)                # (B, 11)
    la = last_actions.astype(jnp.float32)              # (B, 12)
    d_mm, d_sc, d_pl, d_la = mm.shape[1], sc.shape[1], pfeat.shape[1], la.shape[1]

    # Batch tile: big enough to pipeline, small enough to fit v7x VMEM.
    tm = MAX_TM if B >= MAX_TM else B
    grid = (pl.cdiv(B, tm),)

    def row_spec(feat):
        return pl.BlockSpec((tm, feat), lambda i: (i, 0))

    def const_spec(arr):
        return pl.BlockSpec(arr.shape, lambda i: (0, 0))

    wmm, wsc, wpl, wla = params["w_mm"], params["w_sc"], params["w_pl"], params["w_la"]
    blat, w1, b1, w2r, b2 = (params["b_lat"], params["w1"], params["b1"],
                             params["w2_row"], params["b2"])

    flops = B * (2 * (d_mm + d_sc + d_pl + d_la) * NONSPATIAL_DIM
                 + 2 * NONSPATIAL_DIM * HIDDEN_DIM
                 + 2 * HIDDEN_DIM)
    bytes_accessed = (B * (d_mm + d_sc + d_pl + d_la) * 4
                      + wmm.size * 2 + wsc.size * 2 + w1.size * 2
                      + (wpl.size + wla.size + blat.size + b1.size
                         + w2r.size + b2.size) * 4
                      + B * 4)

    values = pl.pallas_call(
        _critic_kernel,
        out_shape=jax.ShapeDtypeStruct((B, 1), jnp.float32),
        grid=grid,
        in_specs=[
            row_spec(d_mm), row_spec(d_sc), row_spec(d_pl), row_spec(d_la),
            const_spec(wmm), const_spec(wsc), const_spec(wpl), const_spec(wla),
            const_spec(blat), const_spec(w1), const_spec(b1),
            const_spec(w2r), const_spec(b2),
        ],
        out_specs=pl.BlockSpec((tm, 1), lambda i: (i, 0)),
        compiler_params=pltpu.CompilerParams(
            dimension_semantics=("parallel",),
            vmem_limit_bytes=32 << 20,
        ),
        cost_estimate=pl.CostEstimate(
            flops=flops, transcendentals=0, bytes_accessed=bytes_accessed),
    )(mm, sc, pfeat, la, wmm, wsc, wpl, wla, blat, w1, b1, w2r, b2)
    return values


def init_params(key, d_mm, d_sc):
    """Deterministic parameter init (shapes from A2CCritic.__init__)."""
    k1, k2, k3, k4, k5, k6 = jax.random.split(key, 6)
    # TODO(synk): SC2Net's architecture is not provided in the source file;
    # this per-source linear encoder (+ReLU) is a deterministic stand-in
    # producing the 576-dim nonspatial feature consumed by value_net.
    params = {
        "w_mm": (jax.random.normal(k1, (d_mm, NONSPATIAL_DIM), jnp.float32)
                 * 0.02).astype(jnp.bfloat16),
        "w_sc": (jax.random.normal(k2, (d_sc, NONSPATIAL_DIM), jnp.float32)
                 * 0.02).astype(jnp.bfloat16),
        "w_pl": jax.random.normal(k3, (NONSPATIAL, NONSPATIAL_DIM), jnp.float32) * 0.02,
        "w_la": jax.random.normal(k4, (N_ACTIONS, NONSPATIAL_DIM), jnp.float32) * 0.02,
        "b_lat": jnp.zeros((1, NONSPATIAL_DIM), jnp.float32),
        # value_net = Linear(576, 256) -> ReLU -> Linear(256, 1)
        "w1": (jax.random.normal(k5, (NONSPATIAL_DIM, HIDDEN_DIM), jnp.float32)
               * 0.05).astype(jnp.bfloat16),
        "b1": jnp.full((1, HIDDEN_DIM), 0.01, jnp.float32),
        # PyTorch Linear(256,1).weight is (1,256): kept as a row for the VPU head.
        "w2_row": jax.random.normal(k6, (1, HIDDEN_DIM), jnp.float32) * 0.05,
        "b2": jnp.zeros((1, 1), jnp.float32),
    }
    return params


if __name__ == "__main__":
    key = jax.random.PRNGKey(0)
    kp, km, ks, kpl, kla = jax.random.split(key, 5)

    B, H, W = 8, 8, 8  # small spatial resolution for the synthetic test
    minimaps = jax.random.normal(km, (B, MINIMAP_CHANNEL, H, W), jnp.float32)
    screens = jax.random.normal(ks, (B, SCREEN_CHANNEL, H, W), jnp.float32)
    players = jax.random.normal(kpl, (B, NONSPATIAL), jnp.float32)
    last_actions = jax.nn.one_hot(
        jax.random.randint(kla, (B,), 0, N_ACTIONS), N_ACTIONS, dtype=jnp.float32)

    d_mm = MINIMAP_CHANNEL * H * W
    d_sc = SCREEN_CHANNEL * H * W
    params = init_params(kp, d_mm, d_sc)

    values = a2c_critic_forward(minimaps, screens, players, last_actions, params)
    values = jax.block_until_ready(values)

    # Pure-JAX reference check of the fused kernel (same bf16/f32 mixed math).
    mm = minimaps.reshape(B, -1)
    sc = screens.reshape(B, -1)
    h0 = (jnp.dot(mm.astype(jnp.bfloat16), params["w_mm"],
                  preferred_element_type=jnp.float32)
          + jnp.dot(sc.astype(jnp.bfloat16), params["w_sc"],
                    preferred_element_type=jnp.float32)
          + jnp.dot(players, params["w_pl"], preferred_element_type=jnp.float32)
          + jnp.dot(last_actions, params["w_la"], preferred_element_type=jnp.float32)
          + params["b_lat"])
    h0 = jnp.maximum(h0, 0.0)
    h1 = jnp.maximum(
        jnp.dot(h0.astype(jnp.bfloat16), params["w1"],
                preferred_element_type=jnp.float32) + params["b1"], 0.0)
    ref = jnp.sum(h1 * params["w2_row"], axis=-1, keepdims=True) + params["b2"]

    assert values.shape == (B, 1)
    assert jnp.allclose(values, ref, atol=1e-2, rtol=1e-2)

    print("KERNEL_OK")
</pallas_src>

<mosaic_0001>
module attributes {stable_mosaic.version = 11 : i64} {
  func.func @_critic_kernel(%arg0: i32, %arg1: memref<8x704xf32, #tpu.memory_space<vmem>>, %arg2: memref<8x1728xf32, #tpu.memory_space<vmem>>, %arg3: memref<8x11xf32, #tpu.memory_space<vmem>>, %arg4: memref<8x12xf32, #tpu.memory_space<vmem>>, %arg5: memref<704x576xbf16, #tpu.memory_space<vmem>>, %arg6: memref<1728x576xbf16, #tpu.memory_space<vmem>>, %arg7: memref<11x576xf32, #tpu.memory_space<vmem>>, %arg8: memref<12x576xf32, #tpu.memory_space<vmem>>, %arg9: memref<1x576xf32, #tpu.memory_space<vmem>>, %arg10: memref<576x256xbf16, #tpu.memory_space<vmem>>, %arg11: memref<1x256xf32, #tpu.memory_space<vmem>>, %arg12: memref<1x256xf32, #tpu.memory_space<vmem>>, %arg13: memref<1x1xf32, #tpu.memory_space<vmem>>, %arg14: memref<8x1xf32, #tpu.memory_space<vmem>>) attributes {dimension_semantics = [#tpu.dimension_semantics<parallel>], iteration_bounds = array<i64: 1>, scalar_prefetch = 0 : i64, scratch_operands = 0 : i64, tpu.core_type = #tpu.core_type<tc>, window_params = [{transform_indices = @transform_0, window_bounds = array<i64: 8, 704>}, {transform_indices = @transform_1, window_bounds = array<i64: 8, 1728>}, {transform_indices = @transform_2, window_bounds = array<i64: 8, 11>}, {transform_indices = @transform_3, window_bounds = array<i64: 8, 12>}, {pipeline_mode = #tpu.pipeline_mode<synchronous>, transform_indices = @transform_4, window_bounds = array<i64: 704, 576>}, {pipeline_mode = #tpu.pipeline_mode<synchronous>, transform_indices = @transform_5, window_bounds = array<i64: 1728, 576>}, {pipeline_mode = #tpu.pipeline_mode<synchronous>, transform_indices = @transform_6, window_bounds = array<i64: 11, 576>}, {pipeline_mode = #tpu.pipeline_mode<synchronous>, transform_indices = @transform_7, window_bounds = array<i64: 12, 576>}, {pipeline_mode = #tpu.pipeline_mode<synchronous>, transform_indices = @transform_8, window_bounds = array<i64: 1, 576>}, {pipeline_mode = #tpu.pipeline_mode<synchronous>, transform_indices = @transform_9, window_bounds = array<i64: 576, 256>}, {pipeline_mode = #tpu.pipeline_mode<synchronous>, transform_indices = @transform_10, window_bounds = array<i64: 1, 256>}, {pipeline_mode = #tpu.pipeline_mode<synchronous>, transform_indices = @transform_11, window_bounds = array<i64: 1, 256>}, {pipeline_mode = #tpu.pipeline_mode<synchronous>, transform_indices = @transform_12, window_bounds = array<i64: 1, 1>}, {transform_indices = @transform_13, window_bounds = array<i64: 8, 1>}]} {
    %c0 = arith.constant 0 : index
    %c0_0 = arith.constant 0 : index
    %0 = vector.load %arg1[%c0, %c0_0] : memref<8x704xf32, #tpu.memory_space<vmem>>, vector<8x704xf32>
    %1 = arith.truncf %0 : vector<8x704xf32> to vector<8x704xbf16>
    %c0_1 = arith.constant 0 : index
    %c0_2 = arith.constant 0 : index
    %2 = vector.load %arg5[%c0_1, %c0_2] : memref<704x576xbf16, #tpu.memory_space<vmem>>, vector<704x576xbf16>
    %cst = arith.constant dense<0.000000e+00> : vector<8x576xf32>
    %3 = tpu.matmul %1, %2, %cst {dimension_numbers = #tpu.dot_dimension_numbers<[1], [0], [0], [1], [0, 0, 1, 1], [], []>} : vector<8x704xbf16>, vector<704x576xbf16>, vector<8x576xf32> -> vector<8x576xf32>
    %c0_3 = arith.constant 0 : index
    %c0_4 = arith.constant 0 : index
    %4 = vector.load %arg2[%c0_3, %c0_4] : memref<8x1728xf32, #tpu.memory_space<vmem>>, vector<8x1728xf32>
    %5 = arith.truncf %4 : vector<8x1728xf32> to vector<8x1728xbf16>
    %c0_5 = arith.constant 0 : index
    %c0_6 = arith.constant 0 : index
    %6 = vector.load %arg6[%c0_5, %c0_6] : memref<1728x576xbf16, #tpu.memory_space<vmem>>, vector<1728x576xbf16>
    %cst_7 = arith.constant dense<0.000000e+00> : vector<8x576xf32>
    %7 = tpu.matmul %5, %6, %cst_7 {dimension_numbers = #tpu.dot_dimension_numbers<[1], [0], [0], [1], [0, 0, 1, 1], [], []>} : vector<8x1728xbf16>, vector<1728x576xbf16>, vector<8x576xf32> -> vector<8x576xf32>
    %8 = arith.addf %3, %7 : vector<8x576xf32>
    %c0_8 = arith.constant 0 : index
    %c0_9 = arith.constant 0 : index
    %9 = vector.load %arg3[%c0_8, %c0_9] : memref<8x11xf32, #tpu.memory_space<vmem>>, vector<8x11xf32>
    %c0_10 = arith.constant 0 : index
    %c0_11 = arith.constant 0 : index
    %10 = vector.load %arg7[%c0_10, %c0_11] : memref<11x576xf32, #tpu.memory_space<vmem>>, vector<11x576xf32>
    %cst_12 = arith.constant dense<0.000000e+00> : vector<8x576xf32>
    %11 = tpu.matmul %9, %10, %cst_12 {dimension_numbers = #tpu.dot_dimension_numbers<[1], [0], [0], [1], [0, 0, 1, 1], [], []>} : vector<8x11xf32>, vector<11x576xf32>, vector<8x576xf32> -> vector<8x576xf32>
    %12 = arith.addf %8, %11 : vector<8x576xf32>
    %c0_13 = arith.constant 0 : index
    %c0_14 = arith.constant 0 : index
    %13 = vector.load %arg4[%c0_13, %c0_14] : memref<8x12xf32, #tpu.memory_space<vmem>>, vector<8x12xf32>
    %c0_15 = arith.constant 0 : index
    %c0_16 = arith.constant 0 : index
    %14 = vector.load %arg8[%c0_15, %c0_16] : memref<12x576xf32, #tpu.memory_space<vmem>>, vector<12x576xf32>
    %cst_17 = arith.constant dense<0.000000e+00> : vector<8x576xf32>
    %15 = tpu.matmul %13, %14, %cst_17 {dimension_numbers = #tpu.dot_dimension_numbers<[1], [0], [0], [1], [0, 0, 1, 1], [], []>} : vector<8x12xf32>, vector<12x576xf32>, vector<8x576xf32> -> vector<8x576xf32>
    %16 = arith.addf %12, %15 : vector<8x576xf32>
    %c0_18 = arith.constant 0 : index
    %c0_19 = arith.constant 0 : index
    %17 = vector.load %arg9[%c0_18, %c0_19] : memref<1x576xf32, #tpu.memory_space<vmem>>, vector<1x576xf32>
    %18 = vector.broadcast %17 : vector<1x576xf32> to vector<8x576xf32>
    %19 = arith.addf %16, %18 : vector<8x576xf32>
    %cst_20 = arith.constant 0.000000e+00 : f32
    %20 = vector.broadcast %cst_20 : f32 to vector<8x576xf32>
    %21 = arith.maximumf %19, %20 : vector<8x576xf32>
    %22 = arith.truncf %21 : vector<8x576xf32> to vector<8x576xbf16>
    %c0_21 = arith.constant 0 : index
    %c0_22 = arith.constant 0 : index
    %23 = vector.load %arg10[%c0_21, %c0_22] : memref<576x256xbf16, #tpu.memory_space<vmem>>, vector<576x256xbf16>
    %cst_23 = arith.constant dense<0.000000e+00> : vector<8x256xf32>
    %24 = tpu.matmul %22, %23, %cst_23 {dimension_numbers = #tpu.dot_dimension_numbers<[1], [0], [0], [1], [0, 0, 1, 1], [], []>} : vector<8x576xbf16>, vector<576x256xbf16>, vector<8x256xf32> -> vector<8x256xf32>
    %c0_24 = arith.constant 0 : index
    %c0_25 = arith.constant 0 : index
    %25 = vector.load %arg11[%c0_24, %c0_25] : memref<1x256xf32, #tpu.memory_space<vmem>>, vector<1x256xf32>
    %26 = vector.broadcast %25 : vector<1x256xf32> to vector<8x256xf32>
    %27 = arith.addf %24, %26 : vector<8x256xf32>
    %cst_26 = arith.constant 0.000000e+00 : f32
    %28 = vector.broadcast %cst_26 : f32 to vector<8x256xf32>
    %29 = arith.maximumf %27, %28 : vector<8x256xf32>
    %c0_27 = arith.constant 0 : index
    %c0_28 = arith.constant 0 : index
    %30 = vector.load %arg12[%c0_27, %c0_28] : memref<1x256xf32, #tpu.memory_space<vmem>>, vector<1x256xf32>
    %31 = vector.broadcast %30 : vector<1x256xf32> to vector<8x256xf32>
    %32 = arith.mulf %29, %31 : vector<8x256xf32>
    %cst_29 = arith.constant dense<0.000000e+00> : vector<8xf32>
    %33 = vector.multi_reduction <add>, %32, %cst_29 [1] : vector<8x256xf32> to vector<8xf32>
    %34 = vector.shape_cast %33 : vector<8xf32> to vector<8x1xf32>
    %c0_30 = arith.constant 0 : index
    %c0_31 = arith.constant 0 : index
    %35 = vector.load %arg13[%c0_30, %c0_31] : memref<1x1xf32, #tpu.memory_space<vmem>>, vector<1x1xf32>
    %36 = vector.broadcast %35 : vector<1x1xf32> to vector<8x1xf32>
    %37 = arith.addf %34, %36 : vector<8x1xf32>
    %c0_32 = arith.constant 0 : index
    %c0_33 = arith.constant 0 : index
    %38 = vector.load %arg14[%c0_32, %c0_33] : memref<8x1xf32, #tpu.memory_space<vmem>>, vector<8x1xf32>
    tpu.vector_store %arg14[%c0_32, %c0_33], %37 {strides = array<i32>} : memref<8x1xf32, #tpu.memory_space<vmem>>, vector<8x1xf32>,
    return
  }
  func.func @transform_0(%arg0: i32) -> (i32, i32) {
    %c0_i32 = arith.constant 0 : i32
    %c0_i32_0 = arith.constant 0 : i32
    return %arg0, %c0_i32 : i32, i32
  }
  func.func @transform_1(%arg0: i32) -> (i32, i32) {
    %c0_i32 = arith.constant 0 : i32
    %c0_i32_0 = arith.constant 0 : i32
    return %arg0, %c0_i32 : i32, i32
  }
  func.func @transform_2(%arg0: i32) -> (i32, i32) {
    %c0_i32 = arith.constant 0 : i32
    %c0_i32_0 = arith.constant 0 : i32
    return %arg0, %c0_i32 : i32, i32
  }
  func.func @transform_3(%arg0: i32) -> (i32, i32) {
    %c0_i32 = arith.constant 0 : i32
    %c0_i32_0 = arith.constant 0 : i32
    return %arg0, %c0_i32 : i32, i32
  }
  func.func @transform_4(%arg0: i32) -> (i32, i32) {
    %c0_i32 = arith.constant 0 : i32
    %c0_i32_0 = arith.constant 0 : i32
    %c0_i32_1 = arith.constant 0 : i32
    return %c0_i32, %c0_i32_0 : i32, i32
  }
  func.func @transform_5(%arg0: i32) -> (i32, i32) {
    %c0_i32 = arith.constant 0 : i32
    %c0_i32_0 = arith.constant 0 : i32
    %c0_i32_1 = arith.constant 0 : i32
    return %c0_i32, %c0_i32_0 : i32, i32
  }
  func.func @transform_6(%arg0: i32) -> (i32, i32) {
    %c0_i32 = arith.constant 0 : i32
    %c0_i32_0 = arith.constant 0 : i32
    %c0_i32_1 = arith.constant 0 : i32
    return %c0_i32, %c0_i32_0 : i32, i32
  }
  func.func @transform_7(%arg0: i32) -> (i32, i32) {
    %c0_i32 = arith.constant 0 : i32
    %c0_i32_0 = arith.constant 0 : i32
    %c0_i32_1 = arith.constant 0 : i32
    return %c0_i32, %c0_i32_0 : i32, i32
  }
  func.func @transform_8(%arg0: i32) -> (i32, i32) {
    %c0_i32 = arith.constant 0 : i32
    %c0_i32_0 = arith.constant 0 : i32
    %c0_i32_1 = arith.constant 0 : i32
    return %c0_i32, %c0_i32_0 : i32, i32
  }
  func.func @transform_9(%arg0: i32) -> (i32, i32) {
    %c0_i32 = arith.constant 0 : i32
    %c0_i32_0 = arith.constant 0 : i32
    %c0_i32_1 = arith.constant 0 : i32
    return %c0_i32, %c0_i32_0 : i32, i32
  }
  func.func @transform_10(%arg0: i32) -> (i32, i32) {
    %c0_i32 = arith.constant 0 : i32
    %c0_i32_0 = arith.constant 0 : i32
    %c0_i32_1 = arith.constant 0 : i32
    return %c0_i32, %c0_i32_0 : i32, i32
  }
  func.func @transform_11(%arg0: i32) -> (i32, i32) {
    %c0_i32 = arith.constant 0 : i32
    %c0_i32_0 = arith.constant 0 : i32
    %c0_i32_1 = arith.constant 0 : i32
    return %c0_i32, %c0_i32_0 : i32, i32
  }
  func.func @transform_12(%arg0: i32) -> (i32, i32) {
    %c0_i32 = arith.constant 0 : i32
    %c0_i32_0 = arith.constant 0 : i32
    %c0_i32_1 = arith.constant 0 : i32
    return %c0_i32, %c0_i32_0 : i32, i32
  }
  func.func @transform_13(%arg0: i32) -> (i32, i32) {
    %c0_i32 = arith.constant 0 : i32
    %c0_i32_0 = arith.constant 0 : i32
    return %arg0, %c0_i32 : i32, i32
  }
}

</mosaic_0001>

<bundles_post_ra>
// kernel: a2c_critic_forward.1
= control target key start
LH: loop header
LB: loop body
LE: loop exit
PB: predicated region body
PF: predicated region fallthrough
CT: control target
= control target key end

     0   :  { %vm3807_vm0 = vcmask 523264   ;;  %vm6193_vm1 = vcmask 1042432   ;;  %vm9668_vm2 = vmmov 1   ;;  %vm6189_vm4 = vcmask 89088   ;;  %s12623_s5 = inlined_call_operand.vmem [shape: bf16[1728,576], index: 5, kind: input, shape index: {}]   ;;  %s12624_s1 = inlined_call_operand.vmem [shape: f32[8,1728], index: 1, kind: input, shape index: {}]   ;;  %s12625_s4 = inlined_call_operand.vmem [shape: bf16[704,576], index: 4, kind: input, shape index: {}]   ;;  %s12626_s0 = inlined_call_operand.vmem [shape: f32[8,704], index: 0, kind: input, shape index: {}]   ;;  %s12627_s6 = inlined_call_operand.vmem [shape: f32[11,576], index: 6, kind: input, shape index: {}]   ;;  %s12628_s7 = inlined_call_operand.vmem [shape: f32[12,576], index: 7, kind: input, shape index: {}]   ;;  %s12629_s2 = inlined_call_operand.vmem [shape: f32[8,11], index: 2, kind: input, shape index: {}]   ;;  %s12630_s3 = inlined_call_operand.vmem [shape: f32[8,12], index: 3, kind: input, shape index: {}]   ;;  %s12631_s9 = inlined_call_operand.vmem [shape: bf16[576,256], index: 9, kind: input, shape index: {}]   ;;  %s12632_s8 = inlined_call_operand.vmem [shape: f32[1,576], index: 8, kind: input, shape index: {}]   ;;  %s12633_s12 = inlined_call_operand.<no memory space> [shape: f32[1,1], index: 12, kind: input, shape index: {}]   ;;  %s12634_s10 = inlined_call_operand.vmem [shape: f32[1,256], index: 10, kind: input, shape index: {}]   ;;  %s12635_s11 = inlined_call_operand.vmem [shape: f32[1,256], index: 11, kind: input, shape index: {}]   ;;  %s12636_s13 = inlined_call_operand.vmem [shape: f32[8,1], index: 13, kind: output, shape index: {}]  }
   0x1   :  { %v8495_v0 = vld [vmem:[%s12623_s5 + $0x4] ss:$20 sps:$4 sm:$0xff]   ;;  %v8497_v1 = vld [vmem:[%s12623_s5 + $0x28c] ss:$20 sps:$4 sm:$0xff]   ;;  %v8500_v3 = vld [vmem:[%s12623_s5 + $0x288] ss:$20 sps:$4 sm:$0xff]  }
   0x2   :  { %3811 = vmatprep.subr.bf16.mxu0 %v8495_v0  ;;  %v8499_v2 = vld [vmem:[%s12623_s5] ss:$20 sps:$4 sm:$0xff]   ;;  %4139 = vmatprep.subr.bf16.mxu1 %v8497_v1  ;;  %v8505_v6 = vld [vmem:[%s12623_s5 + $0x28] ss:$20 sps:$4 sm:$0xff]   ;;  %v8506_v7 = vld [vmem:[%s12623_s5 + $0x2b0] ss:$20 sps:$4 sm:$0xff]  }
   0x3   :  { %v8501_v4 = vld [vmem:[%s12623_s5 + $0x2c] ss:$20 sps:$4 sm:$0xff]   ;;  %3812 = vmatpush1.bf16.msra.mxu0 %v8499_v2  ;;  %4140 = vmatpush1.bf16.msra.mxu1 %v8500_v3  ;;  %v8503_v5 = vld [vmem:[%s12623_s5 + $0x2b4] ss:$20 sps:$4 sm:$0xff]   ;;  %v8509_v9 = vld [vmem:[%s12623_s5 + $0x2dc] ss:$20 sps:$4 sm:$0xff]  }
   0x4   :  { %3813 = vmatprep.subr.bf16.mxu0 %v8501_v4  ;;  %4141 = vmatprep.subr.bf16.mxu1 %v8503_v5  ;;  %v8507_v8 = vld [vmem:[%s12623_s5 + $0x54] ss:$20 sps:$4 sm:$0xff]   ;;  %v8511_v10 = vld [vmem:[%s12623_s5 + $0x50] ss:$20 sps:$4 sm:$0xff]   ;;  %v8512_v11 = vld [vmem:[%s12623_s5 + $0x2d8] ss:$20 sps:$4 sm:$0xff]  }
   0x5   :  { %v8513_v12 = vld [vmem:[%s12623_s5 + $0x7c] ss:$20 sps:$4 sm:$0xff]   ;;  %v8515_v13 = vld [vmem:[%s12623_s5 + $0x304] ss:$20 sps:$4 sm:$0xff]   ;;  %v8518_v15 = vld [vmem:[%s12623_s5 + $0x300] ss:$20 sps:$4 sm:$0xff]  }
   0x6   :  { %v8517_v14 = vld [vmem:[%s12623_s5 + $0x78] ss:$20 sps:$4 sm:$0xff]   ;;  %v8523_v18 = vld [vmem:[%s12623_s5 + $0xa0] ss:$20 sps:$4 sm:$0xff]   ;;  %v8524_v19 = vld [vmem:[%s12623_s5 + $0x328] ss:$20 sps:$4 sm:$0xff]  }
   0x7   :  { %3814 = vmatpush1.bf16.msra.mxu0 %v8505_v6  ;;  %4142 = vmatpush1.bf16.msra.mxu1 %v8506_v7  ;;  %v8519_v16 = vld [vmem:[%s12623_s5 + $0xa4] ss:$20 sps:$4 sm:$0xff]   ;;  %v8521_v17 = vld [vmem:[%s12623_s5 + $0x32c] ss:$20 sps:$4 sm:$0xff]   ;;  %v8527_v21 = vld [vmem:[%s12623_s5 + $0x354] ss:$20 sps:$4 sm:$0xff]  }
   0x8   :  { %3815 = vmatprep.subr.bf16.mxu0 %v8507_v8  ;;  %4143 = vmatprep.subr.bf16.mxu1 %v8509_v9  ;;  %v8525_v20 = vld [vmem:[%s12623_s5 + $0xcc] ss:$20 sps:$4 sm:$0xff]   ;;  %v8529_v22 = vld [vmem:[%s12623_s5 + $0xc8] ss:$20 sps:$4 sm:$0xff]   ;;  %v8530_v23 = vld [vmem:[%s12623_s5 + $0x350] ss:$20 sps:$4 sm:$0xff]  }
   0x9   :  { %v8531_v24 = vld [vmem:[%s12623_s5 + $0xf4] ss:$20 sps:$4 sm:$0xff]   ;;  %v8533_v25 = vld [vmem:[%s12623_s5 + $0x37c] ss:$20 sps:$4 sm:$0xff]   ;;  %v8536_v27 = vld [vmem:[%s12623_s5 + $0x378] ss:$20 sps:$4 sm:$0xff]  }
   0xa   :  { %v8535_v26 = vld [vmem:[%s12623_s5 + $0xf0] ss:$20 sps:$4 sm:$0xff]   ;;  %v8541_v30 = vld [vmem:[%s12623_s5 + $0x118] ss:$20 sps:$4 sm:$0xff]   ;;  %v8542_v31 = vld [vmem:[%s12623_s5 + $0x3a0] ss:$20 sps:$4 sm:$0xff]  }
   0xb   :  { %3816 = vmatpush1.bf16.msra.mxu0 %v8511_v10  ;;  %4144 = vmatpush1.bf16.msra.mxu1 %v8512_v11  ;;  %v8537_v28 = vld [vmem:[%s12623_s5 + $0x11c] ss:$20 sps:$4 sm:$0xff]   ;;  %v8539_v29 = vld [vmem:[%s12623_s5 + $0x3a4] ss:$20 sps:$4 sm:$0xff]   ;;  %v8545_v33 = vld [vmem:[%s12623_s5 + $0x3cc] ss:$20 sps:$4 sm:$0xff]  }
   0xc   :  { %3817 = vmatprep.subr.bf16.mxu0 %v8513_v12  ;;  %4145 = vmatprep.subr.bf16.mxu1 %v8515_v13  ;;  %v8543_v32 = vld [vmem:[%s12623_s5 + $0x144] ss:$20 sps:$4 sm:$0xff]   ;;  %v8547_v34 = vld [vmem:[%s12623_s5 + $0x140] ss:$20 sps:$4 sm:$0xff]   ;;  %v8548_v35 = vld [vmem:[%s12623_s5 + $0x3c8] ss:$20 sps:$4 sm:$0xff]  }
   0xd   :  { %v8549_v36 = vld [vmem:[%s12623_s5 + $0x16c] ss:$20 sps:$4 sm:$0xff]   ;;  %v8551_v37 = vld [vmem:[%s12623_s5 + $0x3f4] ss:$20 sps:$4 sm:$0xff]   ;;  %v8554_v39 = vld [vmem:[%s12623_s5 + $0x3f0] ss:$20 sps:$4 sm:$0xff]  }
   0xe   :  { %v8553_v38 = vld [vmem:[%s12623_s5 + $0x168] ss:$20 sps:$4 sm:$0xff]   ;;  %v8559_v42 = vld [vmem:[%s12623_s5 + $0x190] ss:$20 sps:$4 sm:$0xff]   ;;  %v8560_v43 = vld [vmem:[%s12623_s5 + $0x418] ss:$20 sps:$4 sm:$0xff]  }
   0xf   :  { %3818 = vmatpush1.bf16.msra.mxu0 %v8517_v14  ;;  %4146 = vmatpush1.bf16.msra.mxu1 %v8518_v15  ;;  %v8555_v40 = vld [vmem:[%s12623_s5 + $0x194] ss:$20 sps:$4 sm:$0xff]   ;;  %v8557_v41 = vld [vmem:[%s12623_s5 + $0x41c] ss:$20 sps:$4 sm:$0xff]   ;;  %v8563_v45 = vld [vmem:[%s12623_s5 + $0x444] ss:$20 sps:$4 sm:$0xff]  }
  0x10   :  { %3819 = vmatprep.subr.bf16.mxu0 %v8519_v16  ;;  %4147 = vmatprep.subr.bf16.mxu1 %v8521_v17  ;;  %v8561_v44 = vld [vmem:[%s12623_s5 + $0x1bc] ss:$20 sps:$4 sm:$0xff]   ;;  %v324_v46 = vld [vmem:[%s12624_s1 + $0x8] sm:$0xff]  ;;  %v8566_v49 = vld [vmem:[%s12623_s5 + $0x440] ss:$20 sps:$4 sm:$0xff]   ;;  %vm6441_vm5 = vcmask 1043456  }
  0x11   :  { %v8565_v47 = vld [vmem:[%s12623_s5 + $0x1b8] ss:$20 sps:$4 sm:$0xff]   ;;  %v9886_v48 = vpack.c.bf16 %v324_v46, %v324_v46  ;;  %v8571_v54 = vld [vmem:[%s12623_s5 + $0x1e0] ss:$20 sps:$4 sm:$0xff]   ;;  %v8572_v55 = vld [vmem:[%s12623_s5 + $0x468] ss:$20 sps:$4 sm:$0xff]  }
  0x12   :  { %v326_v50 = vld [vmem:[%s12624_s1 + $0x18] sm:$0xff]  ;;  %v8569_v52 = vld [vmem:[%s12623_s5 + $0x46c] ss:$20 sps:$4 sm:$0xff]   ;;  %v8575_v57 = vld [vmem:[%s12623_s5 + $0x494] ss:$20 sps:$4 sm:$0xff]   ;;  %vm9671_vm7 = vmmov 0  }
  0x13   :  { %3820 = vmatpush1.bf16.msra.mxu0 %v8523_v18  ;;  %4148 = vmatpush1.bf16.msra.mxu1 %v8524_v19  ;;  %v8567_v51 = vld [vmem:[%s12623_s5 + $0x1e4] ss:$20 sps:$4 sm:$0xff]   ;;  %v9900_v53 = vpack.c.bf16 %v326_v50, %v326_v50  ;;  %v8573_v56 = vld [vmem:[%s12623_s5 + $0x20c] ss:$20 sps:$4 sm:$0xff]   ;;  %v8577_v58 = vld [vmem:[%s12623_s5 + $0x208] ss:$20 sps:$4 sm:$0xff]  }
  0x14   :  { %3821 = vmatprep.subr.bf16.mxu0 %v8525_v20  ;;  %4149 = vmatprep.subr.bf16.mxu1 %v8527_v21  ;;  %v8578_v59 = vld [vmem:[%s12623_s5 + $0x490] ss:$20 sps:$4 sm:$0xff]   ;;  %v8579_v60 = vld [vmem:[%s12623_s5 + $0x234] ss:$20 sps:$4 sm:$0xff]   ;;  %v8584_v63 = vld [vmem:[%s12623_s5 + $0x4b8] ss:$20 sps:$4 sm:$0xff]  }
  0x15   :  { %3843 = vmatprep.mubr.bf16.mxu0 %v9886_v48  ;;  %4171 = vmatprep.mubr.bf16.mxu1 %v9900_v53  ;;  %v8581_v61 = vld [vmem:[%s12623_s5 + $0x4bc] ss:$20 sps:$4 sm:$0xff]   ;;  %v8587_v1 = vld [vmem:[%s12623_s5 + $0x4e4] ss:$20 sps:$4 sm:$0xff]   ;;  %v8590_v3 = vld [vmem:[%s12623_s5 + $0x4e0] ss:$20 sps:$4 sm:$0xff]  }
  0x16   :  { %v8583_v62 = vld [vmem:[%s12623_s5 + $0x230] ss:$20 sps:$4 sm:$0xff]   ;;  %v8589_v2 = vld [vmem:[%s12623_s5 + $0x258] ss:$20 sps:$4 sm:$0xff]   ;;  %v8591_v8 = vld [vmem:[%s12623_s5 + $0x280] ss:$20 sps:$4 sm:$0xff]  }
  0x17   :  { %3822 = vmatpush1.bf16.msra.mxu0 %v8529_v22  ;;  %4150 = vmatpush1.bf16.msra.mxu1 %v8530_v23  ;;  %v8585_v0 = vld [vmem:[%s12623_s5 + $0x25c] ss:$20 sps:$4 sm:$0xff]   ;;  %v8593_v4 = vld [vmem:[%s12623_s5 + $0x284] ss:$20 sps:$4 sm:$0xff]   ;;  %v8596_v7 = vld [vmem:[%s12623_s5 + $0x50c] ss:$20 sps:$4 sm:$0xff]  }
  0x18   :  { %3823 = vmatprep.subr.bf16.mxu0 %v8531_v24  ;;  %4151 = vmatprep.subr.bf16.mxu1 %v8533_v25  ;;  %v323_v5 = vld [vmem:[%s12624_s1] sm:$0xff]  ;;  %v325_v6 = vld [vmem:[%s12624_s1 + $0x10] sm:$0xff]  ;;  %v8594_v9 = vld [vmem:[%s12623_s5 + $0x508] ss:$20 sps:$4 sm:$0xff]   ;;  %vm6437_vm8 = vcmask 97280   ;;  %vm7313_vm9 = vcmask 7168  }
  0x19   :  { %v9964_v10 = vpack.c.bf16 %v323_v5, %v323_v5  ;;  %v9966_v11 = vpack.c.bf16 %v325_v6, %v325_v6  ;;  %v8599_v12 = vld [vmem:[%s12623_s5 + $0x2ac] ss:$20 sps:$4 sm:$0xff]   ;;  %v8602_v13 = vld [vmem:[%s12623_s5 + $0x534] ss:$20 sps:$4 sm:$0xff]   ;;  %v8600_v15 = vld [vmem:[%s12623_s5 + $0x530] ss:$20 sps:$4 sm:$0xff]  }
  0x1a   :  { %v8597_v14 = vld [vmem:[%s12623_s5 + $0x2a8] ss:$20 sps:$4 sm:$0xff]   ;;  %v8603_v18 = vld [vmem:[%s12623_s5 + $0x2d0] ss:$20 sps:$4 sm:$0xff]   ;;  %v8606_v19 = vld [vmem:[%s12623_s5 + $0x558] ss:$20 sps:$4 sm:$0xff]  }
  0x1b   :  { %3824 = vmatpush1.bf16.msra.mxu0 %v8535_v26  ;;  %4152 = vmatpush1.bf16.msra.mxu1 %v8536_v27  ;;  %v8605_v16 = vld [vmem:[%s12623_s5 + $0x2d4] ss:$20 sps:$4 sm:$0xff]   ;;  %v8608_v17 = vld [vmem:[%s12623_s5 + $0x55c] ss:$20 sps:$4 sm:$0xff]   ;;  %v8614_v21 = vld [vmem:[%s12623_s5 + $0x584] ss:$20 sps:$4 sm:$0xff]  }
  0x1c   :  { %3825 = vmatprep.subr.bf16.mxu0 %v8537_v28  ;;  %4153 = vmatprep.subr.bf16.mxu1 %v8539_v29  ;;  %v8611_v20 = vld [vmem:[%s12623_s5 + $0x2fc] ss:$20 sps:$4 sm:$0xff]   ;;  %v8609_v22 = vld [vmem:[%s12623_s5 + $0x2f8] ss:$20 sps:$4 sm:$0xff]   ;;  %v8612_v23 = vld [vmem:[%s12623_s5 + $0x580] ss:$20 sps:$4 sm:$0xff]  }
  0x1d   :  { %v8617_v24 = vld [vmem:[%s12623_s5 + $0x324] ss:$20 sps:$4 sm:$0xff]   ;;  %v8620_v25 = vld [vmem:[%s12623_s5 + $0x5ac] ss:$20 sps:$4 sm:$0xff]   ;;  %v8618_v27 = vld [vmem:[%s12623_s5 + $0x5a8] ss:$20 sps:$4 sm:$0xff]  }
  0x1e   :  { %v8615_v26 = vld [vmem:[%s12623_s5 + $0x320] ss:$20 sps:$4 sm:$0xff]   ;;  %v8648_v50 = vld [vmem:[%s12623_s5 + $0x670] ss:$20 sps:$4 sm:$0xff]   ;;  %vm12008_vm3 = vmpackc.low %vm6193_vm1, %vm9668_vm2 }
  0x1f   :  { %3826 = vmatpush1.bf16.msra.mxu0 %v8541_v30  ;;  %4154 = vmatpush1.bf16.msra.mxu1 %v8542_v31  ;;  %v8623_v28 = vld [vmem:[%s12623_s5 + $0x34c] ss:$20 sps:$4 sm:$0xff]   ;;  %v8626_v29 = vld [vmem:[%s12623_s5 + $0x5d4] ss:$20 sps:$4 sm:$0xff]   ;;  %v8624_v31 = vld [vmem:[%s12623_s5 + $0x5d0] ss:$20 sps:$4 sm:$0xff]  }
  0x20   :  { %3827 = vmatprep.subr.bf16.mxu0 %v8543_v32  ;;  %4155 = vmatprep.subr.bf16.mxu1 %v8545_v33  ;;  %v8621_v30 = vld [vmem:[%s12623_s5 + $0x348] ss:$20 sps:$4 sm:$0xff]   ;;  %v8647_v46 = vld [vmem:[%s12623_s5 + $0x3ec] ss:$20 sps:$4 sm:$0xff]   ;;  %v8675_v6 = vld [vmem:[%s12623_s5 + $0x4b0] ss:$20 sps:$4 sm:$0xff]  }
  0x21   :  { %v8629_v32 = vld [vmem:[%s12623_s5 + $0x374] ss:$20 sps:$4 sm:$0xff]   ;;  %v8632_v33 = vld [vmem:[%s12623_s5 + $0x5fc] ss:$20 sps:$4 sm:$0xff]   ;;  %vm12068_vm6 = vmpackc.low %vm6441_vm5, %vm9668_vm2 }
  0x22   :  { %v8680_v5 = vld [vmem:[%s12623_s5 + $0x73c] ss:$20 sps:$4 sm:$0xff]  }
  0x23   :  { %3828 = vmatpush1.bf16.msra.mxu0 %v8547_v34  ;;  %4156 = vmatpush1.bf16.msra.mxu1 %v8548_v35  ;;  %v8627_v34 = vld [vmem:[%s12623_s5 + $0x370] ss:$20 sps:$4 sm:$0xff]   ;;  %v8630_v35 = vld [vmem:[%s12623_s5 + $0x5f8] ss:$20 sps:$4 sm:$0xff]  }
  0x24   :  { %3829 = vmatprep.subr.bf16.mxu0 %v8549_v36  ;;  %4157 = vmatprep.subr.bf16.mxu1 %v8551_v37  ;;  %v328_v36 = vld [vmem:[%s12624_s1 + $0x28] sm:$0xff]  ;;  %v8635_v37 = vld [vmem:[%s12623_s5 + $0x39c] ss:$20 sps:$4 sm:$0xff]  }
  0x27   :  { %3830 = vmatpush1.bf16.msra.mxu0 %v8553_v38  ;;  %4158 = vmatpush1.bf16.msra.mxu1 %v8554_v39  ;;  %v8638_v38 = vld [vmem:[%s12623_s5 + $0x624] ss:$20 sps:$4 sm:$0xff]   ;;  %v10052_v39 = vpack.c.bf16 %v328_v36, %v328_v36  ;;  %v8711_v36 = vld [vmem:[%s12623_s5 + $0x5a0] ss:$20 sps:$4 sm:$0xff]  }
  0x28   :  { %3831 = vmatprep.subr.bf16.mxu0 %v8555_v40  ;;  %4159 = vmatprep.subr.bf16.mxu1 %v8557_v41  ;;  %v8633_v40 = vld [vmem:[%s12623_s5 + $0x398] ss:$20 sps:$4 sm:$0xff]   ;;  %v8636_v41 = vld [vmem:[%s12623_s5 + $0x620] ss:$20 sps:$4 sm:$0xff]  }
  0x2b   :  { %3832 = vmatpush1.bf16.msra.mxu0 %v8559_v42  ;;  %4160 = vmatpush1.bf16.msra.mxu1 %v8560_v43  ;;  %v8641_v42 = vld [vmem:[%s12623_s5 + $0x3c4] ss:$20 sps:$4 sm:$0xff]   ;;  %v8644_v43 = vld [vmem:[%s12623_s5 + $0x64c] ss:$20 sps:$4 sm:$0xff]  }
  0x2c   :  { %3833 = vmatprep.subr.bf16.mxu0 %v8561_v44  ;;  %4161 = vmatprep.subr.bf16.mxu1 %v8563_v45  ;;  %v8639_v44 = vld [vmem:[%s12623_s5 + $0x3c0] ss:$20 sps:$4 sm:$0xff]   ;;  %v8642_v45 = vld [vmem:[%s12623_s5 + $0x648] ss:$20 sps:$4 sm:$0xff]  }
  0x2f   :  { %3834 = vmatpush1.bf16.msra.mxu0 %v8565_v47  ;;  %4162 = vmatpush1.bf16.msra.mxu1 %v8566_v49  ;;  %v8650_v47 = vld [vmem:[%s12623_s5 + $0x674] ss:$20 sps:$4 sm:$0xff]  }
  0x30   :  { %3835 = vmatprep.subr.bf16.mxu0 %v8567_v51  ;;  %4163 = vmatprep.subr.bf16.mxu1 %v8569_v52  ;;  %v8645_v49 = vld [vmem:[%s12623_s5 + $0x3e8] ss:$20 sps:$4 sm:$0xff]  }
  0x31   :  { %v8653_v51 = vld [vmem:[%s12623_s5 + $0x414] ss:$20 sps:$4 sm:$0xff]   ;;  %v8656_v52 = vld [vmem:[%s12623_s5 + $0x69c] ss:$20 sps:$4 sm:$0xff]  }
  0x33   :  { %3836 = vmatpush1.bf16.msra.mxu0 %v8571_v54  ;;  %4164 = vmatpush1.bf16.msra.mxu1 %v8572_v55  ;;  %v8651_v54 = vld [vmem:[%s12623_s5 + $0x410] ss:$20 sps:$4 sm:$0xff]   ;;  %v8654_v55 = vld [vmem:[%s12623_s5 + $0x698] ss:$20 sps:$4 sm:$0xff]  }
  0x34   :  { %3837 = vmatprep.subr.bf16.mxu0 %v8573_v56  ;;  %4165 = vmatprep.subr.bf16.mxu1 %v8575_v57  ;;  %v8659_v56 = vld [vmem:[%s12623_s5 + $0x43c] ss:$20 sps:$4 sm:$0xff]   ;;  %v8662_v57 = vld [vmem:[%s12623_s5 + $0x6c4] ss:$20 sps:$4 sm:$0xff]  }
  0x37   :  { %3838 = vmatpush1.bf16.msra.mxu0 %v8577_v58  ;;  %4166 = vmatpush1.bf16.msra.mxu1 %v8578_v59  ;;  %v8657_v58 = vld [vmem:[%s12623_s5 + $0x438] ss:$20 sps:$4 sm:$0xff]   ;;  %v8660_v59 = vld [vmem:[%s12623_s5 + $0x6c0] ss:$20 sps:$4 sm:$0xff]  }
  0x38   :  { %3839 = vmatprep.subr.bf16.mxu0 %v8579_v60  ;;  %4167 = vmatprep.subr.bf16.mxu1 %v8581_v61  ;;  %v8665_v60 = vld [vmem:[%s12623_s5 + $0x464] ss:$20 sps:$4 sm:$0xff]   ;;  %v8668_v61 = vld [vmem:[%s12623_s5 + $0x6ec] ss:$20 sps:$4 sm:$0xff]  }
  0x3b   :  { %3840 = vmatpush1.bf16.msra.mxu0 %v8583_v62  ;;  %4168 = vmatpush1.bf16.msra.mxu1 %v8584_v63  ;;  %v8663_v62 = vld [vmem:[%s12623_s5 + $0x460] ss:$20 sps:$4 sm:$0xff]   ;;  %v8666_v63 = vld [vmem:[%s12623_s5 + $0x6e8] ss:$20 sps:$4 sm:$0xff]  }
  0x3c   :  { %3841 = vmatprep.subr.bf16.mxu0 %v8585_v0  ;;  %4169 = vmatprep.subr.bf16.mxu1 %v8587_v1  ;;  %v8671_v0 = vld [vmem:[%s12623_s5 + $0x48c] ss:$20 sps:$4 sm:$0xff]   ;;  %v8674_v1 = vld [vmem:[%s12623_s5 + $0x714] ss:$20 sps:$4 sm:$0xff]  }
  0x3f   :  { %3842 = vmatpush1.bf16.msra.mxu0 %v8589_v2  ;;  %4170 = vmatpush1.bf16.msra.mxu1 %v8590_v3  ;;  %v8669_v2 = vld [vmem:[%s12623_s5 + $0x488] ss:$20 sps:$4 sm:$0xff]   ;;  %v8672_v3 = vld [vmem:[%s12623_s5 + $0x710] ss:$20 sps:$4 sm:$0xff]  }
  0x40   :  { %3852 = vmatprep.subr.bf16.mxu0 %v8593_v4  ;;  %4180 = vmatprep.subr.bf16.mxu1 %v8596_v7  ;;  %v8677_v4 = vld [vmem:[%s12623_s5 + $0x4b4] ss:$20 sps:$4 sm:$0xff]   ;;  %v8678_v7 = vld [vmem:[%s12623_s5 + $0x738] ss:$20 sps:$4 sm:$0xff]  }
  0x42   :  { %3844 = vmatmul.mubr.bf16.vlgmr.msra.gmra.mrb[0].mxu0 %v9964_v10  ;;  %4172 = vmatmul.mubr.bf16.vlgmr.msra.gmra.mrb[0].mxu1 %v9966_v11 }
  0x43   :  { %3853 = vmatpush1.bf16.msra.mxu0 %v8591_v8  ;;  %4181 = vmatpush1.bf16.msra.mxu1 %v8594_v9  ;;  %v8683_v8 = vld [vmem:[%s12623_s5 + $0x4dc] ss:$20 sps:$4 sm:$0xff]   ;;  %v8686_v9 = vld [vmem:[%s12623_s5 + $0x764] ss:$20 sps:$4 sm:$0xff]  }
  0x44   :  { %3854 = vmatprep.subr.bf16.mxu0 %v8599_v12  ;;  %4182 = vmatprep.subr.bf16.mxu1 %v8602_v13  ;;  %v8681_v12 = vld [vmem:[%s12623_s5 + $0x4d8] ss:$20 sps:$4 sm:$0xff]   ;;  %v8684_v13 = vld [vmem:[%s12623_s5 + $0x760] ss:$20 sps:$4 sm:$0xff]  }
  0x45   :  { %3884 = vmatprep.mubr.bf16.mxu0 %v9900_v53  ;;  %4212 = vmatprep.mubr.bf16.mxu1 %v10052_v39 }
  0x47   :  { %3855 = vmatpush1.bf16.msra.mxu0 %v8597_v14  ;;  %4183 = vmatpush1.bf16.msra.mxu1 %v8600_v15  ;;  %v327_v14 = vld [vmem:[%s12624_s1 + $0x20] sm:$0xff] }
  0x48   :  { %3856 = vmatprep.subr.bf16.mxu0 %v8605_v16  ;;  %4184 = vmatprep.subr.bf16.mxu1 %v8608_v17  ;;  %v8689_v15 = vld [vmem:[%s12623_s5 + $0x504] ss:$20 sps:$4 sm:$0xff]   ;;  %v8692_v16 = vld [vmem:[%s12623_s5 + $0x78c] ss:$20 sps:$4 sm:$0xff]   ;;  %v10166_v17 = vpack.c.bf16 %v327_v14, %v327_v14 }
  0x49   :  { %v8768_v14 = vld [vmem:[%s12623_s5 + $0x990] ss:$20 sps:$4 sm:$0xff]  }
  0x4b   :  { %3857 = vmatpush1.bf16.msra.mxu0 %v8603_v18  ;;  %4185 = vmatpush1.bf16.msra.mxu1 %v8606_v19  ;;  %v8687_v18 = vld [vmem:[%s12623_s5 + $0x500] ss:$20 sps:$4 sm:$0xff]   ;;  %v8690_v19 = vld [vmem:[%s12623_s5 + $0x788] ss:$20 sps:$4 sm:$0xff]  }
  0x4c   :  { %3858 = vmatprep.subr.bf16.mxu0 %v8611_v20  ;;  %4186 = vmatprep.subr.bf16.mxu1 %v8614_v21  ;;  %v8695_v20 = vld [vmem:[%s12623_s5 + $0x52c] ss:$20 sps:$4 sm:$0xff]   ;;  %v8698_v21 = vld [vmem:[%s12623_s5 + $0x7b4] ss:$20 sps:$4 sm:$0xff]  }
  0x4f   :  { %3859 = vmatpush1.bf16.msra.mxu0 %v8609_v22  ;;  %4187 = vmatpush1.bf16.msra.mxu1 %v8612_v23  ;;  %v8693_v22 = vld [vmem:[%s12623_s5 + $0x528] ss:$20 sps:$4 sm:$0xff]  }
  0x50   :  { %3860 = vmatprep.subr.bf16.mxu0 %v8617_v24  ;;  %4188 = vmatprep.subr.bf16.mxu1 %v8620_v25  ;;  %v330_v23 = vld [vmem:[%s12624_s1 + $0x38] sm:$0xff]  ;;  %v8696_v24 = vld [vmem:[%s12623_s5 + $0x7b0] ss:$20 sps:$4 sm:$0xff]   ;;  %v8701_v25 = vld [vmem:[%s12623_s5 + $0x554] ss:$20 sps:$4 sm:$0xff]  }
  0x53   :  { %3861 = vmatpush1.bf16.msra.mxu0 %v8615_v26  ;;  %4189 = vmatpush1.bf16.msra.mxu1 %v8618_v27  ;;  %v10194_v26 = vpack.c.bf16 %v330_v23, %v330_v23  ;;  %v8704_v27 = vld [vmem:[%s12623_s5 + $0x7dc] ss:$20 sps:$4 sm:$0xff]   ;;  %v8780_v23 = vld [vmem:[%s12623_s5 + $0x9e0] ss:$20 sps:$4 sm:$0xff]  }
  0x54   :  { %3862 = vmatprep.subr.bf16.mxu0 %v8623_v28  ;;  %4190 = vmatprep.subr.bf16.mxu1 %v8626_v29  ;;  %v8699_v28 = vld [vmem:[%s12623_s5 + $0x550] ss:$20 sps:$4 sm:$0xff]   ;;  %v8702_v29 = vld [vmem:[%s12623_s5 + $0x7d8] ss:$20 sps:$4 sm:$0xff]  }
  0x57   :  { %3863 = vmatpush1.bf16.msra.mxu0 %v8621_v30  ;;  %4191 = vmatpush1.bf16.msra.mxu1 %v8624_v31  ;;  %v8707_v30 = vld [vmem:[%s12623_s5 + $0x57c] ss:$20 sps:$4 sm:$0xff]   ;;  %v8710_v31 = vld [vmem:[%s12623_s5 + $0x804] ss:$20 sps:$4 sm:$0xff]  }
  0x58   :  { %3864 = vmatprep.subr.bf16.mxu0 %v8629_v32  ;;  %4192 = vmatprep.subr.bf16.mxu1 %v8632_v33  ;;  %v8705_v32 = vld [vmem:[%s12623_s5 + $0x578] ss:$20 sps:$4 sm:$0xff]   ;;  %v8708_v33 = vld [vmem:[%s12623_s5 + $0x800] ss:$20 sps:$4 sm:$0xff]  }
  0x5b   :  { %3865 = vmatpush1.bf16.msra.mxu0 %v8627_v34  ;;  %4193 = vmatpush1.bf16.msra.mxu1 %v8630_v35  ;;  %v8713_v34 = vld [vmem:[%s12623_s5 + $0x5a4] ss:$20 sps:$4 sm:$0xff]   ;;  %v8716_v35 = vld [vmem:[%s12623_s5 + $0x82c] ss:$20 sps:$4 sm:$0xff]  }
  0x5c   :  { %3866 = vmatprep.subr.bf16.mxu0 %v8635_v37  ;;  %4194 = vmatprep.subr.bf16.mxu1 %v8638_v38  ;;  %v8714_v37 = vld [vmem:[%s12623_s5 + $0x828] ss:$20 sps:$4 sm:$0xff]   ;;  %v8719_v38 = vld [vmem:[%s12623_s5 + $0x5cc] ss:$20 sps:$4 sm:$0xff]  }
  0x5f   :  { %3867 = vmatpush1.bf16.msra.mxu0 %v8633_v40  ;;  %4195 = vmatpush1.bf16.msra.mxu1 %v8636_v41  ;;  %v8722_v40 = vld [vmem:[%s12623_s5 + $0x854] ss:$20 sps:$4 sm:$0xff]  }
  0x60   :  { %3868 = vmatprep.subr.bf16.mxu0 %v8641_v42  ;;  %4196 = vmatprep.subr.bf16.mxu1 %v8644_v43  ;;  %v8717_v41 = vld [vmem:[%s12623_s5 + $0x5c8] ss:$20 sps:$4 sm:$0xff]   ;;  %v8720_v42 = vld [vmem:[%s12623_s5 + $0x850] ss:$20 sps:$4 sm:$0xff]  }
  0x61   :  { %v8725_v43 = vld [vmem:[%s12623_s5 + $0x5f4] ss:$20 sps:$4 sm:$0xff]  }
  0x63   :  { %3869 = vmatpush1.bf16.msra.mxu0 %v8639_v44  ;;  %4197 = vmatpush1.bf16.msra.mxu1 %v8642_v45  ;;  %v8728_v44 = vld [vmem:[%s12623_s5 + $0x87c] ss:$20 sps:$4 sm:$0xff]  }
  0x64   :  { %3870 = vmatprep.subr.bf16.mxu0 %v8647_v46  ;;  %4198 = vmatprep.subr.bf16.mxu1 %v8650_v47  ;;  %v8723_v45 = vld [vmem:[%s12623_s5 + $0x5f0] ss:$20 sps:$4 sm:$0xff]   ;;  %v8726_v46 = vld [vmem:[%s12623_s5 + $0x878] ss:$20 sps:$4 sm:$0xff]  }
  0x65   :  { %v8731_v47 = vld [vmem:[%s12623_s5 + $0x61c] ss:$20 sps:$4 sm:$0xff]  }
  0x67   :  { %3871 = vmatpush1.bf16.msra.mxu0 %v8645_v49  ;;  %4199 = vmatpush1.bf16.msra.mxu1 %v8648_v50  ;;  %v8734_v49 = vld [vmem:[%s12623_s5 + $0x8a4] ss:$20 sps:$4 sm:$0xff]  }
  0x68   :  { %3872 = vmatprep.subr.bf16.mxu0 %v8653_v51  ;;  %4200 = vmatprep.subr.bf16.mxu1 %v8656_v52  ;;  %v8729_v50 = vld [vmem:[%s12623_s5 + $0x618] ss:$20 sps:$4 sm:$0xff]   ;;  %v8732_v51 = vld [vmem:[%s12623_s5 + $0x8a0] ss:$20 sps:$4 sm:$0xff]  }
  0x69   :  { %v8737_v52 = vld [vmem:[%s12623_s5 + $0x644] ss:$20 sps:$4 sm:$0xff]  }
  0x6b   :  { %3873 = vmatpush1.bf16.msra.mxu0 %v8651_v54  ;;  %4201 = vmatpush1.bf16.msra.mxu1 %v8654_v55  ;;  %v8740_v54 = vld [vmem:[%s12623_s5 + $0x8cc] ss:$20 sps:$4 sm:$0xff]  }
  0x6c   :  { %3874 = vmatprep.subr.bf16.mxu0 %v8659_v56  ;;  %4202 = vmatprep.subr.bf16.mxu1 %v8662_v57  ;;  %v8735_v55 = vld [vmem:[%s12623_s5 + $0x640] ss:$20 sps:$4 sm:$0xff]   ;;  %v8738_v56 = vld [vmem:[%s12623_s5 + $0x8c8] ss:$20 sps:$4 sm:$0xff]  }
  0x6d   :  { %v8743_v57 = vld [vmem:[%s12623_s5 + $0x66c] ss:$20 sps:$4 sm:$0xff]  }
  0x6f   :  { %3875 = vmatpush1.bf16.msra.mxu0 %v8657_v58  ;;  %4203 = vmatpush1.bf16.msra.mxu1 %v8660_v59  ;;  %v8746_v58 = vld [vmem:[%s12623_s5 + $0x8f4] ss:$20 sps:$4 sm:$0xff]  }
  0x70   :  { %3876 = vmatprep.subr.bf16.mxu0 %v8665_v60  ;;  %4204 = vmatprep.subr.bf16.mxu1 %v8668_v61  ;;  %v8741_v59 = vld [vmem:[%s12623_s5 + $0x668] ss:$20 sps:$4 sm:$0xff]   ;;  %v8744_v60 = vld [vmem:[%s12623_s5 + $0x8f0] ss:$20 sps:$4 sm:$0xff]  }
  0x71   :  { %v8749_v61 = vld [vmem:[%s12623_s5 + $0x694] ss:$20 sps:$4 sm:$0xff]  }
  0x73   :  { %3877 = vmatpush1.bf16.msra.mxu0 %v8663_v62  ;;  %4205 = vmatpush1.bf16.msra.mxu1 %v8666_v63  ;;  %v8752_v62 = vld [vmem:[%s12623_s5 + $0x91c] ss:$20 sps:$4 sm:$0xff]  }
  0x74   :  { %3878 = vmatprep.subr.bf16.mxu0 %v8671_v0  ;;  %4206 = vmatprep.subr.bf16.mxu1 %v8674_v1  ;;  %v8747_v63 = vld [vmem:[%s12623_s5 + $0x690] ss:$20 sps:$4 sm:$0xff]   ;;  %v8750_v0 = vld [vmem:[%s12623_s5 + $0x918] ss:$20 sps:$4 sm:$0xff]  }
  0x75   :  { %v8755_v1 = vld [vmem:[%s12623_s5 + $0x6bc] ss:$20 sps:$4 sm:$0xff]  }
  0x77   :  { %3879 = vmatpush1.bf16.msra.mxu0 %v8669_v2  ;;  %4207 = vmatpush1.bf16.msra.mxu1 %v8672_v3  ;;  %v8758_v2 = vld [vmem:[%s12623_s5 + $0x944] ss:$20 sps:$4 sm:$0xff]  }
  0x78   :  { %3880 = vmatprep.subr.bf16.mxu0 %v8677_v4  ;;  %4208 = vmatprep.subr.bf16.mxu1 %v8680_v5  ;;  %v8753_v3 = vld [vmem:[%s12623_s5 + $0x6b8] ss:$20 sps:$4 sm:$0xff]   ;;  %v8756_v4 = vld [vmem:[%s12623_s5 + $0x940] ss:$20 sps:$4 sm:$0xff]  }
  0x79   :  { %v8761_v5 = vld [vmem:[%s12623_s5 + $0x6e4] ss:$20 sps:$4 sm:$0xff]  }
  0x7b   :  { %3881 = vmatpush1.bf16.msra.mxu0 %v8675_v6  ;;  %4209 = vmatpush1.bf16.msra.mxu1 %v8678_v7  ;;  %v8764_v6 = vld [vmem:[%s12623_s5 + $0x96c] ss:$20 sps:$4 sm:$0xff]  }
  0x7c   :  { %3882 = vmatprep.subr.bf16.mxu0 %v8683_v8  ;;  %4210 = vmatprep.subr.bf16.mxu1 %v8686_v9  ;;  %v8759_v7 = vld [vmem:[%s12623_s5 + $0x6e0] ss:$20 sps:$4 sm:$0xff]   ;;  %v8762_v8 = vld [vmem:[%s12623_s5 + $0x968] ss:$20 sps:$4 sm:$0xff]  }
  0x7d   :  { %v8767_v9 = vld [vmem:[%s12623_s5 + $0x70c] ss:$20 sps:$4 sm:$0xff]  }
  0x7f   :  { %3883 = vmatpush1.bf16.msra.mxu0 %v8681_v12  ;;  %4211 = vmatpush1.bf16.msra.mxu1 %v8684_v13  ;;  %v8770_v12 = vld [vmem:[%s12623_s5 + $0x994] ss:$20 sps:$4 sm:$0xff]  }
  0x80   :  { %3893 = vmatprep.subr.bf16.mxu0 %v8689_v15  ;;  %4221 = vmatprep.subr.bf16.mxu1 %v8692_v16  ;;  %v8765_v13 = vld [vmem:[%s12623_s5 + $0x708] ss:$20 sps:$4 sm:$0xff]  }
  0x81   :  { %v8773_v15 = vld [vmem:[%s12623_s5 + $0x734] ss:$20 sps:$4 sm:$0xff]   ;;  %v8776_v16 = vld [vmem:[%s12623_s5 + $0x9bc] ss:$20 sps:$4 sm:$0xff]  }
  0x82   :  { %3885 = vmatmul.mubr.bf16.vlgmr.msra.gmra.mrb[0].mxu0 %v9966_v11  ;;  %4213 = vmatmul.mubr.bf16.vlgmr.msra.gmra.mrb[0].mxu1 %v10166_v17 }
  0x83   :  { %3894 = vmatpush1.bf16.msra.mxu0 %v8687_v18  ;;  %4222 = vmatpush1.bf16.msra.mxu1 %v8690_v19  ;;  %v8771_v18 = vld [vmem:[%s12623_s5 + $0x730] ss:$20 sps:$4 sm:$0xff]   ;;  %v8774_v19 = vld [vmem:[%s12623_s5 + $0x9b8] ss:$20 sps:$4 sm:$0xff]  }
  0x84   :  { %3895 = vmatprep.subr.bf16.mxu0 %v8695_v20  ;;  %4223 = vmatprep.subr.bf16.mxu1 %v8698_v21  ;;  %v8779_v20 = vld [vmem:[%s12623_s5 + $0x75c] ss:$20 sps:$4 sm:$0xff]   ;;  %v8782_v21 = vld [vmem:[%s12623_s5 + $0x9e4] ss:$20 sps:$4 sm:$0xff]  }
  0x85   :  { %3925 = vmatprep.mubr.bf16.mxu0 %v10052_v39  ;;  %4253 = vmatprep.mubr.bf16.mxu1 %v10194_v26 }
  0x87   :  { %3896 = vmatpush1.bf16.msra.mxu0 %v8693_v22  ;;  %4224 = vmatpush1.bf16.msra.mxu1 %v8696_v24  ;;  %v8777_v22 = vld [vmem:[%s12623_s5 + $0x758] ss:$20 sps:$4 sm:$0xff]   ;;  %v329_v24 = vld [vmem:[%s12624_s1 + $0x30] sm:$0xff] }
  0x88   :  { %3897 = vmatprep.subr.bf16.mxu0 %v8701_v25  ;;  %4225 = vmatprep.subr.bf16.mxu1 %v8704_v27  ;;  %v8785_v25 = vld [vmem:[%s12623_s5 + $0x784] ss:$20 sps:$4 sm:$0xff]   ;;  %v8788_v27 = vld [vmem:[%s12623_s5 + $0xa0c] ss:$20 sps:$4 sm:$0xff]  }
  0x8b   :  { %3898 = vmatpush1.bf16.msra.mxu0 %v8699_v28  ;;  %4226 = vmatpush1.bf16.msra.mxu1 %v8702_v29  ;;  %v10372_v28 = vpack.c.bf16 %v329_v24, %v329_v24  ;;  %v332_v29 = vld [vmem:[%s12624_s1 + $0x48] sm:$0xff] }
  0x8c   :  { %3899 = vmatprep.subr.bf16.mxu0 %v8707_v30  ;;  %4227 = vmatprep.subr.bf16.mxu1 %v8710_v31  ;;  %v8783_v30 = vld [vmem:[%s12623_s5 + $0x780] ss:$20 sps:$4 sm:$0xff]   ;;  %v8786_v31 = vld [vmem:[%s12623_s5 + $0xa08] ss:$20 sps:$4 sm:$0xff]  }
  0x8d   :  { %v8866_v24 = vld [vmem:[%s12623_s5 + $0xc14] ss:$20 sps:$4 sm:$0xff]  }
  0x8f   :  { %3900 = vmatpush1.bf16.msra.mxu0 %v8705_v32  ;;  %4228 = vmatpush1.bf16.msra.mxu1 %v8708_v33  ;;  %v8791_v32 = vld [vmem:[%s12623_s5 + $0x7ac] ss:$20 sps:$4 sm:$0xff]   ;;  %v8794_v33 = vld [vmem:[%s12623_s5 + $0xa34] ss:$20 sps:$4 sm:$0xff]  }
  0x90   :  { %3901 = vmatprep.subr.bf16.mxu0 %v8713_v34  ;;  %4229 = vmatprep.subr.bf16.mxu1 %v8716_v35  ;;  %v10389_v34 = vpack.c.bf16 %v332_v29, %v332_v29  ;;  %v8789_v35 = vld [vmem:[%s12623_s5 + $0x7a8] ss:$20 sps:$4 sm:$0xff]  }
  0x91   :  { %v8869_v29 = vld [vmem:[%s12623_s5 + $0x9b4] ss:$20 sps:$4 sm:$0xff]  }
  0x93   :  { %3902 = vmatpush1.bf16.msra.mxu0 %v8711_v36  ;;  %4230 = vmatpush1.bf16.msra.mxu1 %v8714_v37  ;;  %v8792_v36 = vld [vmem:[%s12623_s5 + $0xa30] ss:$20 sps:$4 sm:$0xff]   ;;  %v8797_v37 = vld [vmem:[%s12623_s5 + $0x7d4] ss:$20 sps:$4 sm:$0xff]  }
  0x94   :  { %3903 = vmatprep.subr.bf16.mxu0 %v8719_v38  ;;  %4231 = vmatprep.subr.bf16.mxu1 %v8722_v40  ;;  %v8800_v38 = vld [vmem:[%s12623_s5 + $0xa5c] ss:$20 sps:$4 sm:$0xff]  }
  0x95   :  { %v8795_v40 = vld [vmem:[%s12623_s5 + $0x7d0] ss:$20 sps:$4 sm:$0xff]  }
  0x97   :  { %3904 = vmatpush1.bf16.msra.mxu0 %v8717_v41  ;;  %4232 = vmatpush1.bf16.msra.mxu1 %v8720_v42  ;;  %v8798_v41 = vld [vmem:[%s12623_s5 + $0xa58] ss:$20 sps:$4 sm:$0xff]   ;;  %v8803_v42 = vld [vmem:[%s12623_s5 + $0x7fc] ss:$20 sps:$4 sm:$0xff]  }
  0x98   :  { %3905 = vmatprep.subr.bf16.mxu0 %v8725_v43  ;;  %4233 = vmatprep.subr.bf16.mxu1 %v8728_v44  ;;  %v8806_v43 = vld [vmem:[%s12623_s5 + $0xa84] ss:$20 sps:$4 sm:$0xff]  }
  0x99   :  { %v8801_v44 = vld [vmem:[%s12623_s5 + $0x7f8] ss:$20 sps:$4 sm:$0xff]  }
  0x9b   :  { %3906 = vmatpush1.bf16.msra.mxu0 %v8723_v45  ;;  %4234 = vmatpush1.bf16.msra.mxu1 %v8726_v46  ;;  %v8804_v45 = vld [vmem:[%s12623_s5 + $0xa80] ss:$20 sps:$4 sm:$0xff]   ;;  %v8809_v46 = vld [vmem:[%s12623_s5 + $0x824] ss:$20 sps:$4 sm:$0xff]  }
  0x9c   :  { %3907 = vmatprep.subr.bf16.mxu0 %v8731_v47  ;;  %4235 = vmatprep.subr.bf16.mxu1 %v8734_v49  ;;  %v8812_v47 = vld [vmem:[%s12623_s5 + $0xaac] ss:$20 sps:$4 sm:$0xff]  }
  0x9d   :  { %v8807_v49 = vld [vmem:[%s12623_s5 + $0x820] ss:$20 sps:$4 sm:$0xff]  }
  0x9f   :  { %3908 = vmatpush1.bf16.msra.mxu0 %v8729_v50  ;;  %4236 = vmatpush1.bf16.msra.mxu1 %v8732_v51  ;;  %v8810_v50 = vld [vmem:[%s12623_s5 + $0xaa8] ss:$20 sps:$4 sm:$0xff]   ;;  %v8815_v51 = vld [vmem:[%s12623_s5 + $0x84c] ss:$20 sps:$4 sm:$0xff]  }
  0xa0   :  { %3909 = vmatprep.subr.bf16.mxu0 %v8737_v52  ;;  %4237 = vmatprep.subr.bf16.mxu1 %v8740_v54  ;;  %v8818_v52 = vld [vmem:[%s12623_s5 + $0xad4] ss:$20 sps:$4 sm:$0xff]  }
  0xa1   :  { %v8813_v54 = vld [vmem:[%s12623_s5 + $0x848] ss:$20 sps:$4 sm:$0xff]  }
  0xa3   :  { %3910 = vmatpush1.bf16.msra.mxu0 %v8735_v55  ;;  %4238 = vmatpush1.bf16.msra.mxu1 %v8738_v56  ;;  %v8816_v55 = vld [vmem:[%s12623_s5 + $0xad0] ss:$20 sps:$4 sm:$0xff]   ;;  %v8821_v56 = vld [vmem:[%s12623_s5 + $0x874] ss:$20 sps:$4 sm:$0xff]  }
  0xa4   :  { %3911 = vmatprep.subr.bf16.mxu0 %v8743_v57  ;;  %4239 = vmatprep.subr.bf16.mxu1 %v8746_v58  ;;  %v8824_v57 = vld [vmem:[%s12623_s5 + $0xafc] ss:$20 sps:$4 sm:$0xff]  }
  0xa5   :  { %v8819_v58 = vld [vmem:[%s12623_s5 + $0x870] ss:$20 sps:$4 sm:$0xff]  }
  0xa7   :  { %3912 = vmatpush1.bf16.msra.mxu0 %v8741_v59  ;;  %4240 = vmatpush1.bf16.msra.mxu1 %v8744_v60  ;;  %v8822_v59 = vld [vmem:[%s12623_s5 + $0xaf8] ss:$20 sps:$4 sm:$0xff]   ;;  %v8827_v60 = vld [vmem:[%s12623_s5 + $0x89c] ss:$20 sps:$4 sm:$0xff]  }
  0xa8   :  { %3913 = vmatprep.subr.bf16.mxu0 %v8749_v61  ;;  %4241 = vmatprep.subr.bf16.mxu1 %v8752_v62  ;;  %v8830_v61 = vld [vmem:[%s12623_s5 + $0xb24] ss:$20 sps:$4 sm:$0xff]  }
  0xa9   :  { %v8825_v62 = vld [vmem:[%s12623_s5 + $0x898] ss:$20 sps:$4 sm:$0xff]  }
  0xab   :  { %3914 = vmatpush1.bf16.msra.mxu0 %v8747_v63  ;;  %4242 = vmatpush1.bf16.msra.mxu1 %v8750_v0  ;;  %v8828_v63 = vld [vmem:[%s12623_s5 + $0xb20] ss:$20 sps:$4 sm:$0xff]   ;;  %v8833_v0 = vld [vmem:[%s12623_s5 + $0x8c4] ss:$20 sps:$4 sm:$0xff]  }
  0xac   :  { %3915 = vmatprep.subr.bf16.mxu0 %v8755_v1  ;;  %4243 = vmatprep.subr.bf16.mxu1 %v8758_v2  ;;  %v8836_v1 = vld [vmem:[%s12623_s5 + $0xb4c] ss:$20 sps:$4 sm:$0xff]  }
  0xad   :  { %v8831_v2 = vld [vmem:[%s12623_s5 + $0x8c0] ss:$20 sps:$4 sm:$0xff]  }
  0xaf   :  { %3916 = vmatpush1.bf16.msra.mxu0 %v8753_v3  ;;  %4244 = vmatpush1.bf16.msra.mxu1 %v8756_v4  ;;  %v8834_v3 = vld [vmem:[%s12623_s5 + $0xb48] ss:$20 sps:$4 sm:$0xff]   ;;  %v8839_v4 = vld [vmem:[%s12623_s5 + $0x8ec] ss:$20 sps:$4 sm:$0xff]  }
  0xb0   :  { %3917 = vmatprep.subr.bf16.mxu0 %v8761_v5  ;;  %4245 = vmatprep.subr.bf16.mxu1 %v8764_v6  ;;  %v8842_v5 = vld [vmem:[%s12623_s5 + $0xb74] ss:$20 sps:$4 sm:$0xff]  }
  0xb1   :  { %v8837_v6 = vld [vmem:[%s12623_s5 + $0x8e8] ss:$20 sps:$4 sm:$0xff]  }
  0xb3   :  { %3918 = vmatpush1.bf16.msra.mxu0 %v8759_v7  ;;  %4246 = vmatpush1.bf16.msra.mxu1 %v8762_v8  ;;  %v8840_v7 = vld [vmem:[%s12623_s5 + $0xb70] ss:$20 sps:$4 sm:$0xff]   ;;  %v8845_v8 = vld [vmem:[%s12623_s5 + $0x914] ss:$20 sps:$4 sm:$0xff]  }
  0xb4   :  { %3919 = vmatprep.subr.bf16.mxu0 %v8767_v9  ;;  %4247 = vmatprep.subr.bf16.mxu1 %v8770_v12  ;;  %v8848_v9 = vld [vmem:[%s12623_s5 + $0xb9c] ss:$20 sps:$4 sm:$0xff]  }
  0xb5   :  { %v8843_v12 = vld [vmem:[%s12623_s5 + $0x910] ss:$20 sps:$4 sm:$0xff]  }
  0xb7   :  { %3920 = vmatpush1.bf16.msra.mxu0 %v8765_v13  ;;  %4248 = vmatpush1.bf16.msra.mxu1 %v8768_v14  ;;  %v8846_v13 = vld [vmem:[%s12623_s5 + $0xb98] ss:$20 sps:$4 sm:$0xff]   ;;  %v8851_v14 = vld [vmem:[%s12623_s5 + $0x93c] ss:$20 sps:$4 sm:$0xff]  }
  0xb8   :  { %3921 = vmatprep.subr.bf16.mxu0 %v8773_v15  ;;  %4249 = vmatprep.subr.bf16.mxu1 %v8776_v16  ;;  %v8854_v15 = vld [vmem:[%s12623_s5 + $0xbc4] ss:$20 sps:$4 sm:$0xff]  }
  0xb9   :  { %v8849_v16 = vld [vmem:[%s12623_s5 + $0x938] ss:$20 sps:$4 sm:$0xff]  }
  0xbb   :  { %3922 = vmatpush1.bf16.msra.mxu0 %v8771_v18  ;;  %4250 = vmatpush1.bf16.msra.mxu1 %v8774_v19  ;;  %v8852_v18 = vld [vmem:[%s12623_s5 + $0xbc0] ss:$20 sps:$4 sm:$0xff]   ;;  %v8857_v19 = vld [vmem:[%s12623_s5 + $0x964] ss:$20 sps:$4 sm:$0xff]  }
  0xbc   :  { %3923 = vmatprep.subr.bf16.mxu0 %v8779_v20  ;;  %4251 = vmatprep.subr.bf16.mxu1 %v8782_v21  ;;  %v8860_v20 = vld [vmem:[%s12623_s5 + $0xbec] ss:$20 sps:$4 sm:$0xff]  }
  0xbd   :  { %v8855_v21 = vld [vmem:[%s12623_s5 + $0x960] ss:$20 sps:$4 sm:$0xff]  }
  0xbf   :  { %3924 = vmatpush1.bf16.msra.mxu0 %v8777_v22  ;;  %4252 = vmatpush1.bf16.msra.mxu1 %v8780_v23  ;;  %v8858_v22 = vld [vmem:[%s12623_s5 + $0xbe8] ss:$20 sps:$4 sm:$0xff]   ;;  %v8863_v23 = vld [vmem:[%s12623_s5 + $0x98c] ss:$20 sps:$4 sm:$0xff]  }
  0xc0   :  { %3934 = vmatprep.subr.bf16.mxu0 %v8785_v25  ;;  %4262 = vmatprep.subr.bf16.mxu1 %v8788_v27  ;;  %v8861_v25 = vld [vmem:[%s12623_s5 + $0x988] ss:$20 sps:$4 sm:$0xff]   ;;  %v8864_v27 = vld [vmem:[%s12623_s5 + $0xc10] ss:$20 sps:$4 sm:$0xff]  }
  0xc2   :  { %3926 = vmatmul.mubr.bf16.vlgmr.msra.gmra.mrb[0].mxu0 %v10166_v17  ;;  %4254 = vmatmul.mubr.bf16.vlgmr.msra.gmra.mrb[0].mxu1 %v10372_v28 }
  0xc3   :  { %3935 = vmatpush1.bf16.msra.mxu0 %v8783_v30  ;;  %4263 = vmatpush1.bf16.msra.mxu1 %v8786_v31  ;;  %v8872_v30 = vld [vmem:[%s12623_s5 + $0xc3c] ss:$20 sps:$4 sm:$0xff]  }
  0xc4   :  { %3936 = vmatprep.subr.bf16.mxu0 %v8791_v32  ;;  %4264 = vmatprep.subr.bf16.mxu1 %v8794_v33  ;;  %v8867_v31 = vld [vmem:[%s12623_s5 + $0x9b0] ss:$20 sps:$4 sm:$0xff]   ;;  %v8870_v32 = vld [vmem:[%s12623_s5 + $0xc38] ss:$20 sps:$4 sm:$0xff]  }
  0xc5   :  { %3966 = vmatprep.mubr.bf16.mxu0 %v10194_v26  ;;  %4294 = vmatprep.mubr.bf16.mxu1 %v10389_v34  ;;  %v8875_v33 = vld [vmem:[%s12623_s5 + $0x9dc] ss:$20 sps:$4 sm:$0xff]  }
  0xc7   :  { %3937 = vmatpush1.bf16.msra.mxu0 %v8789_v35  ;;  %4265 = vmatpush1.bf16.msra.mxu1 %v8792_v36  ;;  %v8878_v35 = vld [vmem:[%s12623_s5 + $0xc64] ss:$20 sps:$4 sm:$0xff]  }
  0xc8   :  { %3938 = vmatprep.subr.bf16.mxu0 %v8797_v37  ;;  %4266 = vmatprep.subr.bf16.mxu1 %v8800_v38  ;;  %v8873_v36 = vld [vmem:[%s12623_s5 + $0x9d8] ss:$20 sps:$4 sm:$0xff]   ;;  %v8876_v37 = vld [vmem:[%s12623_s5 + $0xc60] ss:$20 sps:$4 sm:$0xff]  }
  0xc9   :  { %v8881_v38 = vld [vmem:[%s12623_s5 + $0xa04] ss:$20 sps:$4 sm:$0xff]  }
  0xcb   :  { %3939 = vmatpush1.bf16.msra.mxu0 %v8795_v40  ;;  %4267 = vmatpush1.bf16.msra.mxu1 %v8798_v41  ;;  %v331_v40 = vld [vmem:[%s12624_s1 + $0x40] sm:$0xff] }
  0xcc   :  { %3940 = vmatprep.subr.bf16.mxu0 %v8803_v42  ;;  %4268 = vmatprep.subr.bf16.mxu1 %v8806_v43  ;;  %v8884_v41 = vld [vmem:[%s12623_s5 + $0xc8c] ss:$20 sps:$4 sm:$0xff]   ;;  %v10581_v43 = vpack.c.bf16 %v331_v40, %v331_v40 }
  0xcd   :  { %v8879_v42 = vld [vmem:[%s12623_s5 + $0xa00] ss:$20 sps:$4 sm:$0xff]  }
  0xce   :  { %v8959_v40 = vld [vmem:[%s12623_s5 + $0xc0c] ss:$20 sps:$4 sm:$0xff]  }
  0xcf   :  { %3941 = vmatpush1.bf16.msra.mxu0 %v8801_v44  ;;  %4269 = vmatpush1.bf16.msra.mxu1 %v8804_v45  ;;  %v334_v44 = vld [vmem:[%s12624_s1 + $0x58] sm:$0xff] }
  0xd0   :  { %3942 = vmatprep.subr.bf16.mxu0 %v8809_v46  ;;  %4270 = vmatprep.subr.bf16.mxu1 %v8812_v47  ;;  %v8882_v45 = vld [vmem:[%s12623_s5 + $0xc88] ss:$20 sps:$4 sm:$0xff]   ;;  %v8887_v46 = vld [vmem:[%s12623_s5 + $0xa2c] ss:$20 sps:$4 sm:$0xff]  }
  0xd1   :  { %v8890_v47 = vld [vmem:[%s12623_s5 + $0xcb4] ss:$20 sps:$4 sm:$0xff]  }
  0xd3   :  { %3943 = vmatpush1.bf16.msra.mxu0 %v8807_v49  ;;  %4271 = vmatpush1.bf16.msra.mxu1 %v8810_v50  ;;  %v8885_v49 = vld [vmem:[%s12623_s5 + $0xa28] ss:$20 sps:$4 sm:$0xff]   ;;  %v10598_v50 = vpack.c.bf16 %v334_v44, %v334_v44  ;;  %v8960_v44 = vld [vmem:[%s12623_s5 + $0xe90] ss:$20 sps:$4 sm:$0xff]  }
  0xd4   :  { %3944 = vmatprep.subr.bf16.mxu0 %v8815_v51  ;;  %4272 = vmatprep.subr.bf16.mxu1 %v8818_v52  ;;  %v8888_v51 = vld [vmem:[%s12623_s5 + $0xcb0] ss:$20 sps:$4 sm:$0xff]   ;;  %v8893_v52 = vld [vmem:[%s12623_s5 + $0xa54] ss:$20 sps:$4 sm:$0xff]  }
  0xd7   :  { %3945 = vmatpush1.bf16.msra.mxu0 %v8813_v54  ;;  %4273 = vmatpush1.bf16.msra.mxu1 %v8816_v55  ;;  %v8896_v54 = vld [vmem:[%s12623_s5 + $0xcdc] ss:$20 sps:$4 sm:$0xff]  }
  0xd8   :  { %3946 = vmatprep.subr.bf16.mxu0 %v8821_v56  ;;  %4274 = vmatprep.subr.bf16.mxu1 %v8824_v57  ;;  %v8891_v55 = vld [vmem:[%s12623_s5 + $0xa50] ss:$20 sps:$4 sm:$0xff]   ;;  %v8894_v56 = vld [vmem:[%s12623_s5 + $0xcd8] ss:$20 sps:$4 sm:$0xff]  }
  0xd9   :  { %v8899_v57 = vld [vmem:[%s12623_s5 + $0xa7c] ss:$20 sps:$4 sm:$0xff]  }
  0xdb   :  { %3947 = vmatpush1.bf16.msra.mxu0 %v8819_v58  ;;  %4275 = vmatpush1.bf16.msra.mxu1 %v8822_v59  ;;  %v8902_v58 = vld [vmem:[%s12623_s5 + $0xd04] ss:$20 sps:$4 sm:$0xff]  }
  0xdc   :  { %3948 = vmatprep.subr.bf16.mxu0 %v8827_v60  ;;  %4276 = vmatprep.subr.bf16.mxu1 %v8830_v61  ;;  %v8897_v59 = vld [vmem:[%s12623_s5 + $0xa78] ss:$20 sps:$4 sm:$0xff]   ;;  %v8900_v60 = vld [vmem:[%s12623_s5 + $0xd00] ss:$20 sps:$4 sm:$0xff]  }
  0xdd   :  { %v8905_v61 = vld [vmem:[%s12623_s5 + $0xaa4] ss:$20 sps:$4 sm:$0xff]  }
  0xdf   :  { %3949 = vmatpush1.bf16.msra.mxu0 %v8825_v62  ;;  %4277 = vmatpush1.bf16.msra.mxu1 %v8828_v63  ;;  %v8908_v62 = vld [vmem:[%s12623_s5 + $0xd2c] ss:$20 sps:$4 sm:$0xff]  }
  0xe0   :  { %3950 = vmatprep.subr.bf16.mxu0 %v8833_v0  ;;  %4278 = vmatprep.subr.bf16.mxu1 %v8836_v1  ;;  %v8903_v63 = vld [vmem:[%s12623_s5 + $0xaa0] ss:$20 sps:$4 sm:$0xff]   ;;  %v8906_v0 = vld [vmem:[%s12623_s5 + $0xd28] ss:$20 sps:$4 sm:$0xff]  }
  0xe1   :  { %v8911_v1 = vld [vmem:[%s12623_s5 + $0xacc] ss:$20 sps:$4 sm:$0xff]  }
  0xe3   :  { %3951 = vmatpush1.bf16.msra.mxu0 %v8831_v2  ;;  %4279 = vmatpush1.bf16.msra.mxu1 %v8834_v3  ;;  %v8914_v2 = vld [vmem:[%s12623_s5 + $0xd54] ss:$20 sps:$4 sm:$0xff]  }
  0xe4   :  { %3952 = vmatprep.subr.bf16.mxu0 %v8839_v4  ;;  %4280 = vmatprep.subr.bf16.mxu1 %v8842_v5  ;;  %v8909_v3 = vld [vmem:[%s12623_s5 + $0xac8] ss:$20 sps:$4 sm:$0xff]   ;;  %v8912_v4 = vld [vmem:[%s12623_s5 + $0xd50] ss:$20 sps:$4 sm:$0xff]  }
  0xe5   :  { %v8917_v5 = vld [vmem:[%s12623_s5 + $0xaf4] ss:$20 sps:$4 sm:$0xff]  }
  0xe7   :  { %3953 = vmatpush1.bf16.msra.mxu0 %v8837_v6  ;;  %4281 = vmatpush1.bf16.msra.mxu1 %v8840_v7  ;;  %v8920_v6 = vld [vmem:[%s12623_s5 + $0xd7c] ss:$20 sps:$4 sm:$0xff]  }
  0xe8   :  { %3954 = vmatprep.subr.bf16.mxu0 %v8845_v8  ;;  %4282 = vmatprep.subr.bf16.mxu1 %v8848_v9  ;;  %v8915_v7 = vld [vmem:[%s12623_s5 + $0xaf0] ss:$20 sps:$4 sm:$0xff]   ;;  %v8918_v8 = vld [vmem:[%s12623_s5 + $0xd78] ss:$20 sps:$4 sm:$0xff]  }
  0xe9   :  { %v8923_v9 = vld [vmem:[%s12623_s5 + $0xb1c] ss:$20 sps:$4 sm:$0xff]  }
  0xeb   :  { %3955 = vmatpush1.bf16.msra.mxu0 %v8843_v12  ;;  %4283 = vmatpush1.bf16.msra.mxu1 %v8846_v13  ;;  %v8926_v12 = vld [vmem:[%s12623_s5 + $0xda4] ss:$20 sps:$4 sm:$0xff]  }
  0xec   :  { %3956 = vmatprep.subr.bf16.mxu0 %v8851_v14  ;;  %4284 = vmatprep.subr.bf16.mxu1 %v8854_v15  ;;  %v8921_v13 = vld [vmem:[%s12623_s5 + $0xb18] ss:$20 sps:$4 sm:$0xff]   ;;  %v8924_v14 = vld [vmem:[%s12623_s5 + $0xda0] ss:$20 sps:$4 sm:$0xff]  }
  0xed   :  { %v8929_v15 = vld [vmem:[%s12623_s5 + $0xb44] ss:$20 sps:$4 sm:$0xff]  }
  0xef   :  { %3957 = vmatpush1.bf16.msra.mxu0 %v8849_v16  ;;  %4285 = vmatpush1.bf16.msra.mxu1 %v8852_v18  ;;  %v8932_v16 = vld [vmem:[%s12623_s5 + $0xdcc] ss:$20 sps:$4 sm:$0xff]  }
  0xf0   :  { %3958 = vmatprep.subr.bf16.mxu0 %v8857_v19  ;;  %4286 = vmatprep.subr.bf16.mxu1 %v8860_v20  ;;  %v8927_v18 = vld [vmem:[%s12623_s5 + $0xb40] ss:$20 sps:$4 sm:$0xff]   ;;  %v8930_v19 = vld [vmem:[%s12623_s5 + $0xdc8] ss:$20 sps:$4 sm:$0xff]  }
  0xf1   :  { %v8935_v20 = vld [vmem:[%s12623_s5 + $0xb6c] ss:$20 sps:$4 sm:$0xff]  }
  0xf3   :  { %3959 = vmatpush1.bf16.msra.mxu0 %v8855_v21  ;;  %4287 = vmatpush1.bf16.msra.mxu1 %v8858_v22  ;;  %v8938_v21 = vld [vmem:[%s12623_s5 + $0xdf4] ss:$20 sps:$4 sm:$0xff]  }
  0xf4   :  { %3960 = vmatprep.subr.bf16.mxu0 %v8863_v23  ;;  %4288 = vmatprep.subr.bf16.mxu1 %v8866_v24  ;;  %v8933_v22 = vld [vmem:[%s12623_s5 + $0xb68] ss:$20 sps:$4 sm:$0xff]   ;;  %v8936_v23 = vld [vmem:[%s12623_s5 + $0xdf0] ss:$20 sps:$4 sm:$0xff]  }
  0xf5   :  { %v8941_v24 = vld [vmem:[%s12623_s5 + $0xb94] ss:$20 sps:$4 sm:$0xff]  }
  0xf7   :  { %3961 = vmatpush1.bf16.msra.mxu0 %v8861_v25  ;;  %4289 = vmatpush1.bf16.msra.mxu1 %v8864_v27  ;;  %v8944_v25 = vld [vmem:[%s12623_s5 + $0xe1c] ss:$20 sps:$4 sm:$0xff]  }
  0xf8   :  { %3962 = vmatprep.subr.bf16.mxu0 %v8869_v29  ;;  %4290 = vmatprep.subr.bf16.mxu1 %v8872_v30  ;;  %v8939_v27 = vld [vmem:[%s12623_s5 + $0xb90] ss:$20 sps:$4 sm:$0xff]   ;;  %v8942_v29 = vld [vmem:[%s12623_s5 + $0xe18] ss:$20 sps:$4 sm:$0xff]  }
  0xf9   :  { %v8947_v30 = vld [vmem:[%s12623_s5 + $0xbbc] ss:$20 sps:$4 sm:$0xff]  }
  0xfb   :  { %3963 = vmatpush1.bf16.msra.mxu0 %v8867_v31  ;;  %4291 = vmatpush1.bf16.msra.mxu1 %v8870_v32  ;;  %v8950_v31 = vld [vmem:[%s12623_s5 + $0xe44] ss:$20 sps:$4 sm:$0xff]  }
  0xfc   :  { %3964 = vmatprep.subr.bf16.mxu0 %v8875_v33  ;;  %4292 = vmatprep.subr.bf16.mxu1 %v8878_v35  ;;  %v8945_v32 = vld [vmem:[%s12623_s5 + $0xbb8] ss:$20 sps:$4 sm:$0xff]   ;;  %v8948_v33 = vld [vmem:[%s12623_s5 + $0xe40] ss:$20 sps:$4 sm:$0xff]  }
  0xfd   :  { %v8953_v35 = vld [vmem:[%s12623_s5 + $0xbe4] ss:$20 sps:$4 sm:$0xff]  }
  0xff   :  { %3965 = vmatpush1.bf16.msra.mxu0 %v8873_v36  ;;  %4293 = vmatpush1.bf16.msra.mxu1 %v8876_v37  ;;  %v8956_v36 = vld [vmem:[%s12623_s5 + $0xe6c] ss:$20 sps:$4 sm:$0xff]  }
 0x100   :  { %3975 = vmatprep.subr.bf16.mxu0 %v8881_v38  ;;  %4303 = vmatprep.subr.bf16.mxu1 %v8884_v41  ;;  %v8951_v37 = vld [vmem:[%s12623_s5 + $0xbe0] ss:$20 sps:$4 sm:$0xff]   ;;  %v8954_v38 = vld [vmem:[%s12623_s5 + $0xe68] ss:$20 sps:$4 sm:$0xff]  }
 0x101   :  { %v8962_v41 = vld [vmem:[%s12623_s5 + $0xe94] ss:$20 sps:$4 sm:$0xff]  }
 0x102   :  { %3967 = vmatmul.mubr.bf16.vlgmr.msra.gmra.mrb[0].mxu0 %v10372_v28  ;;  %4295 = vmatmul.mubr.bf16.vlgmr.msra.gmra.mrb[0].mxu1 %v10581_v43 }
 0x103   :  { %3976 = vmatpush1.bf16.msra.mxu0 %v8879_v42  ;;  %4304 = vmatpush1.bf16.msra.mxu1 %v8882_v45  ;;  %v8957_v42 = vld [vmem:[%s12623_s5 + $0xc08] ss:$20 sps:$4 sm:$0xff]  }
 0x104   :  { %3977 = vmatprep.subr.bf16.mxu0 %v8887_v46  ;;  %4305 = vmatprep.subr.bf16.mxu1 %v8890_v47  ;;  %v8965_v45 = vld [vmem:[%s12623_s5 + $0xc34] ss:$20 sps:$4 sm:$0xff]   ;;  %v8968_v46 = vld [vmem:[%s12623_s5 + $0xebc] ss:$20 sps:$4 sm:$0xff]  }
 0x105   :  { %4007 = vmatprep.mubr.bf16.mxu0 %v10389_v34  ;;  %4335 = vmatprep.mubr.bf16.mxu1 %v10598_v50  ;;  %v8963_v47 = vld [vmem:[%s12623_s5 + $0xc30] ss:$20 sps:$4 sm:$0xff]  }
 0x107   :  { %3978 = vmatpush1.bf16.msra.mxu0 %v8885_v49  ;;  %4306 = vmatpush1.bf16.msra.mxu1 %v8888_v51  ;;  %v8966_v49 = vld [vmem:[%s12623_s5 + $0xeb8] ss:$20 sps:$4 sm:$0xff]   ;;  %v8971_v51 = vld [vmem:[%s12623_s5 + $0xc5c] ss:$20 sps:$4 sm:$0xff]  }
 0x108   :  { %3979 = vmatprep.subr.bf16.mxu0 %v8893_v52  ;;  %4307 = vmatprep.subr.bf16.mxu1 %v8896_v54  ;;  %v8974_v52 = vld [vmem:[%s12623_s5 + $0xee4] ss:$20 sps:$4 sm:$0xff]  }
 0x109   :  { %v8969_v54 = vld [vmem:[%s12623_s5 + $0xc58] ss:$20 sps:$4 sm:$0xff]  }
 0x10b   :  { %3980 = vmatpush1.bf16.msra.mxu0 %v8891_v55  ;;  %4308 = vmatpush1.bf16.msra.mxu1 %v8894_v56  ;;  %v8972_v55 = vld [vmem:[%s12623_s5 + $0xee0] ss:$20 sps:$4 sm:$0xff]   ;;  %v8977_v56 = vld [vmem:[%s12623_s5 + $0xc84] ss:$20 sps:$4 sm:$0xff]  }
 0x10c   :  { %3981 = vmatprep.subr.bf16.mxu0 %v8899_v57  ;;  %4309 = vmatprep.subr.bf16.mxu1 %v8902_v58  ;;  %v333_v57 = vld [vmem:[%s12624_s1 + $0x50] sm:$0xff]  ;;  %v8980_v58 = vld [vmem:[%s12623_s5 + $0xf0c] ss:$20 sps:$4 sm:$0xff]  }
 0x10f   :  { %3982 = vmatpush1.bf16.msra.mxu0 %v8897_v59  ;;  %4310 = vmatpush1.bf16.msra.mxu1 %v8900_v60  ;;  %v8975_v59 = vld [vmem:[%s12623_s5 + $0xc80] ss:$20 sps:$4 sm:$0xff]   ;;  %v336_v60 = vld [vmem:[%s12624_s1 + $0x68] sm:$0xff] }
 0x110   :  { %3983 = vmatprep.subr.bf16.mxu0 %v8905_v61  ;;  %4311 = vmatprep.subr.bf16.mxu1 %v8908_v62  ;;  %v10790_v61 = vpack.c.bf16 %v333_v57, %v333_v57  ;;  %v8978_v62 = vld [vmem:[%s12623_s5 + $0xf08] ss:$20 sps:$4 sm:$0xff]   ;;  %v9050_v57 = vld [vmem:[%s12623_s5 + $0x3d0] ss:$20 sps:$4 sm:$0xff]  }
 0x113   :  { %3984 = vmatpush1.bf16.msra.mxu0 %v8903_v63  ;;  %4312 = vmatpush1.bf16.msra.mxu1 %v8906_v0  ;;  %v8983_v63 = vld [vmem:[%s12623_s5 + $0xcac] ss:$20 sps:$4 sm:$0xff]   ;;  %v8986_v0 = vld [vmem:[%s12623_s5 + $0xf34] ss:$20 sps:$4 sm:$0xff]  }
 0x114   :  { %3985 = vmatprep.subr.bf16.mxu0 %v8911_v1  ;;  %4313 = vmatprep.subr.bf16.mxu1 %v8914_v2  ;;  %v8981_v1 = vld [vmem:[%s12623_s5 + $0xca8] ss:$20 sps:$4 sm:$0xff]   ;;  %v10804_v2 = vpack.c.bf16 %v336_v60, %v336_v60 }
 0x117   :  { %3986 = vmatpush1.bf16.msra.mxu0 %v8909_v3  ;;  %4314 = vmatpush1.bf16.msra.mxu1 %v8912_v4  ;;  %v8984_v3 = vld [vmem:[%s12623_s5 + $0xf30] ss:$20 sps:$4 sm:$0xff]   ;;  %v8989_v4 = vld [vmem:[%s12623_s5 + $0xcd4] ss:$20 sps:$4 sm:$0xff]  }
 0x118   :  { %3987 = vmatprep.subr.bf16.mxu0 %v8917_v5  ;;  %4315 = vmatprep.subr.bf16.mxu1 %v8920_v6  ;;  %v8992_v5 = vld [vmem:[%s12623_s5 + $0xf5c] ss:$20 sps:$4 sm:$0xff]  }
 0x119   :  { %v8987_v6 = vld [vmem:[%s12623_s5 + $0xcd0] ss:$20 sps:$4 sm:$0xff]  }
 0x11b   :  { %3988 = vmatpush1.bf16.msra.mxu0 %v8915_v7  ;;  %4316 = vmatpush1.bf16.msra.mxu1 %v8918_v8  ;;  %v8990_v7 = vld [vmem:[%s12623_s5 + $0xf58] ss:$20 sps:$4 sm:$0xff]   ;;  %v8995_v8 = vld [vmem:[%s12623_s5 + $0xcfc] ss:$20 sps:$4 sm:$0xff]  }
 0x11c   :  { %3989 = vmatprep.subr.bf16.mxu0 %v8923_v9  ;;  %4317 = vmatprep.subr.bf16.mxu1 %v8926_v12  ;;  %v8998_v9 = vld [vmem:[%s12623_s5 + $0xf84] ss:$20 sps:$4 sm:$0xff]  }
 0x11d   :  { %v8993_v12 = vld [vmem:[%s12623_s5 + $0xcf8] ss:$20 sps:$4 sm:$0xff]  }
 0x11f   :  { %3990 = vmatpush1.bf16.msra.mxu0 %v8921_v13  ;;  %4318 = vmatpush1.bf16.msra.mxu1 %v8924_v14  ;;  %v8996_v13 = vld [vmem:[%s12623_s5 + $0xf80] ss:$20 sps:$4 sm:$0xff]   ;;  %v9001_v14 = vld [vmem:[%s12623_s5 + $0xd24] ss:$20 sps:$4 sm:$0xff]  }
 0x120   :  { %3991 = vmatprep.subr.bf16.mxu0 %v8929_v15  ;;  %4319 = vmatprep.subr.bf16.mxu1 %v8932_v16  ;;  %v9004_v15 = vld [vmem:[%s12623_s5 + $0xfac] ss:$20 sps:$4 sm:$0xff]  }
 0x121   :  { %v8999_v16 = vld [vmem:[%s12623_s5 + $0xd20] ss:$20 sps:$4 sm:$0xff]  }
 0x123   :  { %3992 = vmatpush1.bf16.msra.mxu0 %v8927_v18  ;;  %4320 = vmatpush1.bf16.msra.mxu1 %v8930_v19  ;;  %v9002_v18 = vld [vmem:[%s12623_s5 + $0xfa8] ss:$20 sps:$4 sm:$0xff]   ;;  %v9007_v19 = vld [vmem:[%s12623_s5 + $0xd4c] ss:$20 sps:$4 sm:$0xff]  }
 0x124   :  { %3993 = vmatprep.subr.bf16.mxu0 %v8935_v20  ;;  %4321 = vmatprep.subr.bf16.mxu1 %v8938_v21  ;;  %v9010_v20 = vld [vmem:[%s12623_s5 + $0xfd4] ss:$20 sps:$4 sm:$0xff]  }
 0x125   :  { %v9005_v21 = vld [vmem:[%s12623_s5 + $0xd48] ss:$20 sps:$4 sm:$0xff]  }
 0x127   :  { %3994 = vmatpush1.bf16.msra.mxu0 %v8933_v22  ;;  %4322 = vmatpush1.bf16.msra.mxu1 %v8936_v23  ;;  %v9008_v22 = vld [vmem:[%s12623_s5 + $0xfd0] ss:$20 sps:$4 sm:$0xff]   ;;  %v9013_v23 = vld [vmem:[%s12623_s5 + $0xd74] ss:$20 sps:$4 sm:$0xff]  }
 0x128   :  { %3995 = vmatprep.subr.bf16.mxu0 %v8941_v24  ;;  %4323 = vmatprep.subr.bf16.mxu1 %v8944_v25  ;;  %v9016_v24 = vld [vmem:[%s12623_s5 + $0xffc] ss:$20 sps:$4 sm:$0xff]  }
 0x129   :  { %v9011_v25 = vld [vmem:[%s12623_s5 + $0xd70] ss:$20 sps:$4 sm:$0xff]  }
 0x12b   :  { %3996 = vmatpush1.bf16.msra.mxu0 %v8939_v27  ;;  %4324 = vmatpush1.bf16.msra.mxu1 %v8942_v29  ;;  %v9014_v27 = vld [vmem:[%s12623_s5 + $0xff8] ss:$20 sps:$4 sm:$0xff]   ;;  %v9019_v29 = vld [vmem:[%s12623_s5 + $0xd9c] ss:$20 sps:$4 sm:$0xff]  }
 0x12c   :  { %3997 = vmatprep.subr.bf16.mxu0 %v8947_v30  ;;  %4325 = vmatprep.subr.bf16.mxu1 %v8950_v31  ;;  %v9022_v30 = vld [vmem:[%s12623_s5 + $0x1024] ss:$20 sps:$4 sm:$0xff]  }
 0x12d   :  { %v9017_v31 = vld [vmem:[%s12623_s5 + $0xd98] ss:$20 sps:$4 sm:$0xff]  }
 0x12f   :  { %3998 = vmatpush1.bf16.msra.mxu0 %v8945_v32  ;;  %4326 = vmatpush1.bf16.msra.mxu1 %v8948_v33  ;;  %v9020_v32 = vld [vmem:[%s12623_s5 + $0x1020] ss:$20 sps:$4 sm:$0xff]   ;;  %v9025_v33 = vld [vmem:[%s12623_s5 + $0xdc4] ss:$20 sps:$4 sm:$0xff]  }
 0x130   :  { %3999 = vmatprep.subr.bf16.mxu0 %v8953_v35  ;;  %4327 = vmatprep.subr.bf16.mxu1 %v8956_v36  ;;  %v9028_v35 = vld [vmem:[%s12623_s5 + $0x104c] ss:$20 sps:$4 sm:$0xff]  }
 0x131   :  { %v9023_v36 = vld [vmem:[%s12623_s5 + $0xdc0] ss:$20 sps:$4 sm:$0xff]  }
 0x133   :  { %4000 = vmatpush1.bf16.msra.mxu0 %v8951_v37  ;;  %4328 = vmatpush1.bf16.msra.mxu1 %v8954_v38  ;;  %v9026_v37 = vld [vmem:[%s12623_s5 + $0x1048] ss:$20 sps:$4 sm:$0xff]   ;;  %v9031_v38 = vld [vmem:[%s12623_s5 + $0xdec] ss:$20 sps:$4 sm:$0xff]  }
 0x134   :  { %4001 = vmatprep.subr.bf16.mxu0 %v8959_v40  ;;  %4329 = vmatprep.subr.bf16.mxu1 %v8962_v41  ;;  %v9034_v40 = vld [vmem:[%s12623_s5 + $0x1074] ss:$20 sps:$4 sm:$0xff]  }
 0x135   :  { %v9029_v41 = vld [vmem:[%s12623_s5 + $0xde8] ss:$20 sps:$4 sm:$0xff]  }
 0x137   :  { %4002 = vmatpush1.bf16.msra.mxu0 %v8957_v42  ;;  %4330 = vmatpush1.bf16.msra.mxu1 %v8960_v44  ;;  %v9032_v42 = vld [vmem:[%s12623_s5 + $0x1070] ss:$20 sps:$4 sm:$0xff]   ;;  %v9037_v44 = vld [vmem:[%s12623_s5 + $0xe14] ss:$20 sps:$4 sm:$0xff]  }
 0x138   :  { %4003 = vmatprep.subr.bf16.mxu0 %v8965_v45  ;;  %4331 = vmatprep.subr.bf16.mxu1 %v8968_v46  ;;  %v9040_v45 = vld [vmem:[%s12623_s5 + $0x109c] ss:$20 sps:$4 sm:$0xff]  }
 0x139   :  { %v9035_v46 = vld [vmem:[%s12623_s5 + $0xe10] ss:$20 sps:$4 sm:$0xff]  }
 0x13b   :  { %4004 = vmatpush1.bf16.msra.mxu0 %v8963_v47  ;;  %4332 = vmatpush1.bf16.msra.mxu1 %v8966_v49  ;;  %v9038_v47 = vld [vmem:[%s12623_s5 + $0x1098] ss:$20 sps:$4 sm:$0xff]   ;;  %v9043_v49 = vld [vmem:[%s12623_s5 + $0xe3c] ss:$20 sps:$4 sm:$0xff]  }
 0x13c   :  { %4005 = vmatprep.subr.bf16.mxu0 %v8971_v51  ;;  %4333 = vmatprep.subr.bf16.mxu1 %v8974_v52  ;;  %v9046_v51 = vld [vmem:[%s12623_s5 + $0x10c4] ss:$20 sps:$4 sm:$0xff]  }
 0x13d   :  { %v9041_v52 = vld [vmem:[%s12623_s5 + $0xe38] ss:$20 sps:$4 sm:$0xff]  }
 0x13f   :  { %4006 = vmatpush1.bf16.msra.mxu0 %v8969_v54  ;;  %4334 = vmatpush1.bf16.msra.mxu1 %v8972_v55  ;;  %v9044_v54 = vld [vmem:[%s12623_s5 + $0x10c0] ss:$20 sps:$4 sm:$0xff]  }
 0x140   :  { %4016 = vmatprep.subr.bf16.mxu0 %v8977_v56  ;;  %4344 = vmatprep.subr.bf16.mxu1 %v8980_v58  ;;  %v335_v55 = vld [vmem:[%s12624_s1 + $0x60] sm:$0xff] }
 0x141   :  { %v9049_v56 = vld [vmem:[%s12623_s5 + $0xe64] ss:$20 sps:$4 sm:$0xff]   ;;  %v9047_v58 = vld [vmem:[%s12623_s5 + $0xe60] ss:$20 sps:$4 sm:$0xff]   ;;  %v10949_v60 = vpack.c.bf16 %v335_v55, %v335_v55 }
 0x142   :  { %4008 = vmatmul.mubr.bf16.vlgmr.msra.gmra.mrb[0].mxu0 %v10581_v43  ;;  %4336 = vmatmul.mubr.bf16.vlgmr.msra.gmra.mrb[0].mxu1 %v10790_v61  ;;  %v9114_v55 = vld [vmem:[%s12623_s5 + $0x106c] ss:$20 sps:$4 sm:$0xff]  }
 0x143   :  { %4017 = vmatpush1.bf16.msra.mxu0 %v8975_v59  ;;  %4345 = vmatpush1.bf16.msra.mxu1 %v8978_v62  ;;  %v9051_v59 = vld [vmem:[%s12623_s5 + $0x290] ss:$20 sps:$4 sm:$0xff]   ;;  %v9054_v62 = vld [vmem:[%s12623_s5 + $0xe8c] ss:$20 sps:$4 sm:$0xff]  }
 0x144   :  { %4018 = vmatprep.subr.bf16.mxu0 %v8983_v63  ;;  %4346 = vmatprep.subr.bf16.mxu1 %v8986_v0  ;;  %v9055_v63 = vld [vmem:[%s12623_s5 + $0x3f8] ss:$20 sps:$4 sm:$0xff]   ;;  %v9052_v0 = vld [vmem:[%s12623_s5 + $0xe88] ss:$20 sps:$4 sm:$0xff]  }
 0x145   :  { %7860 = vmatprep.mubr.msk.bf16.mxu1 %vm3807_vm0, %v10804_v2  ;;  %4048 = vmatprep.mubr.bf16.mxu0 %v10598_v50 }
 0x147   :  { %4019 = vmatpush1.bf16.msra.mxu0 %v8981_v1  ;;  %4347 = vmatpush1.bf16.msra.mxu1 %v8984_v3  ;;  %v9056_v1 = vld [vmem:[%s12623_s5 + $0x2b8] ss:$20 sps:$4 sm:$0xff]   ;;  %v9059_v3 = vld [vmem:[%s12623_s5 + $0xeb4] ss:$20 sps:$4 sm:$0xff]  }
 0x148   :  { %4020 = vmatprep.subr.bf16.mxu0 %v8989_v4  ;;  %4348 = vmatprep.subr.bf16.mxu1 %v8992_v5  ;;  %v9060_v4 = vld [vmem:[%s12623_s5 + $0x420] ss:$20 sps:$4 sm:$0xff]   ;;  %v9057_v5 = vld [vmem:[%s12623_s5 + $0xeb0] ss:$20 sps:$4 sm:$0xff]  }
 0x14b   :  { %4021 = vmatpush1.bf16.msra.mxu0 %v8987_v6  ;;  %4349 = vmatpush1.bf16.msra.mxu1 %v8990_v7  ;;  %v9061_v6 = vld [vmem:[%s12623_s5 + $0x2e0] ss:$20 sps:$4 sm:$0xff]   ;;  %v9064_v7 = vld [vmem:[%s12623_s5 + $0xedc] ss:$20 sps:$4 sm:$0xff]  }
 0x14c   :  { %4022 = vmatprep.subr.bf16.mxu0 %v8995_v8  ;;  %4350 = vmatprep.subr.bf16.mxu1 %v8998_v9  ;;  %v9065_v8 = vld [vmem:[%s12623_s5 + $0x448] ss:$20 sps:$4 sm:$0xff]  }
 0x14d   :  { %v9066_v9 = vld [vmem:[%s12623_s5 + $0x308] ss:$20 sps:$4 sm:$0xff]  }
 0x14f   :  { %4023 = vmatpush1.bf16.msra.mxu0 %v8993_v12  ;;  %4351 = vmatpush1.bf16.msra.mxu1 %v8996_v13  ;;  %v9069_v12 = vld [vmem:[%s12623_s5 + $0xf04] ss:$20 sps:$4 sm:$0xff]  }
 0x150   :  { %4024 = vmatprep.subr.bf16.mxu0 %v9001_v14  ;;  %4352 = vmatprep.subr.bf16.mxu1 %v9004_v15  ;;  %v9070_v13 = vld [vmem:[%s12623_s5 + $0x470] ss:$20 sps:$4 sm:$0xff]   ;;  %v9067_v14 = vld [vmem:[%s12623_s5 + $0xf00] ss:$20 sps:$4 sm:$0xff]  }
 0x151   :  { %v9071_v15 = vld [vmem:[%s12623_s5 + $0x330] ss:$20 sps:$4 sm:$0xff]  }
 0x153   :  { %4025 = vmatpush1.bf16.msra.mxu0 %v8999_v16  ;;  %4353 = vmatpush1.bf16.msra.mxu1 %v9002_v18  ;;  %v9074_v16 = vld [vmem:[%s12623_s5 + $0xf2c] ss:$20 sps:$4 sm:$0xff]  }
 0x154   :  { %4026 = vmatprep.subr.bf16.mxu0 %v9007_v19  ;;  %4354 = vmatprep.subr.bf16.mxu1 %v9010_v20  ;;  %v9075_v18 = vld [vmem:[%s12623_s5 + $0x498] ss:$20 sps:$4 sm:$0xff]   ;;  %v9072_v19 = vld [vmem:[%s12623_s5 + $0xf28] ss:$20 sps:$4 sm:$0xff]  }
 0x155   :  { %v9076_v20 = vld [vmem:[%s12623_s5 + $0x358] ss:$20 sps:$4 sm:$0xff]  }
 0x157   :  { %4027 = vmatpush1.bf16.msra.mxu0 %v9005_v21  ;;  %4355 = vmatpush1.bf16.msra.mxu1 %v9008_v22  ;;  %v9079_v21 = vld [vmem:[%s12623_s5 + $0xf54] ss:$20 sps:$4 sm:$0xff]  }
 0x158   :  { %4028 = vmatprep.subr.bf16.mxu0 %v9013_v23  ;;  %4356 = vmatprep.subr.bf16.mxu1 %v9016_v24  ;;  %v9080_v22 = vld [vmem:[%s12623_s5 + $0x4c0] ss:$20 sps:$4 sm:$0xff]   ;;  %v9077_v23 = vld [vmem:[%s12623_s5 + $0xf50] ss:$20 sps:$4 sm:$0xff]  }
 0x159   :  { %v9081_v24 = vld [vmem:[%s12623_s5 + $0x380] ss:$20 sps:$4 sm:$0xff]  }
 0x15b   :  { %4029 = vmatpush1.bf16.msra.mxu0 %v9011_v25  ;;  %4357 = vmatpush1.bf16.msra.mxu1 %v9014_v27  ;;  %v9084_v25 = vld [vmem:[%s12623_s5 + $0xf7c] ss:$20 sps:$4 sm:$0xff]  }
 0x15c   :  { %4030 = vmatprep.subr.bf16.mxu0 %v9019_v29  ;;  %4358 = vmatprep.subr.bf16.mxu1 %v9022_v30  ;;  %v9085_v27 = vld [vmem:[%s12623_s5 + $0x4e8] ss:$20 sps:$4 sm:$0xff]   ;;  %v9082_v29 = vld [vmem:[%s12623_s5 + $0xf78] ss:$20 sps:$4 sm:$0xff]  }
 0x15d   :  { %v9086_v30 = vld [vmem:[%s12623_s5 + $0x3a8] ss:$20 sps:$4 sm:$0xff]  }
 0x15f   :  { %4031 = vmatpush1.bf16.msra.mxu0 %v9017_v31  ;;  %4359 = vmatpush1.bf16.msra.mxu1 %v9020_v32  ;;  %v9089_v31 = vld [vmem:[%s12623_s5 + $0xfa4] ss:$20 sps:$4 sm:$0xff]  }
 0x160   :  { %4032 = vmatprep.subr.bf16.mxu0 %v9025_v33  ;;  %4360 = vmatprep.subr.bf16.mxu1 %v9028_v35  ;;  %v9090_v32 = vld [vmem:[%s12623_s5 + $0x8d0] ss:$20 sps:$4 sm:$0xff]   ;;  %v9087_v33 = vld [vmem:[%s12623_s5 + $0xfa0] ss:$20 sps:$4 sm:$0xff]  }
 0x161   :  { %v9091_v35 = vld [vmem:[%s12623_s5 + $0x790] ss:$20 sps:$4 sm:$0xff]  }
 0x163   :  { %4033 = vmatpush1.bf16.msra.mxu0 %v9023_v36  ;;  %4361 = vmatpush1.bf16.msra.mxu1 %v9026_v37  ;;  %v9094_v36 = vld [vmem:[%s12623_s5 + $0xfcc] ss:$20 sps:$4 sm:$0xff]  }
 0x164   :  { %4034 = vmatprep.subr.bf16.mxu0 %v9031_v38  ;;  %4362 = vmatprep.subr.bf16.mxu1 %v9034_v40  ;;  %v9095_v37 = vld [vmem:[%s12623_s5 + $0x8f8] ss:$20 sps:$4 sm:$0xff]   ;;  %v9092_v38 = vld [vmem:[%s12623_s5 + $0xfc8] ss:$20 sps:$4 sm:$0xff]  }
 0x165   :  { %v9096_v40 = vld [vmem:[%s12623_s5 + $0x7b8] ss:$20 sps:$4 sm:$0xff]  }
 0x167   :  { %4035 = vmatpush1.bf16.msra.mxu0 %v9029_v41  ;;  %4363 = vmatpush1.bf16.msra.mxu1 %v9032_v42  ;;  %v9099_v41 = vld [vmem:[%s12623_s5 + $0xff4] ss:$20 sps:$4 sm:$0xff]  }
 0x168   :  { %4036 = vmatprep.subr.bf16.mxu0 %v9037_v44  ;;  %4364 = vmatprep.subr.bf16.mxu1 %v9040_v45  ;;  %v9100_v42 = vld [vmem:[%s12623_s5 + $0x920] ss:$20 sps:$4 sm:$0xff]   ;;  %v9104_v45 = vld [vmem:[%s12623_s5 + $0x101c] ss:$20 sps:$4 sm:$0xff]  }
 0x169   :  { %v9101_v44 = vld [vmem:[%s12623_s5 + $0x7e0] ss:$20 sps:$4 sm:$0xff]  }
 0x16b   :  { %4037 = vmatpush1.bf16.msra.mxu0 %v9035_v46  ;;  %4365 = vmatpush1.bf16.msra.mxu1 %v9038_v47  ;;  %v9105_v46 = vld [vmem:[%s12623_s5 + $0x948] ss:$20 sps:$4 sm:$0xff]  }
 0x16c   :  { %4038 = vmatprep.subr.bf16.mxu0 %v9043_v49  ;;  %4366 = vmatprep.subr.bf16.mxu1 %v9046_v51  ;;  %v9106_v47 = vld [vmem:[%s12623_s5 + $0x808] ss:$20 sps:$4 sm:$0xff]   ;;  %v9109_v49 = vld [vmem:[%s12623_s5 + $0x1044] ss:$20 sps:$4 sm:$0xff]  }
 0x16d   :  { %v9110_v51 = vld [vmem:[%s12623_s5 + $0x970] ss:$20 sps:$4 sm:$0xff]  }
 0x16f   :  { %4039 = vmatpush1.bf16.msra.mxu0 %v9041_v52  ;;  %4367 = vmatpush1.bf16.msra.mxu1 %v9044_v54  ;;  %v9107_v52 = vld [vmem:[%s12623_s5 + $0x1040] ss:$20 sps:$4 sm:$0xff]   ;;  %v9111_v54 = vld [vmem:[%s12623_s5 + $0x830] ss:$20 sps:$4 sm:$0xff]  }
 0x170   :  { %4040 = vmatprep.subr.bf16.mxu0 %v9049_v56  ;;  %8197 = vmatprep.subr.bf16.mxu1 %v9050_v57  ;;  %v9115_v56 = vld [vmem:[%s12623_s5 + $0x998] ss:$20 sps:$4 sm:$0xff]   ;;  %v9112_v57 = vld [vmem:[%s12623_s5 + $0x1068] ss:$20 sps:$4 sm:$0xff]  }
 0x172   :  { %4377 = vmatmul.mubr.bf16.vlgmr.msra.gmra.mrb[0].mxu1 %v10949_v60 }
 0x173   :  { %4041 = vmatpush1.bf16.msra.mxu0 %v9047_v58  ;;  %8198 = vmatpush3.bf16.msra.mxu1 %v9051_v59  ;;  %v9116_v58 = vld [vmem:[%s12623_s5 + $0x858] ss:$20 sps:$4 sm:$0xff]   ;;  %v9119_v59 = vld [vmem:[%s12623_s5 + $0x1094] ss:$20 sps:$4 sm:$0xff]  }
 0x174   :  { %4042 = vmatprep.subr.bf16.mxu0 %v9054_v62  ;;  %8199 = vmatprep.subr.bf16.mxu1 %v9055_v63  ;;  %v9120_v62 = vld [vmem:[%s12623_s5 + $0x9c0] ss:$20 sps:$4 sm:$0xff]   ;;  %v9117_v63 = vld [vmem:[%s12623_s5 + $0x1090] ss:$20 sps:$4 sm:$0xff]  }
 0x175   :  { %4457 = vmatprep.mubr.bf16.mxu1 %v9900_v53  ;;  %v9062_v53 = vld [vmem:[%s12623_s5 + $0xed8] ss:$20 sps:$4 sm:$0xff]  }
 0x177   :  { %4043 = vmatpush1.bf16.msra.mxu0 %v9052_v0  ;;  %8200 = vmatpush3.bf16.msra.mxu1 %v9056_v1  ;;  %v9121_v0 = vld [vmem:[%s12623_s5 + $0x880] ss:$20 sps:$4 sm:$0xff]   ;;  %v9124_v1 = vld [vmem:[%s12623_s5 + $0x10bc] ss:$20 sps:$4 sm:$0xff]  }
 0x178   :  { %4044 = vmatprep.subr.bf16.mxu0 %v9059_v3  ;;  %8201 = vmatprep.subr.bf16.mxu1 %v9060_v4  ;;  %v9125_v3 = vld [vmem:[%s12623_s5 + $0x9e8] ss:$20 sps:$4 sm:$0xff]   ;;  %v9122_v4 = vld [vmem:[%s12623_s5 + $0x10b8] ss:$20 sps:$4 sm:$0xff]  }
 0x17b   :  { %4045 = vmatpush1.bf16.msra.mxu0 %v9057_v5  ;;  %8202 = vmatpush3.bf16.msra.mxu1 %v9061_v6  ;;  %v9126_v5 = vld [vmem:[%s12623_s5 + $0x8a8] ss:$20 sps:$4 sm:$0xff]   ;;  %v9129_v6 = vld [vmem:[%s12623_s5 + $0xc] ss:$20 sps:$4 sm:$0xff]  }
 0x17c   :  { %4046 = vmatprep.subr.bf16.mxu0 %v9064_v7  ;;  %8203 = vmatprep.subr.bf16.mxu1 %v9065_v8  ;;  %v9130_v7 = vld [vmem:[%s12623_s5 + $0xdd0] ss:$20 sps:$4 sm:$0xff]   ;;  %v9127_v8 = vld [vmem:[%s12623_s5 + $0x8] ss:$20 sps:$4 sm:$0xff]  }
 0x17f   :  { %4047 = vmatpush1.bf16.msra.mxu0 %v9062_v53  ;;  %8204 = vmatpush3.bf16.msra.mxu1 %v9066_v9  ;;  %v9131_v53 = vld [vmem:[%s12623_s5 + $0xc90] ss:$20 sps:$4 sm:$0xff]   ;;  %v9134_v9 = vld [vmem:[%s12623_s5 + $0x34] ss:$20 sps:$4 sm:$0xff]  }
 0x180   :  { %4057 = vmatprep.subr.bf16.mxu0 %v9069_v12  ;;  %8205 = vmatprep.subr.bf16.mxu1 %v9070_v13  ;;  %v9135_v12 = vld [vmem:[%s12623_s5 + $0xdf8] ss:$20 sps:$4 sm:$0xff]   ;;  %v9132_v13 = vld [vmem:[%s12623_s5 + $0x30] ss:$20 sps:$4 sm:$0xff]  }
 0x182   :  { %4049 = vmatmul.mubr.bf16.vlgmr.msra.gmra.mrb[0].mxu0 %v10790_v61 }
 0x183   :  { %4058 = vmatpush1.bf16.msra.mxu0 %v9067_v14  ;;  %8206 = vmatpush3.bf16.msra.mxu1 %v9071_v15  ;;  %v9136_v14 = vld [vmem:[%s12623_s5 + $0xcb8] ss:$20 sps:$4 sm:$0xff]   ;;  %v9139_v15 = vld [vmem:[%s12623_s5 + $0x5c] ss:$20 sps:$4 sm:$0xff]  }
 0x184   :  { %4059 = vmatprep.subr.bf16.mxu0 %v9074_v16  ;;  %8207 = vmatprep.subr.bf16.mxu1 %v9075_v18  ;;  %v9140_v16 = vld [vmem:[%s12623_s5 + $0xe20] ss:$20 sps:$4 sm:$0xff]  }
 0x185   :  { %7859 = vmatprep.mubr.msk.bf16.mxu0 %vm3807_vm0, %v10804_v2  ;;  %v9141_v18 = vld [vmem:[%s12623_s5 + $0xce0] ss:$20 sps:$4 sm:$0xff]  }
 0x187   :  { %4060 = vmatpush1.bf16.msra.mxu0 %v9072_v19  ;;  %8208 = vmatpush3.bf16.msra.mxu1 %v9076_v20  ;;  %v9144_v19 = vld [vmem:[%s12623_s5 + $0x84] ss:$20 sps:$4 sm:$0xff]   ;;  %v9145_v20 = vld [vmem:[%s12623_s5 + $0xe48] ss:$20 sps:$4 sm:$0xff]  }
 0x188   :  { %4061 = vmatprep.subr.bf16.mxu0 %v9079_v21  ;;  %8209 = vmatprep.subr.bf16.mxu1 %v9080_v22  ;;  %v9146_v21 = vld [vmem:[%s12623_s5 + $0xd08] ss:$20 sps:$4 sm:$0xff]   ;;  %v9149_v22 = vld [vmem:[%s12623_s5 + $0xac] ss:$20 sps:$4 sm:$0xff]  }
 0x18b   :  { %4062 = vmatpush1.bf16.msra.mxu0 %v9077_v23  ;;  %8210 = vmatpush3.bf16.msra.mxu1 %v9081_v24  ;;  %v9150_v23 = vld [vmem:[%s12623_s5 + $0xe70] ss:$20 sps:$4 sm:$0xff]   ;;  %v9147_v24 = vld [vmem:[%s12623_s5 + $0xa8] ss:$20 sps:$4 sm:$0xff]  }
 0x18c   :  { %4063 = vmatprep.subr.bf16.mxu0 %v9084_v25  ;;  %8211 = vmatprep.subr.bf16.mxu1 %v9085_v27  ;;  %v9151_v25 = vld [vmem:[%s12623_s5 + $0xd30] ss:$20 sps:$4 sm:$0xff]   ;;  %v9154_v27 = vld [vmem:[%s12623_s5 + $0xd4] ss:$20 sps:$4 sm:$0xff]  }
 0x18f   :  { %4064 = vmatpush1.bf16.msra.mxu0 %v9082_v29  ;;  %8212 = vmatpush3.bf16.msra.mxu1 %v9086_v30  ;;  %v9155_v29 = vld [vmem:[%s12623_s5 + $0xe98] ss:$20 sps:$4 sm:$0xff]   ;;  %v9152_v30 = vld [vmem:[%s12623_s5 + $0xd0] ss:$20 sps:$4 sm:$0xff]  }
 0x190   :  { %4065 = vmatprep.subr.bf16.mxu0 %v9089_v31  ;;  %8241 = vmatprep.subr.bf16.mxu1 %v9090_v32  ;;  %v9156_v31 = vld [vmem:[%s12623_s5 + $0xd58] ss:$20 sps:$4 sm:$0xff]   ;;  %v9159_v32 = vld [vmem:[%s12623_s5 + $0xfc] ss:$20 sps:$4 sm:$0xff]  }
 0x192   :  { %4458 = vmatmul.mubr.bf16.vlgmr.msra.gmra.mrb[4].mxu1 %v9966_v11  ;;  %v9097_v11 = vld [vmem:[%s12623_s5 + $0xff0] ss:$20 sps:$4 sm:$0xff]  }
 0x193   :  { %4066 = vmatpush1.bf16.msra.mxu0 %v9087_v33  ;;  %8242 = vmatpush3.bf16.msra.mxu1 %v9091_v35  ;;  %v9160_v33 = vld [vmem:[%s12623_s5 + $0xec0] ss:$20 sps:$4 sm:$0xff]   ;;  %v9157_v35 = vld [vmem:[%s12623_s5 + $0xf8] ss:$20 sps:$4 sm:$0xff]  }
 0x194   :  { %4067 = vmatprep.subr.bf16.mxu0 %v9094_v36  ;;  %8243 = vmatprep.subr.bf16.mxu1 %v9095_v37  ;;  %v9161_v36 = vld [vmem:[%s12623_s5 + $0xd80] ss:$20 sps:$4 sm:$0xff]   ;;  %v9164_v37 = vld [vmem:[%s12623_s5 + $0x124] ss:$20 sps:$4 sm:$0xff]  }
 0x195   :  { %4537 = vmatprep.mubr.bf16.mxu1 %v10194_v26  ;;  %v9102_v26 = vld [vmem:[%s12623_s5 + $0x1018] ss:$20 sps:$4 sm:$0xff]  }
 0x197   :  { %4068 = vmatpush1.bf16.msra.mxu0 %v9092_v38  ;;  %8244 = vmatpush3.bf16.msra.mxu1 %v9096_v40  ;;  %v9165_v38 = vld [vmem:[%s12623_s5 + $0xee8] ss:$20 sps:$4 sm:$0xff]   ;;  %v9162_v40 = vld [vmem:[%s12623_s5 + $0x120] ss:$20 sps:$4 sm:$0xff]  }
 0x198   :  { %4069 = vmatprep.subr.bf16.mxu0 %v9099_v41  ;;  %8245 = vmatprep.subr.bf16.mxu1 %v9100_v42  ;;  %v9166_v41 = vld [vmem:[%s12623_s5 + $0xda8] ss:$20 sps:$4 sm:$0xff]   ;;  %v9169_v42 = vld [vmem:[%s12623_s5 + $0x14c] ss:$20 sps:$4 sm:$0xff]  }
 0x19b   :  { %4070 = vmatpush1.bf16.msra.mxu0 %v9097_v11  ;;  %8246 = vmatpush3.bf16.msra.mxu1 %v9101_v44  ;;  %v9172_v11 = vld [vmem:[%s12625_s4 + $0xc] ss:$20 sps:$4 sm:$0xff]  }
 0x19c   :  { %4071 = vmatprep.subr.bf16.mxu0 %v9104_v45  ;;  %8247 = vmatprep.subr.bf16.mxu1 %v9105_v46  ;;  %v48_v44 = vld [vmem:[%s12626_s0 + $0x8] sm:$0xff] }
 0x19d   :  { %v9167_v45 = vld [vmem:[%s12623_s5 + $0x148] ss:$20 sps:$4 sm:$0xff]  }
 0x19e   :  { %v9170_v46 = vld [vmem:[%s12625_s4 + $0x8] ss:$20 sps:$4 sm:$0xff]  }
 0x19f   :  { %4072 = vmatpush1.bf16.msra.mxu0 %v9102_v26  ;;  %8248 = vmatpush3.bf16.msra.mxu1 %v9106_v47  ;;  %v9175_v26 = vld [vmem:[%s12623_s5 + $0x174] ss:$20 sps:$4 sm:$0xff]  }
 0x1a0   :  { %4073 = vmatprep.subr.bf16.mxu0 %v9109_v49  ;;  %8249 = vmatprep.subr.bf16.mxu1 %v9110_v51  ;;  %v9178_v47 = vld [vmem:[%s12625_s4 + $0x34] ss:$20 sps:$4 sm:$0xff]   ;;  %v9173_v49 = vld [vmem:[%s12623_s5 + $0x170] ss:$20 sps:$4 sm:$0xff]  }
 0x1a1   :  { %v9176_v51 = vld [vmem:[%s12625_s4 + $0x30] ss:$20 sps:$4 sm:$0xff]  }
 0x1a3   :  { %4074 = vmatpush1.bf16.msra.mxu0 %v9107_v52  ;;  %8250 = vmatpush3.bf16.msra.mxu1 %v9111_v54  ;;  %v11265_v52 = vpack.c.bf16 %v48_v44, %v48_v44  ;;  %v9181_v54 = vld [vmem:[%s12623_s5 + $0x19c] ss:$20 sps:$4 sm:$0xff]  }
 0x1a4   :  { %4075 = vmatprep.subr.bf16.mxu0 %v9114_v55  ;;  %8251 = vmatprep.subr.bf16.mxu1 %v9115_v56  ;;  %v9184_v55 = vld [vmem:[%s12625_s4 + $0x5c] ss:$20 sps:$4 sm:$0xff]   ;;  %v9179_v56 = vld [vmem:[%s12623_s5 + $0x198] ss:$20 sps:$4 sm:$0xff]  }
 0x1a5   :  { %v9248_v44 = vld [vmem:[%s12625_s4 + $0x23c] ss:$20 sps:$4 sm:$0xff]  }
 0x1a7   :  { %4076 = vmatpush1.bf16.msra.mxu0 %v9112_v57  ;;  %8252 = vmatpush3.bf16.msra.mxu1 %v9116_v58  ;;  %v9187_v57 = vld [vmem:[%s12623_s5 + $0x1c4] ss:$20 sps:$4 sm:$0xff]  }
 0x1a8   :  { %4077 = vmatprep.subr.bf16.mxu0 %v9119_v59  ;;  %8253 = vmatprep.subr.bf16.mxu1 %v9120_v62  ;;  %v9190_v58 = vld [vmem:[%s12625_s4 + $0x84] ss:$20 sps:$4 sm:$0xff]   ;;  %v9185_v59 = vld [vmem:[%s12623_s5 + $0x1c0] ss:$20 sps:$4 sm:$0xff]  }
 0x1a9   :  { %v9188_v62 = vld [vmem:[%s12625_s4 + $0x80] ss:$20 sps:$4 sm:$0xff]  }
 0x1ab   :  { %4078 = vmatpush1.bf16.msra.mxu0 %v9117_v63  ;;  %8254 = vmatpush3.bf16.msra.mxu1 %v9121_v0  ;;  %v9193_v63 = vld [vmem:[%s12623_s5 + $0x1ec] ss:$20 sps:$4 sm:$0xff]  }
 0x1ac   :  { %4079 = vmatprep.subr.bf16.mxu0 %v9124_v1  ;;  %8255 = vmatprep.subr.bf16.mxu1 %v9125_v3  ;;  %v9196_v0 = vld [vmem:[%s12625_s4 + $0xac] ss:$20 sps:$4 sm:$0xff]   ;;  %v9191_v1 = vld [vmem:[%s12623_s5 + $0x1e8] ss:$20 sps:$4 sm:$0xff]  }
 0x1ad   :  { %v9194_v3 = vld [vmem:[%s12625_s4 + $0xa8] ss:$20 sps:$4 sm:$0xff]  }
 0x1af   :  { %4080 = vmatpush1.bf16.msra.mxu0 %v9122_v4  ;;  %8256 = vmatpush3.bf16.msra.mxu1 %v9126_v5  ;;  %v9199_v4 = vld [vmem:[%s12623_s5 + $0x214] ss:$20 sps:$4 sm:$0xff]  }
 0x1b0   :  { %4098 = vmatprep.subr.bf16.mxu0 %v9129_v6  ;;  %8285 = vmatprep.subr.bf16.mxu1 %v9130_v7  ;;  %v9202_v5 = vld [vmem:[%s12625_s4 + $0xd4] ss:$20 sps:$4 sm:$0xff]   ;;  %v9197_v6 = vld [vmem:[%s12623_s5 + $0x210] ss:$20 sps:$4 sm:$0xff]  }
 0x1b1   :  { %v9200_v7 = vld [vmem:[%s12625_s4 + $0xd0] ss:$20 sps:$4 sm:$0xff]  }
 0x1b2   :  { %4090 = vmatmul.mubr.bf16.vlgmr.msra.gmra.mrb[0].mxu0 %v10949_v60  ;;  %4538 = vmatmul.mubr.bf16.vlgmr.msra.gmra.mrb[8].mxu1 %v10372_v28  ;;  %v9137_v28 = vld [vmem:[%s12623_s5 + $0x58] ss:$20 sps:$4 sm:$0xff]  }
 0x1b3   :  { %4099 = vmatpush1.bf16.msra.mxu0 %v9127_v8  ;;  %8286 = vmatpush3.bf16.msra.mxu1 %v9131_v53  ;;  %v9205_v8 = vld [vmem:[%s12623_s5 + $0x23c] ss:$20 sps:$4 sm:$0xff]  }
 0x1b4   :  { %4100 = vmatprep.subr.bf16.mxu0 %v9134_v9  ;;  %8287 = vmatprep.subr.bf16.mxu1 %v9135_v12  ;;  %v9208_v53 = vld [vmem:[%s12625_s4 + $0xfc] ss:$20 sps:$4 sm:$0xff]   ;;  %v9203_v9 = vld [vmem:[%s12623_s5 + $0x238] ss:$20 sps:$4 sm:$0xff]  }
 0x1b5   :  { %4617 = vmatprep.mubr.bf16.mxu1 %v10598_v50  ;;  %4130 = vmatprep.mubr.bf16.mxu0 %v9886_v48  ;;  %v9142_v50 = vld [vmem:[%s12623_s5 + $0x80] ss:$20 sps:$4 sm:$0xff]   ;;  %v9206_v12 = vld [vmem:[%s12625_s4 + $0xf8] ss:$20 sps:$4 sm:$0xff]  }
 0x1b7   :  { %4101 = vmatpush1.bf16.msra.mxu0 %v9132_v13  ;;  %8288 = vmatpush3.bf16.msra.mxu1 %v9136_v14  ;;  %v9211_v13 = vld [vmem:[%s12623_s5 + $0x264] ss:$20 sps:$4 sm:$0xff]  }
 0x1b8   :  { %4102 = vmatprep.subr.bf16.mxu0 %v9139_v15  ;;  %8289 = vmatprep.subr.bf16.mxu1 %v9140_v16  ;;  %v9214_v14 = vld [vmem:[%s12625_s4 + $0x124] ss:$20 sps:$4 sm:$0xff]   ;;  %v9209_v15 = vld [vmem:[%s12623_s5 + $0x260] ss:$20 sps:$4 sm:$0xff]  }
 0x1b9   :  { %v9212_v16 = vld [vmem:[%s12625_s4 + $0x120] ss:$20 sps:$4 sm:$0xff]  }
 0x1bb   :  { %4103 = vmatpush1.bf16.msra.mxu0 %v9137_v28  ;;  %8290 = vmatpush3.bf16.msra.mxu1 %v9141_v18  ;;  %v9215_v28 = vld [vmem:[%s12623_s5 + $0x150] ss:$20 sps:$4 sm:$0xff]   ;;  %v9218_v18 = vld [vmem:[%s12625_s4 + $0x14c] ss:$20 sps:$4 sm:$0xff]  }
 0x1bc   :  { %4104 = vmatprep.subr.bf16.mxu0 %v9144_v19  ;;  %8291 = vmatprep.subr.bf16.mxu1 %v9145_v20  ;;  %v9216_v19 = vld [vmem:[%s12625_s4 + $0x148] ss:$20 sps:$4 sm:$0xff]   ;;  %v9219_v20 = vld [vmem:[%s12623_s5 + $0x10] ss:$20 sps:$4 sm:$0xff]  }
 0x1bf   :  { %4105 = vmatpush1.bf16.msra.mxu0 %v9142_v50  ;;  %8292 = vmatpush3.bf16.msra.mxu1 %v9146_v21  ;;  %v9220_v50 = vld [vmem:[%s12623_s5 + $0x178] ss:$20 sps:$4 sm:$0xff]   ;;  %v9223_v21 = vld [vmem:[%s12625_s4 + $0x174] ss:$20 sps:$4 sm:$0xff]  }
 0x1c0   :  { %4106 = vmatprep.subr.bf16.mxu0 %v9149_v22  ;;  %8293 = vmatprep.subr.bf16.mxu1 %v9150_v23  ;;  %v9221_v22 = vld [vmem:[%s12625_s4 + $0x170] ss:$20 sps:$4 sm:$0xff]   ;;  %v9224_v23 = vld [vmem:[%s12623_s5 + $0x38] ss:$20 sps:$4 sm:$0xff]  }
 0x1c3   :  { %4107 = vmatpush1.bf16.msra.mxu0 %v9147_v24  ;;  %8294 = vmatpush3.bf16.msra.mxu1 %v9151_v25  ;;  %v9225_v24 = vld [vmem:[%s12623_s5 + $0x1a0] ss:$20 sps:$4 sm:$0xff]   ;;  %v9228_v25 = vld [vmem:[%s12625_s4 + $0x19c] ss:$20 sps:$4 sm:$0xff]  }
 0x1c4   :  { %4108 = vmatprep.subr.bf16.mxu0 %v9154_v27  ;;  %8295 = vmatprep.subr.bf16.mxu1 %v9155_v29  ;;  %v9226_v27 = vld [vmem:[%s12625_s4 + $0x198] ss:$20 sps:$4 sm:$0xff]   ;;  %v9229_v29 = vld [vmem:[%s12623_s5 + $0x60] ss:$20 sps:$4 sm:$0xff]  }
 0x1c7   :  { %4109 = vmatpush1.bf16.msra.mxu0 %v9152_v30  ;;  %8296 = vmatpush3.bf16.msra.mxu1 %v9156_v31  ;;  %v9230_v30 = vld [vmem:[%s12623_s5 + $0x1c8] ss:$20 sps:$4 sm:$0xff]   ;;  %v9233_v31 = vld [vmem:[%s12625_s4 + $0x1c4] ss:$20 sps:$4 sm:$0xff]  }
 0x1c8   :  { %4110 = vmatprep.subr.bf16.mxu0 %v9159_v32  ;;  %8297 = vmatprep.subr.bf16.mxu1 %v9160_v33  ;;  %v9231_v32 = vld [vmem:[%s12625_s4 + $0x1c0] ss:$20 sps:$4 sm:$0xff]   ;;  %v9235_v33 = vld [vmem:[%s12623_s5 + $0x1f0] ss:$20 sps:$4 sm:$0xff]  }
 0x1cb   :  { %4111 = vmatpush1.bf16.msra.mxu0 %v9157_v35  ;;  %8298 = vmatpush3.bf16.msra.mxu1 %v9161_v36  ;;  %v9238_v35 = vld [vmem:[%s12625_s4 + $0x1ec] ss:$20 sps:$4 sm:$0xff]   ;;  %v9236_v36 = vld [vmem:[%s12625_s4 + $0x1e8] ss:$20 sps:$4 sm:$0xff]  }
 0x1cc   :  { %4112 = vmatprep.subr.bf16.mxu0 %v9164_v37  ;;  %8299 = vmatprep.subr.bf16.mxu1 %v9165_v38  ;;  %v9239_v37 = vld [vmem:[%s12623_s5 + $0xb0] ss:$20 sps:$4 sm:$0xff]   ;;  %v9240_v38 = vld [vmem:[%s12623_s5 + $0x218] ss:$20 sps:$4 sm:$0xff]  }
 0x1cf   :  { %4113 = vmatpush1.bf16.msra.mxu0 %v9162_v40  ;;  %8300 = vmatpush3.bf16.msra.mxu1 %v9166_v41  ;;  %v9243_v40 = vld [vmem:[%s12625_s4 + $0x214] ss:$20 sps:$4 sm:$0xff]   ;;  %v9241_v41 = vld [vmem:[%s12625_s4 + $0x210] ss:$20 sps:$4 sm:$0xff]  }
 0x1d0   :  { %4114 = vmatprep.subr.bf16.mxu0 %v9169_v42  ;;  %5935 = vmatprep.subr.bf16.mxu1 %v9172_v11  ;;  %v9244_v42 = vld [vmem:[%s12623_s5 + $0xd8] ss:$20 sps:$4 sm:$0xff]   ;;  %v9245_v11 = vld [vmem:[%s12623_s5 + $0x240] ss:$20 sps:$4 sm:$0xff]  }
 0x1d2   :  { %4618 = vmatmul.mubr.bf16.vlgmr.msra.gmra.mrb[12].mxu1 %v10790_v61  ;;  %v9182_v61 = vld [vmem:[%s12625_s4 + $0x58] ss:$20 sps:$4 sm:$0xff]  }
 0x1d3   :  { %4115 = vmatpush1.bf16.msra.mxu0 %v9167_v45  ;;  %5936 = vmatpush1.bf16.msra.mxu1 %v9170_v46  ;;  %v9246_v45 = vld [vmem:[%s12625_s4 + $0x238] ss:$20 sps:$4 sm:$0xff]   ;;  %v9249_v46 = vld [vmem:[%s12623_s5 + $0x100] ss:$20 sps:$4 sm:$0xff]  }
 0x1d4   :  { %4116 = vmatprep.subr.bf16.mxu0 %v9175_v26  ;;  %5937 = vmatprep.subr.bf16.mxu1 %v9178_v47  ;;  %v9250_v26 = vld [vmem:[%s12623_s5 + $0x268] ss:$20 sps:$4 sm:$0xff]   ;;  %v9253_v47 = vld [vmem:[%s12625_s4 + $0x264] ss:$20 sps:$4 sm:$0xff]  }
 0x1d5   :  { %5967 = vmatprep.mubr.bf16.mxu1 %v11265_v52 }
 0x1d7   :  { %4117 = vmatpush1.bf16.msra.mxu0 %v9173_v49  ;;  %5938 = vmatpush1.bf16.msra.mxu1 %v9176_v51  ;;  %v9251_v49 = vld [vmem:[%s12625_s4 + $0x260] ss:$20 sps:$4 sm:$0xff]   ;;  %v9254_v51 = vld [vmem:[%s12623_s5 + $0x128] ss:$20 sps:$4 sm:$0xff]  }
 0x1d8   :  { %4118 = vmatprep.subr.bf16.mxu0 %v9181_v54  ;;  %5939 = vmatprep.subr.bf16.mxu1 %v9184_v55  ;;  %v47_v54 = vld [vmem:[%s12626_s0] sm:$0xff] }
 0x1d9   :  { %v9255_v55 = vld [vmem:[%s12623_s5 + $0x650] ss:$20 sps:$4 sm:$0xff]  }
 0x1db   :  { %4119 = vmatpush1.bf16.msra.mxu0 %v9179_v56  ;;  %5940 = vmatpush1.bf16.msra.mxu1 %v9182_v61  ;;  %v9258_v56 = vld [vmem:[%s12625_s4 + $0x28c] ss:$20 sps:$4 sm:$0xff]   ;;  %v11448_v61 = vpack.c.bf16 %v47_v54, %v47_v54 }
 0x1dc   :  { %4120 = vmatprep.subr.bf16.mxu0 %v9187_v57  ;;  %5941 = vmatprep.subr.bf16.mxu1 %v9190_v58  ;;  %v50_v57 = vld [vmem:[%s12626_s0 + $0x18] sm:$0xff]  ;;  %v9325_v54 = vld [vmem:[%s12623_s5 + $0xc40] ss:$20 sps:$4 sm:$0xff]  }
 0x1dd   :  { %v9256_v58 = vld [vmem:[%s12625_s4 + $0x288] ss:$20 sps:$4 sm:$0xff]  }
 0x1df   :  { %4121 = vmatpush1.bf16.msra.mxu0 %v9185_v59  ;;  %5942 = vmatpush1.bf16.msra.mxu1 %v9188_v62  ;;  %v9259_v59 = vld [vmem:[%s12623_s5 + $0x510] ss:$20 sps:$4 sm:$0xff]   ;;  %v9260_v62 = vld [vmem:[%s12623_s5 + $0x678] ss:$20 sps:$4 sm:$0xff]  }
 0x1e0   :  { %4122 = vmatprep.subr.bf16.mxu0 %v9193_v63  ;;  %5943 = vmatprep.subr.bf16.mxu1 %v9196_v0  ;;  %v9263_v63 = vld [vmem:[%s12625_s4 + $0x2b4] ss:$20 sps:$4 sm:$0xff]   ;;  %v11465_v0 = vpack.c.bf16 %v50_v57, %v50_v57 }
 0x1e1   :  { %v9329_v57 = vld [vmem:[%s12623_s5 + $0xb00] ss:$20 sps:$4 sm:$0xff]  }
 0x1e3   :  { %4123 = vmatpush1.bf16.msra.mxu0 %v9191_v1  ;;  %5944 = vmatpush1.bf16.msra.mxu1 %v9194_v3  ;;  %v9261_v1 = vld [vmem:[%s12625_s4 + $0x2b0] ss:$20 sps:$4 sm:$0xff]   ;;  %v9264_v3 = vld [vmem:[%s12623_s5 + $0x538] ss:$20 sps:$4 sm:$0xff]  }
 0x1e4   :  { %4124 = vmatprep.subr.bf16.mxu0 %v9199_v4  ;;  %5945 = vmatprep.subr.bf16.mxu1 %v9202_v5  ;;  %v9265_v4 = vld [vmem:[%s12623_s5 + $0x6a0] ss:$20 sps:$4 sm:$0xff]   ;;  %v9266_v5 = vld [vmem:[%s12625_s4 + $0x2d8] ss:$20 sps:$4 sm:$0xff]  }
 0x1e7   :  { %4125 = vmatpush1.bf16.msra.mxu0 %v9197_v6  ;;  %5946 = vmatpush1.bf16.msra.mxu1 %v9200_v7  ;;  %v9269_v6 = vld [vmem:[%s12623_s5 + $0x560] ss:$20 sps:$4 sm:$0xff]   ;;  %v9270_v7 = vld [vmem:[%s12623_s5 + $0x6c8] ss:$20 sps:$4 sm:$0xff]  }
 0x1e8   :  { %4126 = vmatprep.subr.bf16.mxu0 %v9205_v8  ;;  %5947 = vmatprep.subr.bf16.mxu1 %v9208_v53  ;;  %v9271_v8 = vld [vmem:[%s12625_s4 + $0x300] ss:$20 sps:$4 sm:$0xff]   ;;  %v9274_v53 = vld [vmem:[%s12623_s5 + $0x588] ss:$20 sps:$4 sm:$0xff]  }
 0x1eb   :  { %4127 = vmatpush1.bf16.msra.mxu0 %v9203_v9  ;;  %5948 = vmatpush1.bf16.msra.mxu1 %v9206_v12  ;;  %v9275_v9 = vld [vmem:[%s12623_s5 + $0x6f0] ss:$20 sps:$4 sm:$0xff]   ;;  %v9278_v12 = vld [vmem:[%s12625_s4 + $0x32c] ss:$20 sps:$4 sm:$0xff]  }
 0x1ec   :  { %4128 = vmatprep.subr.bf16.mxu0 %v9211_v13  ;;  %5949 = vmatprep.subr.bf16.mxu1 %v9214_v14  ;;  %v9276_v13 = vld [vmem:[%s12625_s4 + $0x328] ss:$20 sps:$4 sm:$0xff]   ;;  %v9279_v14 = vld [vmem:[%s12623_s5 + $0x5b0] ss:$20 sps:$4 sm:$0xff]  }
 0x1ef   :  { %4129 = vmatpush1.bf16.msra.mxu0 %v9209_v15  ;;  %5950 = vmatpush1.bf16.msra.mxu1 %v9212_v16  ;;  %v9280_v15 = vld [vmem:[%s12623_s5 + $0x718] ss:$20 sps:$4 sm:$0xff]   ;;  %v9283_v16 = vld [vmem:[%s12625_s4 + $0x354] ss:$20 sps:$4 sm:$0xff]  }
 0x1f0   :  { %8175 = vmatprep.subr.bf16.mxu0 %v9215_v28  ;;  %5951 = vmatprep.subr.bf16.mxu1 %v9218_v18  ;;  %v9281_v28 = vld [vmem:[%s12625_s4 + $0x350] ss:$20 sps:$4 sm:$0xff]   ;;  %v9284_v18 = vld [vmem:[%s12623_s5 + $0x5d8] ss:$20 sps:$4 sm:$0xff]  }
 0x1f2   :  { %4131 = vmatmul.mubr.bf16.vlgmr.msra.gmra.mrb[4].mxu0 %v9964_v10 }
 0x1f3   :  { %8176 = vmatpush3.bf16.msra.mxu0 %v9219_v20  ;;  %5952 = vmatpush1.bf16.msra.mxu1 %v9216_v19  ;;  %v9285_v19 = vld [vmem:[%s12623_s5 + $0x740] ss:$20 sps:$4 sm:$0xff]   ;;  %v9288_v20 = vld [vmem:[%s12625_s4 + $0x37c] ss:$20 sps:$4 sm:$0xff]  }
 0x1f4   :  { %8177 = vmatprep.subr.bf16.mxu0 %v9220_v50  ;;  %5953 = vmatprep.subr.bf16.mxu1 %v9223_v21  ;;  %v9286_v50 = vld [vmem:[%s12625_s4 + $0x378] ss:$20 sps:$4 sm:$0xff]   ;;  %v9289_v21 = vld [vmem:[%s12623_s5 + $0x600] ss:$20 sps:$4 sm:$0xff]  }
 0x1f5   :  { %4417 = vmatprep.mubr.bf16.mxu0 %v9886_v48  ;;  %v9234_v48 = vld [vmem:[%s12623_s5 + $0x88] ss:$20 sps:$4 sm:$0xff]  }
 0x1f7   :  { %8178 = vmatpush3.bf16.msra.mxu0 %v9224_v23  ;;  %5954 = vmatpush1.bf16.msra.mxu1 %v9221_v22  ;;  %v9290_v22 = vld [vmem:[%s12623_s5 + $0x768] ss:$20 sps:$4 sm:$0xff]   ;;  %v9293_v23 = vld [vmem:[%s12625_s4 + $0x3a4] ss:$20 sps:$4 sm:$0xff]  }
 0x1f8   :  { %8179 = vmatprep.subr.bf16.mxu0 %v9225_v24  ;;  %5955 = vmatprep.subr.bf16.mxu1 %v9228_v25  ;;  %v9291_v24 = vld [vmem:[%s12625_s4 + $0x3a0] ss:$20 sps:$4 sm:$0xff]   ;;  %v9294_v25 = vld [vmem:[%s12623_s5 + $0x628] ss:$20 sps:$4 sm:$0xff]  }
 0x1fb   :  { %8180 = vmatpush3.bf16.msra.mxu0 %v9229_v29  ;;  %5956 = vmatpush1.bf16.msra.mxu1 %v9226_v27  ;;  %v9295_v27 = vld [vmem:[%s12623_s5 + $0xb50] ss:$20 sps:$4 sm:$0xff]   ;;  %v9298_v29 = vld [vmem:[%s12625_s4 + $0x3cc] ss:$20 sps:$4 sm:$0xff]  }
 0x1fc   :  { %8181 = vmatprep.subr.bf16.mxu0 %v9230_v30  ;;  %5957 = vmatprep.subr.bf16.mxu1 %v9233_v31  ;;  %v9296_v30 = vld [vmem:[%s12625_s4 + $0x3c8] ss:$20 sps:$4 sm:$0xff]   ;;  %v9299_v31 = vld [vmem:[%s12623_s5 + $0xa10] ss:$20 sps:$4 sm:$0xff]  }
 0x1ff   :  { %8182 = vmatpush3.bf16.msra.mxu0 %v9234_v48  ;;  %5958 = vmatpush1.bf16.msra.mxu1 %v9231_v32  ;;  %v9300_v32 = vld [vmem:[%s12623_s5 + $0xb78] ss:$20 sps:$4 sm:$0xff]   ;;  %v9303_v48 = vld [vmem:[%s12625_s4 + $0x3f4] ss:$20 sps:$4 sm:$0xff]  }
 0x200   :  { %8183 = vmatprep.subr.bf16.mxu0 %v9235_v33  ;;  %5959 = vmatprep.subr.bf16.mxu1 %v9238_v35  ;;  %v9301_v33 = vld [vmem:[%s12625_s4 + $0x3f0] ss:$20 sps:$4 sm:$0xff]   ;;  %v9304_v35 = vld [vmem:[%s12623_s5 + $0xa38] ss:$20 sps:$4 sm:$0xff]  }
 0x203   :  { %8184 = vmatpush3.bf16.msra.mxu0 %v9239_v37  ;;  %5960 = vmatpush1.bf16.msra.mxu1 %v9236_v36  ;;  %v9305_v36 = vld [vmem:[%s12623_s5 + $0xba0] ss:$20 sps:$4 sm:$0xff]   ;;  %v9306_v37 = vld [vmem:[%s12625_s4 + $0x418] ss:$20 sps:$4 sm:$0xff]  }
 0x204   :  { %8185 = vmatprep.subr.bf16.mxu0 %v9240_v38  ;;  %5961 = vmatprep.subr.bf16.mxu1 %v9243_v40  ;;  %v9309_v38 = vld [vmem:[%s12623_s5 + $0xa60] ss:$20 sps:$4 sm:$0xff]   ;;  %v9310_v40 = vld [vmem:[%s12623_s5 + $0xbc8] ss:$20 sps:$4 sm:$0xff]  }
 0x207   :  { %8186 = vmatpush3.bf16.msra.mxu0 %v9244_v42  ;;  %5962 = vmatpush1.bf16.msra.mxu1 %v9241_v41  ;;  %v9311_v41 = vld [vmem:[%s12625_s4 + $0x440] ss:$20 sps:$4 sm:$0xff]   ;;  %v9314_v42 = vld [vmem:[%s12623_s5 + $0xa88] ss:$20 sps:$4 sm:$0xff]  }
 0x208   :  { %8187 = vmatprep.subr.bf16.mxu0 %v9245_v11  ;;  %5963 = vmatprep.subr.bf16.mxu1 %v9248_v44  ;;  %v9315_v11 = vld [vmem:[%s12623_s5 + $0xbf0] ss:$20 sps:$4 sm:$0xff]   ;;  %v9318_v44 = vld [vmem:[%s12625_s4 + $0x46c] ss:$20 sps:$4 sm:$0xff]  }
 0x20b   :  { %8188 = vmatpush3.bf16.msra.mxu0 %v9249_v46  ;;  %5964 = vmatpush1.bf16.msra.mxu1 %v9246_v45  ;;  %v9316_v45 = vld [vmem:[%s12625_s4 + $0x468] ss:$20 sps:$4 sm:$0xff]   ;;  %v9319_v46 = vld [vmem:[%s12623_s5 + $0xab0] ss:$20 sps:$4 sm:$0xff]  }
 0x20c   :  { %8189 = vmatprep.subr.bf16.mxu0 %v9250_v26  ;;  %5965 = vmatprep.subr.bf16.mxu1 %v9253_v47  ;;  %v9320_v26 = vld [vmem:[%s12623_s5 + $0xc18] ss:$20 sps:$4 sm:$0xff]   ;;  %v9323_v47 = vld [vmem:[%s12625_s4 + $0x494] ss:$20 sps:$4 sm:$0xff]  }
 0x20f   :  { %8190 = vmatpush3.bf16.msra.mxu0 %v9254_v51  ;;  %5966 = vmatpush1.bf16.msra.mxu1 %v9251_v49  ;;  %v9321_v49 = vld [vmem:[%s12625_s4 + $0x490] ss:$20 sps:$4 sm:$0xff]   ;;  %v9324_v51 = vld [vmem:[%s12623_s5 + $0xad8] ss:$20 sps:$4 sm:$0xff]  }
 0x210   :  { %8219 = vmatprep.subr.bf16.mxu0 %v9255_v55  ;;  %5976 = vmatprep.subr.bf16.mxu1 %v9258_v56  ;;  %v9328_v55 = vld [vmem:[%s12625_s4 + $0x4bc] ss:$20 sps:$4 sm:$0xff]   ;;  %v9326_v56 = vld [vmem:[%s12625_s4 + $0x4b8] ss:$20 sps:$4 sm:$0xff]  }
 0x212   :  { %4418 = vmatmul.mubr.bf16.vlgmr.msra.gmra.mrb[8].mxu0 %v9964_v10  ;;  %5968 = vmatmul.mubr.bf16.vlgmr.msra.gmra.mrb[0].mxu1 %v11448_v61  ;;  %v9268_v10 = vld [vmem:[%s12625_s4 + $0x2dc] ss:$20 sps:$4 sm:$0xff]  }
 0x213   :  { %8220 = vmatpush3.bf16.msra.mxu0 %v9259_v59  ;;  %5977 = vmatpush1.bf16.msra.mxu1 %v9256_v58  ;;  %v9330_v58 = vld [vmem:[%s12623_s5 + $0xc68] ss:$20 sps:$4 sm:$0xff]   ;;  %v9333_v59 = vld [vmem:[%s12625_s4 + $0x4e4] ss:$20 sps:$4 sm:$0xff]  }
 0x214   :  { %8221 = vmatprep.subr.bf16.mxu0 %v9260_v62  ;;  %5978 = vmatprep.subr.bf16.mxu1 %v9263_v63  ;;  %v9331_v62 = vld [vmem:[%s12625_s4 + $0x4e0] ss:$20 sps:$4 sm:$0xff]   ;;  %v9334_v63 = vld [vmem:[%s12623_s5 + $0xb28] ss:$20 sps:$4 sm:$0xff]  }
 0x215   :  { %4497 = vmatprep.mubr.bf16.mxu0 %v10052_v39  ;;  %6008 = vmatprep.mubr.bf16.mxu1 %v11465_v0  ;;  %v9273_v39 = vld [vmem:[%s12625_s4 + $0x304] ss:$20 sps:$4 sm:$0xff]  }
 0x217   :  { %8222 = vmatpush3.bf16.msra.mxu0 %v9264_v3  ;;  %5979 = vmatpush1.bf16.msra.mxu1 %v9261_v1  ;;  %v49_v1 = vld [vmem:[%s12626_s0 + $0x10] sm:$0xff]  ;;  %v9337_v3 = vld [vmem:[%s12625_s4 + $0x50c] ss:$20 sps:$4 sm:$0xff]  }
 0x218   :  { %8223 = vmatprep.subr.bf16.mxu0 %v9265_v4  ;;  %5980 = vmatprep.subr.bf16.mxu1 %v9268_v10  ;;  %v11653_v4 = vpack.c.bf16 %v49_v1, %v49_v1  ;;  %v52_v10 = vld [vmem:[%s12626_s0 + $0x28] sm:$0xff]  ;;  %v9400_v1 = vld [vmem:[%s12625_s4 + $0x7c] ss:$20 sps:$4 sm:$0xff]  }
 0x21b   :  { %8224 = vmatpush3.bf16.msra.mxu0 %v9269_v6  ;;  %5981 = vmatpush1.bf16.msra.mxu1 %v9266_v5  ;;  %v9335_v5 = vld [vmem:[%s12625_s4 + $0x508] ss:$20 sps:$4 sm:$0xff]   ;;  %v9338_v6 = vld [vmem:[%s12623_s5 + $0xf10] ss:$20 sps:$4 sm:$0xff]  }
 0x21c   :  { %8225 = vmatprep.subr.bf16.mxu0 %v9270_v7  ;;  %5982 = vmatprep.subr.bf16.mxu1 %v9273_v39  ;;  %v9667_v7 = vmov 0   ;;  %v9341_v39 = vld [vmem:[%s12625_s4 + $0x534] ss:$20 sps:$4 sm:$0xff]  }
 0x21f   :  { %8226 = vmatpush3.bf16.msra.mxu0 %v9274_v53  ;;  %5983 = vmatpush1.bf16.msra.mxu1 %v9271_v8  ;;  %v11668_v8 = vpack.c.bf16 %v52_v10, %v52_v10  ;;  %v9339_v53 = vld [vmem:[%s12625_s4 + $0x530] ss:$20 sps:$4 sm:$0xff]  }
 0x220   :  { %8227 = vmatprep.subr.bf16.mxu0 %v9275_v9  ;;  %5984 = vmatprep.subr.bf16.mxu1 %v9278_v12  ;;  %v9342_v9 = vld [vmem:[%s12623_s5 + $0xf38] ss:$20 sps:$4 sm:$0xff]   ;;  %v9345_v12 = vld [vmem:[%s12625_s4 + $0x55c] ss:$20 sps:$4 sm:$0xff]  }
 0x223   :  { %8228 = vmatpush3.bf16.msra.mxu0 %v9279_v14  ;;  %5985 = vmatpush1.bf16.msra.mxu1 %v9276_v13  ;;  %v9346_v13 = vld [vmem:[%s12623_s5 + $0xf60] ss:$20 sps:$4 sm:$0xff]   ;;  %v9349_v14 = vld [vmem:[%s12625_s4 + $0x584] ss:$20 sps:$4 sm:$0xff]  }
 0x224   :  { %8229 = vmatprep.subr.bf16.mxu0 %v9280_v15  ;;  %5986 = vmatprep.subr.bf16.mxu1 %v9283_v16  ;;  %v9350_v15 = vld [vmem:[%s12623_s5 + $0xf88] ss:$20 sps:$4 sm:$0xff]   ;;  %v9353_v16 = vld [vmem:[%s12625_s4 + $0x5ac] ss:$20 sps:$4 sm:$0xff]  }
 0x227   :  { %8230 = vmatpush3.bf16.msra.mxu0 %v9284_v18  ;;  %5987 = vmatpush1.bf16.msra.mxu1 %v9281_v28  ;;  %v9351_v28 = vld [vmem:[%s12625_s4 + $0x5a8] ss:$20 sps:$4 sm:$0xff]   ;;  %v9354_v18 = vld [vmem:[%s12623_s5 + $0xfb0] ss:$20 sps:$4 sm:$0xff]  }
 0x228   :  { %8231 = vmatprep.subr.bf16.mxu0 %v9285_v19  ;;  %5988 = vmatprep.subr.bf16.mxu1 %v9288_v20  ;;  %v9357_v19 = vld [vmem:[%s12625_s4 + $0x5d4] ss:$20 sps:$4 sm:$0xff]   ;;  %v9355_v20 = vld [vmem:[%s12625_s4 + $0x5d0] ss:$20 sps:$4 sm:$0xff]  }
 0x22b   :  { %8232 = vmatpush3.bf16.msra.mxu0 %v9289_v21  ;;  %5989 = vmatpush1.bf16.msra.mxu1 %v9286_v50  ;;  %v9358_v50 = vld [vmem:[%s12623_s5 + $0xfd8] ss:$20 sps:$4 sm:$0xff]   ;;  %v9361_v21 = vld [vmem:[%s12625_s4 + $0x5fc] ss:$20 sps:$4 sm:$0xff]  }
 0x22c   :  { %8233 = vmatprep.subr.bf16.mxu0 %v9290_v22  ;;  %5990 = vmatprep.subr.bf16.mxu1 %v9293_v23 }
 0x22f   :  { %8234 = vmatpush3.bf16.msra.mxu0 %v9294_v25  ;;  %5991 = vmatpush1.bf16.msra.mxu1 %v9291_v24  ;;  %v9359_v24 = vld [vmem:[%s12625_s4 + $0x5f8] ss:$20 sps:$4 sm:$0xff]   ;;  %v9362_v25 = vld [vmem:[%s12623_s5 + $0x1000] ss:$20 sps:$4 sm:$0xff]  }
 0x230   :  { %8263 = vmatprep.subr.bf16.mxu0 %v9295_v27  ;;  %5992 = vmatprep.subr.bf16.mxu1 %v9298_v29 }
 0x232   :  { %4498 = vmatmul.mubr.bf16.vlgmr.msra.gmra.mrb[12].mxu0 %v10166_v17  ;;  %v9308_v17 = vld [vmem:[%s12625_s4 + $0x41c] ss:$20 sps:$4 sm:$0xff]  }
 0x233   :  { %8264 = vmatpush3.bf16.msra.mxu0 %v9299_v31  ;;  %5993 = vmatpush1.bf16.msra.mxu1 %v9296_v30  ;;  %v9365_v30 = vld [vmem:[%s12625_s4 + $0x624] ss:$20 sps:$4 sm:$0xff]  }
 0x234   :  { %8265 = vmatprep.subr.bf16.mxu0 %v9300_v32  ;;  %5994 = vmatprep.subr.bf16.mxu1 %v9303_v48  ;;  %v9363_v32 = vld [vmem:[%s12625_s4 + $0x620] ss:$20 sps:$4 sm:$0xff]   ;;  %v9366_v48 = vld [vmem:[%s12623_s5 + $0x1028] ss:$20 sps:$4 sm:$0xff]  }
 0x235   :  { %4577 = vmatprep.mubr.bf16.mxu0 %v10389_v34  ;;  %v9313_v34 = vld [vmem:[%s12625_s4 + $0x444] ss:$20 sps:$4 sm:$0xff]  }
 0x237   :  { %8266 = vmatpush3.bf16.msra.mxu0 %v9304_v35  ;;  %5995 = vmatpush1.bf16.msra.mxu1 %v9301_v33  ;;  %v9369_v33 = vld [vmem:[%s12625_s4 + $0x64c] ss:$20 sps:$4 sm:$0xff]   ;;  %v9367_v35 = vld [vmem:[%s12625_s4 + $0x648] ss:$20 sps:$4 sm:$0xff]  }
 0x238   :  { %8267 = vmatprep.subr.bf16.mxu0 %v9305_v36  ;;  %5996 = vmatprep.subr.bf16.mxu1 %v9308_v17  ;;  %v9370_v36 = vld [vmem:[%s12623_s5 + $0x1050] ss:$20 sps:$4 sm:$0xff]   ;;  %v9373_v17 = vld [vmem:[%s12625_s4 + $0x674] ss:$20 sps:$4 sm:$0xff]  }
 0x23b   :  { %8268 = vmatpush3.bf16.msra.mxu0 %v9309_v38  ;;  %5997 = vmatpush1.bf16.msra.mxu1 %v9306_v37  ;;  %v9371_v37 = vld [vmem:[%s12625_s4 + $0x670] ss:$20 sps:$4 sm:$0xff]   ;;  %v9374_v38 = vld [vmem:[%s12623_s5 + $0x1078] ss:$20 sps:$4 sm:$0xff]  }
 0x23c   :  { %8269 = vmatprep.subr.bf16.mxu0 %v9310_v40  ;;  %5998 = vmatprep.subr.bf16.mxu1 %v9313_v34  ;;  %v9377_v40 = vld [vmem:[%s12625_s4 + $0x69c] ss:$20 sps:$4 sm:$0xff]   ;;  %v9375_v34 = vld [vmem:[%s12625_s4 + $0x698] ss:$20 sps:$4 sm:$0xff]  }
 0x23f   :  { %8270 = vmatpush3.bf16.msra.mxu0 %v9314_v42  ;;  %5999 = vmatpush1.bf16.msra.mxu1 %v9311_v41  ;;  %v9378_v41 = vld [vmem:[%s12623_s5 + $0x10a0] ss:$20 sps:$4 sm:$0xff]   ;;  %v9381_v42 = vld [vmem:[%s12625_s4 + $0x6c4] ss:$20 sps:$4 sm:$0xff]  }
 0x240   :  { %8271 = vmatprep.subr.bf16.mxu0 %v9315_v11  ;;  %6000 = vmatprep.subr.bf16.mxu1 %v9318_v44  ;;  %v9379_v11 = vld [vmem:[%s12625_s4 + $0x6c0] ss:$20 sps:$4 sm:$0xff]   ;;  %v9382_v44 = vld [vmem:[%s12623_s5 + $0x10c8] ss:$20 sps:$4 sm:$0xff]  }
 0x243   :  { %8272 = vmatpush3.bf16.msra.mxu0 %v9319_v46  ;;  %6001 = vmatpush1.bf16.msra.mxu1 %v9316_v45  ;;  %v51_v45 = vld [vmem:[%s12626_s0 + $0x20] sm:$0xff] }
 0x244   :  { %8273 = vmatprep.subr.bf16.mxu0 %v9320_v26  ;;  %6002 = vmatprep.subr.bf16.mxu1 %v9323_v47  ;;  %v9385_v46 = vld [vmem:[%s12625_s4 + $0x4] ss:$20 sps:$4 sm:$0xff]   ;;  %v11794_v47 = vpack.c.bf16 %v51_v45, %v51_v45 }
 0x245   :  { %v9386_v26 = vld [vmem:[%s12625_s4 + $0x150] ss:$20 sps:$4 sm:$0xff]   ;;  %v9438_v45 = vld [vmem:[%s12625_s4 + $0x1b8] ss:$20 sps:$4 sm:$0xff]  }
 0x247   :  { %8274 = vmatpush3.bf16.msra.mxu0 %v9324_v51  ;;  %6003 = vmatpush1.bf16.msra.mxu1 %v9321_v49  ;;  %v9383_v49 = vld [vmem:[%s12625_s4] ss:$20 sps:$4 sm:$0xff]   ;;  %v9387_v51 = vld [vmem:[%s12625_s4 + $0x10] ss:$20 sps:$4 sm:$0xff]  }
 0x248   :  { %8275 = vmatprep.subr.bf16.mxu0 %v9325_v54  ;;  %6004 = vmatprep.subr.bf16.mxu1 %v9328_v55  ;;  %v9390_v54 = vld [vmem:[%s12625_s4 + $0x2c] ss:$20 sps:$4 sm:$0xff]  }
 0x249   :  { %v9391_v55 = vld [vmem:[%s12625_s4 + $0x178] ss:$20 sps:$4 sm:$0xff]  }
 0x24b   :  { %8276 = vmatpush3.bf16.msra.mxu0 %v9329_v57  ;;  %6005 = vmatpush1.bf16.msra.mxu1 %v9326_v56  ;;  %v9388_v56 = vld [vmem:[%s12625_s4 + $0x28] ss:$20 sps:$4 sm:$0xff]   ;;  %v9392_v57 = vld [vmem:[%s12625_s4 + $0x38] ss:$20 sps:$4 sm:$0xff]  }
 0x24c   :  { %8277 = vmatprep.subr.bf16.mxu0 %v9330_v58  ;;  %6006 = vmatprep.subr.bf16.mxu1 %v9333_v59  ;;  %v9395_v58 = vld [vmem:[%s12625_s4 + $0x54] ss:$20 sps:$4 sm:$0xff]   ;;  %v9393_v59 = vld [vmem:[%s12625_s4 + $0x50] ss:$20 sps:$4 sm:$0xff]  }
 0x24f   :  { %8278 = vmatpush3.bf16.msra.mxu0 %v9334_v63  ;;  %6007 = vmatpush1.bf16.msra.mxu1 %v9331_v62  ;;  %v9397_v62 = vld [vmem:[%s12625_s4 + $0x60] ss:$20 sps:$4 sm:$0xff]  }
 0x250   :  { %4625 = vmatprep.subr.bf16.mxu0 %v9667_v7  ;;  %6017 = vmatprep.subr.bf16.mxu1 %v9337_v3 }
 0x252   :  { %4578 = vmatmul.mubr.bf16.vlgmr.msra.gmra.mrb[16].mxu0 %v10581_v43  ;;  %6009 = vmatmul.mubr.bf16.vlgmr.msra.gmra.mrb[0].mxu1 %v11653_v4  ;;  %v9343_v43 = vld [vmem:[%s12625_s4 + $0x558] ss:$20 sps:$4 sm:$0xff]  }
 0x253   :  { %4626 = vmatpush1.bf16.msra.mxu0 %v9338_v6  ;;  %6018 = vmatpush1.bf16.msra.mxu1 %v9335_v5 }
 0x254   :  { %4627 = vmatprep.subr.bf16.mxu0 %v9667_v7  ;;  %6019 = vmatprep.subr.bf16.mxu1 %v9341_v39  ;;  %v9398_v39 = vld [vmem:[%s12625_s4 + $0x78] ss:$20 sps:$4 sm:$0xff]  }
 0x255   :  { %8083 = vmatprep.mubr.msk.bf16.mxu1 %vm3807_vm0, %v11668_v8  ;;  %7861 = vmatprep.mubr.msk.bf16.mxu0 %vm3807_vm0, %v10804_v2  ;;  %v9347_v2 = vld [vmem:[%s12625_s4 + $0x580] ss:$20 sps:$4 sm:$0xff]  }
 0x257   :  { %4628 = vmatpush1.bf16.msra.mxu0 %v9342_v9  ;;  %6020 = vmatpush1.bf16.msra.mxu1 %v9339_v53  ;;  %v9402_v53 = vld [vmem:[%s12625_s4 + $0x88] ss:$20 sps:$4 sm:$0xff]   ;;  %v9405_v9 = vld [vmem:[%s12625_s4 + $0xa4] ss:$20 sps:$4 sm:$0xff]  }
 0x258   :  { %4629 = vmatprep.subr.bf16.mxu0 %v9667_v7  ;;  %6021 = vmatprep.subr.bf16.mxu1 %v9345_v12  ;;  %v9406_v12 = vld [vmem:[%s12625_s4 + $0x1f0] ss:$20 sps:$4 sm:$0xff]  }
 0x25b   :  { %4630 = vmatpush1.bf16.msra.mxu0 %v9346_v13  ;;  %6022 = vmatpush1.bf16.msra.mxu1 %v9343_v43  ;;  %v9403_v43 = vld [vmem:[%s12625_s4 + $0xa0] ss:$20 sps:$4 sm:$0xff]   ;;  %v9407_v13 = vld [vmem:[%s12625_s4 + $0xb0] ss:$20 sps:$4 sm:$0xff]  }
 0x25c   :  { %4631 = vmatprep.subr.bf16.mxu0 %v9667_v7  ;;  %6023 = vmatprep.subr.bf16.mxu1 %v9349_v14  ;;  %v9410_v14 = vld [vmem:[%s12625_s4 + $0xcc] ss:$20 sps:$4 sm:$0xff]  }
 0x25f   :  { %4632 = vmatpush1.bf16.msra.mxu0 %v9350_v15  ;;  %6024 = vmatpush1.bf16.msra.mxu1 %v9347_v2  ;;  %v9411_v2 = vld [vmem:[%s12625_s4 + $0x218] ss:$20 sps:$4 sm:$0xff]   ;;  %v9408_v15 = vld [vmem:[%s12625_s4 + $0xc8] ss:$20 sps:$4 sm:$0xff]  }
 0x260   :  { %4633 = vmatprep.subr.bf16.mxu0 %v9667_v7  ;;  %6025 = vmatprep.subr.bf16.mxu1 %v9353_v16  ;;  %v9412_v16 = vld [vmem:[%s12625_s4 + $0xd8] ss:$20 sps:$4 sm:$0xff]  }
 0x263   :  { %4634 = vmatpush1.bf16.msra.mxu0 %v9354_v18  ;;  %6026 = vmatpush1.bf16.msra.mxu1 %v9351_v28  ;;  %v9415_v28 = vld [vmem:[%s12625_s4 + $0xf4] ss:$20 sps:$4 sm:$0xff]  }
 0x264   :  { %4635 = vmatprep.subr.bf16.mxu0 %v9667_v7  ;;  %6027 = vmatprep.subr.bf16.mxu1 %v9357_v19  ;;  %v9416_v18 = vld [vmem:[%s12625_s4 + $0x240] ss:$20 sps:$4 sm:$0xff]   ;;  %v9413_v19 = vld [vmem:[%s12625_s4 + $0xf0] ss:$20 sps:$4 sm:$0xff]  }
 0x265   :  { %v8213_v22 = vpop.f32.mrb[4].mxu1 }
 0x266   :  { %v8214_v23 = vpop.f32.mrb[5].mxu1 }
 0x267   :  { %4636 = vmatpush1.bf16.msra.mxu0 %v9358_v50  ;;  %6028 = vmatpush1.bf16.msra.mxu1 %v9355_v20  ;;  %v11732_v27 = vadd.f32 %v8214_v23, %v8213_v22  ;;  %v8216_v29 = vpop.f32.mrb[6].mxu1  ;;  %v9417_v20 = vld [vmem:[%s12625_s4 + $0x100] ss:$20 sps:$4 sm:$0xff]   ;;  %v9420_v50 = vld [vmem:[%s12625_s4 + $0x11c] ss:$20 sps:$4 sm:$0xff]  }
 0x268   :  { %4637 = vmatprep.subr.bf16.mxu0 %v9667_v7  ;;  %6029 = vmatprep.subr.bf16.mxu1 %v9361_v21  ;;  %v8217_v31 = vpop.f32.mrb[7].mxu1  ;;  %v9421_v21 = vld [vmem:[%s12625_s4 + $0x268] ss:$20 sps:$4 sm:$0xff]   ;;  %v9418_v22 = vld [vmem:[%s12625_s4 + $0x118] ss:$20 sps:$4 sm:$0xff]  }
 0x269   :  { %v9422_v23 = vld [vmem:[%s12625_s4 + $0x128] ss:$20 sps:$4 sm:$0xff]   ;;  %v9423_v29 = vld [vmem:[%s12625_s4 + $0x140] ss:$20 sps:$4 sm:$0xff]  }
 0x26a   :  { %v9430_v31 = vld [vmem:[%s12625_s4 + $0x16c] ss:$20 sps:$4 sm:$0xff]  }
 0x26b   :  { %4638 = vmatpush1.bf16.msra.mxu0 %v9362_v25  ;;  %6030 = vmatpush1.bf16.msra.mxu1 %v9359_v24  ;;  %v9425_v24 = vld [vmem:[%s12625_s4 + $0x144] ss:$20 sps:$4 sm:$0xff]  }
 0x26c   :  { %4639 = vmatprep.subr.bf16.mxu0 %v9667_v7  ;;  %6031 = vmatprep.subr.bf16.mxu1 %v9365_v30  ;;  %v9426_v25 = vld [vmem:[%s12625_s4 + $0x3d0] ss:$20 sps:$4 sm:$0xff]  }
 0x26d   :  { %v9427_v30 = vld [vmem:[%s12625_s4 + $0x290] ss:$20 sps:$4 sm:$0xff]  }
 0x26f   :  { %4640 = vmatpush1.bf16.msra.mxu0 %v9366_v48  ;;  %6032 = vmatpush1.bf16.msra.mxu1 %v9363_v32  ;;  %v9431_v32 = vld [vmem:[%s12625_s4 + $0x3f8] ss:$20 sps:$4 sm:$0xff]   ;;  %v9428_v48 = vld [vmem:[%s12625_s4 + $0x168] ss:$20 sps:$4 sm:$0xff]  }
 0x270   :  { %4641 = vmatprep.subr.bf16.mxu0 %v9667_v7  ;;  %6033 = vmatprep.subr.bf16.mxu1 %v9369_v33  ;;  %v9432_v33 = vld [vmem:[%s12625_s4 + $0x2b8] ss:$20 sps:$4 sm:$0xff]  }
 0x273   :  { %4642 = vmatpush1.bf16.msra.mxu0 %v9370_v36  ;;  %6034 = vmatpush1.bf16.msra.mxu1 %v9367_v35  ;;  %v9435_v35 = vld [vmem:[%s12625_s4 + $0x194] ss:$20 sps:$4 sm:$0xff]  }
 0x274   :  { %4643 = vmatprep.subr.bf16.mxu0 %v9667_v7  ;;  %6035 = vmatprep.subr.bf16.mxu1 %v9373_v17  ;;  %v9436_v36 = vld [vmem:[%s12625_s4 + $0x420] ss:$20 sps:$4 sm:$0xff]   ;;  %v9433_v17 = vld [vmem:[%s12625_s4 + $0x190] ss:$20 sps:$4 sm:$0xff]  }
 0x277   :  { %4644 = vmatpush1.bf16.msra.mxu0 %v9374_v38  ;;  %6036 = vmatpush1.bf16.msra.mxu1 %v9371_v37  ;;  %v9437_v37 = vld [vmem:[%s12625_s4 + $0x2e0] ss:$20 sps:$4 sm:$0xff]  }
 0x278   :  { %4645 = vmatprep.subr.bf16.mxu0 %v9667_v7  ;;  %6037 = vmatprep.subr.bf16.mxu1 %v9377_v40  ;;  %v9440_v40 = vld [vmem:[%s12625_s4 + $0x1bc] ss:$20 sps:$4 sm:$0xff]  }
 0x27b   :  { %4646 = vmatpush1.bf16.msra.mxu0 %v9378_v41  ;;  %6038 = vmatpush1.bf16.msra.mxu1 %v9375_v34  ;;  %v9441_v34 = vld [vmem:[%s12625_s4 + $0x448] ss:$20 sps:$4 sm:$0xff]  }
 0x27c   :  { %4647 = vmatprep.subr.bf16.mxu0 %v9667_v7  ;;  %6039 = vmatprep.subr.bf16.mxu1 %v9381_v42 }
 0x27f   :  { %4648 = vmatpush1.bf16.msra.mxu0 %v9382_v44  ;;  %6040 = vmatpush1.bf16.msra.mxu1 %v9379_v11 }
 0x280   :  { %5812 = vmatprep.subr.bf16.mxu0 %v9385_v46  ;;  %8307 = vmatprep.subr.bf16.mxu1 %v9386_v26  ;;  %v9442_v46 = vld [vmem:[%s12625_s4 + $0x308] ss:$20 sps:$4 sm:$0xff]   ;;  %v9445_v26 = vld [vmem:[%s12625_s4 + $0x1e4] ss:$20 sps:$4 sm:$0xff]  }
 0x282   :  { %6050 = vmatmul.mubr.bf16.vlgmr.msra.gmra.mrb[0].mxu1 %v11794_v47  ;;  %4658 = vmatmul.mubr.bf16.vlgmr.msra.gmra.mrb[20].mxu0 %v10949_v60  ;;  %v9396_v60 = vld [vmem:[%s12625_s4 + $0x1a0] ss:$20 sps:$4 sm:$0xff]  }
 0x283   :  { %5813 = vmatpush1.bf16.msra.mxu0 %v9383_v49  ;;  %8308 = vmatpush3.bf16.msra.mxu1 %v9387_v51  ;;  %v9446_v49 = vld [vmem:[%s12625_s4 + $0x470] ss:$20 sps:$4 sm:$0xff]   ;;  %v9443_v51 = vld [vmem:[%s12625_s4 + $0x1e0] ss:$20 sps:$4 sm:$0xff]  }
 0x284   :  { %5814 = vmatprep.subr.bf16.mxu0 %v9390_v54  ;;  %8309 = vmatprep.subr.bf16.mxu1 %v9391_v55  ;;  %v9447_v54 = vld [vmem:[%s12625_s4 + $0x330] ss:$20 sps:$4 sm:$0xff]   ;;  %v9450_v55 = vld [vmem:[%s12625_s4 + $0x20c] ss:$20 sps:$4 sm:$0xff]  }
 0x285   :  { %6090 = vmatprep.mubr.bf16.mxu1 %v11265_v52  ;;  %5844 = vmatprep.mubr.bf16.mxu0 %v11265_v52  ;;  %v8257_v63 = vpop.f32.mrb[8].mxu1  ;;  %v9401_v52 = vld [vmem:[%s12625_s4 + $0x1c8] ss:$20 sps:$4 sm:$0xff]  }
 0x286   :  { %v8258_v3 = vpop.f32.mrb[9].mxu1 }
 0x287   :  { %5815 = vmatpush1.bf16.msra.mxu0 %v9388_v56  ;;  %8310 = vmatpush3.bf16.msra.mxu1 %v9392_v57  ;;  %v11836_v10 = vadd.f32 %v8258_v3, %v8257_v63  ;;  %v8260_v5 = vpop.f32.mrb[10].mxu1  ;;  %v9451_v56 = vld [vmem:[%s12625_s4 + $0x498] ss:$20 sps:$4 sm:$0xff]   ;;  %v9448_v57 = vld [vmem:[%s12625_s4 + $0x208] ss:$20 sps:$4 sm:$0xff]  }
 0x288   :  { %5816 = vmatprep.subr.bf16.mxu0 %v9395_v58  ;;  %8311 = vmatprep.subr.bf16.mxu1 %v9396_v60  ;;  %v8261_v6 = vpop.f32.mrb[11].mxu1  ;;  %v9452_v58 = vld [vmem:[%s12625_s4 + $0x358] ss:$20 sps:$4 sm:$0xff]   ;;  %v9455_v60 = vld [vmem:[%s12625_s4 + $0x234] ss:$20 sps:$4 sm:$0xff]  }
 0x289   :  { %v9457_v63 = vld [vmem:[%s12625_s4 + $0x380] ss:$20 sps:$4 sm:$0xff]   ;;  %v6182_v3 = vld [vmem:[%s12627_s6 + $0x18] sm:$0xff] }
 0x28a   :  { %v6187_v5 = vld [vmem:[%s12627_s6 + $0x40] sm:$0x7]  ;;  %v9458_v6 = vld [vmem:[%s12625_s4 + $0x258] ss:$20 sps:$4 sm:$0xff]  }
 0x28b   :  { %5817 = vmatpush1.bf16.msra.mxu0 %v9393_v59  ;;  %8312 = vmatpush3.bf16.msra.mxu1 %v9397_v62  ;;  %v9456_v59 = vld [vmem:[%s12625_s4 + $0x4c0] ss:$20 sps:$4 sm:$0xff]   ;;  %v9453_v62 = vld [vmem:[%s12625_s4 + $0x230] ss:$20 sps:$4 sm:$0xff]  }
 0x28c   :  { %5818 = vmatprep.subr.bf16.mxu0 %v9400_v1  ;;  %8313 = vmatprep.subr.bf16.mxu1 %v9401_v52  ;;  %v9460_v1 = vld [vmem:[%s12625_s4 + $0x25c] ss:$20 sps:$4 sm:$0xff]  }
 0x28d   :  { %v9461_v52 = vld [vmem:[%s12625_s4 + $0x4e8] ss:$20 sps:$4 sm:$0xff]  }
 0x28f   :  { %5819 = vmatpush1.bf16.msra.mxu0 %v9398_v39  ;;  %8314 = vmatpush3.bf16.msra.mxu1 %v9402_v53  ;;  %v9462_v39 = vld [vmem:[%s12625_s4 + $0x3a8] ss:$20 sps:$4 sm:$0xff]   ;;  %v9465_v53 = vld [vmem:[%s12625_s4 + $0x284] ss:$20 sps:$4 sm:$0xff]  }
 0x290   :  { %5820 = vmatprep.subr.bf16.mxu0 %v9405_v9  ;;  %8315 = vmatprep.subr.bf16.mxu1 %v9406_v12  ;;  %v8377_v9 = vpack.c.bf16 %v6187_v5, %v6182_v3  ;;  %v6181_v12 = vld [vmem:[%s12627_s6 + $0x10] sm:$0xff] }
 0x293   :  { %5821 = vmatpush1.bf16.msra.mxu0 %v9403_v43  ;;  %8316 = vmatpush3.bf16.msra.mxu1 %v9407_v13  ;;  %v6186_v43 = vld [vmem:[%s12627_s6 + $0x38] sm:$0x7]  ;;  %v9564_v13 = vld [vmem:[%s12631_s9 + $0x14] ss:$8 sps:$4 sm:$0xff]  }
 0x294   :  { %5822 = vmatprep.subr.bf16.mxu0 %v9410_v14  ;;  %8317 = vmatprep.subr.bf16.mxu1 %v9411_v2  ;;  %v9463_v14 = vld [vmem:[%s12625_s4 + $0x280] ss:$20 sps:$4 sm:$0xff]   ;;  %v8380_v2 = vpack.c.bf16 %v6186_v43, %v6181_v12  ;;  %v9498_v12 = vld [vmem:[%s12625_s4 + $0x43c] ss:$20 sps:$4 sm:$0xff]  }
 0x297   :  { %5823 = vmatpush1.bf16.msra.mxu0 %v9408_v15  ;;  %8318 = vmatpush3.bf16.msra.mxu1 %v9412_v16  ;;  %v9468_v15 = vld [vmem:[%s12625_s4 + $0x2ac] ss:$20 sps:$4 sm:$0xff]   ;;  %v9466_v16 = vld [vmem:[%s12625_s4 + $0x2a8] ss:$20 sps:$4 sm:$0xff]  }
 0x298   :  { %5824 = vmatprep.subr.bf16.mxu0 %v9415_v28  ;;  %8319 = vmatprep.subr.bf16.mxu1 %v9416_v18  ;;  %v9669_v28 = vmov 0.0   ;;  %v9471_v18 = vld [vmem:[%s12625_s4 + $0x2d4] ss:$20 sps:$4 sm:$0xff]  }
 0x29b   :  { %5825 = vmatpush1.bf16.msra.mxu0 %v9413_v19  ;;  %8320 = vmatpush3.bf16.msra.mxu1 %v9417_v20  ;;  %v6188_v19 = vld [vmem:[%s12627_s6 + $0x48] sm:$0x7] }
 0x29c   :  { %5826 = vmatprep.subr.bf16.mxu0 %v9420_v50  ;;  %8321 = vmatprep.subr.bf16.mxu1 %v9421_v21  ;;  %v9670_v50 = vmov 0.0|0.0  }
 0x29f   :  { %5827 = vmatpush1.bf16.msra.mxu0 %v9418_v22  ;;  %8322 = vmatpush3.bf16.msra.mxu1 %v9422_v23  ;;  %v6428_v22 = vld [vmem:[%s12628_s7 + $0x8] sm:$0xff]  ;;  %v6433_v23 = vld [vmem:[%s12628_s7 + $0x30] sm:$0xf] }
 0x2a0   :  { %5828 = vmatprep.subr.bf16.mxu0 %v9425_v24  ;;  %8329 = vmatprep.subr.bf16.mxu1 %v9426_v25  ;;  %v9469_v25 = vld [vmem:[%s12625_s4 + $0x2d0] ss:$20 sps:$4 sm:$0xff]  }
 0x2a2   :  { %6091 = vmatmul.mubr.bf16.vlgmr.msra.gmra.mrb[16].mxu1 %v11448_v61 }
 0x2a3   :  { %5829 = vmatpush1.bf16.msra.mxu0 %v9423_v29  ;;  %8330 = vmatpush3.bf16.msra.mxu1 %v9427_v30 }
 0x2a4   :  { %5830 = vmatprep.subr.bf16.mxu0 %v9430_v31  ;;  %8331 = vmatprep.subr.bf16.mxu1 %v9431_v32  ;;  %v9474_v31 = vld [vmem:[%s12625_s4 + $0x2fc] ss:$20 sps:$4 sm:$0xff]   ;;  %v6427_v32 = vld [vmem:[%s12628_s7] sm:$0xff] }
 0x2a5   :  { %6130 = vmatprep.mubr.bf16.mxu1 %v11465_v0  ;;  %v8301_v38 = vpop.f32.mrb[12].mxu1 }
 0x2a6   :  { %v8302_v41 = vpop.f32.mrb[13].mxu1 }
 0x2a7   :  { %5831 = vmatpush1.bf16.msra.mxu0 %v9428_v48  ;;  %8332 = vmatpush3.bf16.msra.mxu1 %v9432_v33  ;;  %v11936_v42 = vadd.f32 %v8302_v41, %v8301_v38  ;;  %v8304_v11 = vpop.f32.mrb[14].mxu1  ;;  %v6432_v48 = vld [vmem:[%s12628_s7 + $0x28] sm:$0xf]  ;;  %v8387_v33 = vpack.c.bf16 %v6433_v23, %v6428_v22  ;;  %v6434_v41 = vld [vmem:[%s12628_s7 + $0x38] sm:$0xf] }
 0x2a8   :  { %5832 = vmatprep.subr.bf16.mxu0 %v9435_v35  ;;  %8333 = vmatprep.subr.bf16.mxu1 %v9436_v36  ;;  %v8305_v44 = vpop.f32.mrb[15].mxu1  ;;  %v6430_v36 = vld [vmem:[%s12628_s7 + $0x18] sm:$0xff]  ;;  %v8390_v38 = vpack.c.bf16 %v6432_v48, %v6427_v32  ;;  %v9511_v23 = vld [vmem:[%s12625_s4 + $0x500] ss:$20 sps:$4 sm:$0xff]  }
 0x2a9   :  { %v9475_v44 = vld [vmem:[%s12625_s4 + $0x320] ss:$20 sps:$4 sm:$0xff]   ;;  %v9513_v22 = vld [vmem:[%s12625_s4 + $0x504] ss:$20 sps:$4 sm:$0xff]   ;;  %v9522_v35 = vld [vmem:[%s12625_s4 + $0x57c] ss:$20 sps:$4 sm:$0xff]  }
 0x2ab   :  { %5833 = vmatpush1.bf16.msra.mxu0 %v9433_v17  ;;  %8334 = vmatpush3.bf16.msra.mxu1 %v9437_v37  ;;  %v6435_v17 = vld [vmem:[%s12628_s7 + $0x40] sm:$0xf]  ;;  %v9472_v37 = vld [vmem:[%s12625_s4 + $0x2f8] ss:$20 sps:$4 sm:$0xff]  }
 0x2ac   :  { %5834 = vmatprep.subr.bf16.mxu0 %v9440_v40  ;;  %8335 = vmatprep.subr.bf16.mxu1 %v9441_v34  ;;  %v9477_v40 = vld [vmem:[%s12625_s4 + $0x324] ss:$20 sps:$4 sm:$0xff]   ;;  %v6429_v34 = vld [vmem:[%s12628_s7 + $0x10] sm:$0xff]  ;;  %v8393_v11 = vpack.c.bf16 %v6435_v17, %v6430_v36 }
 0x2af   :  { %5835 = vmatpush1.bf16.msra.mxu0 %v9438_v45  ;;  %8336 = vmatpush3.bf16.msra.mxu1 %v9442_v46  ;;  %v6426_v45 = vld [vmem:[%s12630_s3] sm:$0xff]  ;;  %v8396_v46 = vpack.c.bf16 %v6434_v41, %v6429_v34  ;;  %v9526_v34 = vld [vmem:[%s12625_s4 + $0x5c8] ss:$20 sps:$4 sm:$0xff]  }
 0x2b0   :  { %5836 = vmatprep.subr.bf16.mxu0 %v9445_v26  ;;  %8337 = vmatprep.subr.bf16.mxu1 %v9446_v49  ;;  %v9480_v26 = vld [vmem:[%s12625_s4 + $0x34c] ss:$20 sps:$4 sm:$0xff]   ;;  %v9478_v49 = vld [vmem:[%s12625_s4 + $0x348] ss:$20 sps:$4 sm:$0xff]  }
 0x2b1   :  { %v9531_v41 = vld [vmem:[%s12625_s4 + $0x5f4] ss:$20 sps:$4 sm:$0xff]  }
 0x2b3   :  { %5837 = vmatpush1.bf16.msra.mxu0 %v9443_v51  ;;  %8338 = vmatpush3.bf16.msra.mxu1 %v9447_v54  ;;  %v9483_v51 = vld [vmem:[%s12625_s4 + $0x374] ss:$20 sps:$4 sm:$0xff]   ;;  %v9481_v54 = vld [vmem:[%s12625_s4 + $0x370] ss:$20 sps:$4 sm:$0xff]  }
 0x2b4   :  { %5838 = vmatprep.subr.bf16.mxu0 %v9450_v55  ;;  %8339 = vmatprep.subr.bf16.mxu1 %v9451_v56  ;;  %v9486_v55 = vld [vmem:[%s12625_s4 + $0x39c] ss:$20 sps:$4 sm:$0xff]   ;;  %v9484_v56 = vld [vmem:[%s12625_s4 + $0x398] ss:$20 sps:$4 sm:$0xff]  }
 0x2b7   :  { %5839 = vmatpush1.bf16.msra.mxu0 %v9448_v57  ;;  %8340 = vmatpush3.bf16.msra.mxu1 %v9452_v58  ;;  %v9489_v57 = vld [vmem:[%s12625_s4 + $0x3c4] ss:$20 sps:$4 sm:$0xff]   ;;  %v9487_v58 = vld [vmem:[%s12625_s4 + $0x3c0] ss:$20 sps:$4 sm:$0xff]  }
 0x2b8   :  { %5840 = vmatprep.subr.bf16.mxu0 %v9455_v60  ;;  %8341 = vmatprep.subr.bf16.mxu1 %v9456_v59  ;;  %v9492_v60 = vld [vmem:[%s12625_s4 + $0x3ec] ss:$20 sps:$4 sm:$0xff]  }
 0x2b9   :  { %v6431_v59 = vld [vmem:[%s12628_s7 + $0x20] sm:$0xff] }
 0x2bb   :  { %5841 = vmatpush1.bf16.msra.mxu0 %v9453_v62  ;;  %8342 = vmatpush3.bf16.msra.mxu1 %v9457_v63  ;;  %v6436_v62 = vld [vmem:[%s12628_s7 + $0x48] sm:$0xf] }
 0x2bc   :  { %5842 = vmatprep.subr.bf16.mxu0 %v9460_v1  ;;  %8343 = vmatprep.subr.bf16.mxu1 %v9461_v52  ;;  %v8400_v63 = vpack.c.bf16 %v6436_v62, %v6431_v59  ;;  %v9490_v1 = vld [vmem:[%s12625_s4 + $0x3e8] ss:$20 sps:$4 sm:$0xff]  }
 0x2bd   :  { %v9495_v52 = vld [vmem:[%s12625_s4 + $0x414] ss:$20 sps:$4 sm:$0xff]   ;;  %v9546_v62 = vld [vmem:[%s12625_s4 + $0x6bc] ss:$20 sps:$4 sm:$0xff]  }
 0x2bf   :  { %5843 = vmatpush1.bf16.msra.mxu0 %v9458_v6  ;;  %8344 = vmatpush3.bf16.msra.mxu1 %v9462_v39 }
 0x2c0   :  { %5853 = vmatprep.subr.bf16.mxu0 %v9465_v53  ;;  %8379 = vmatprep.subr.msk.bf16.mxu1 %vm12008_vm3, %v8377_v9  ;;  %v9493_v53 = vld [vmem:[%s12625_s4 + $0x410] ss:$20 sps:$4 sm:$0xff]  }
 0x2c2   :  { %6131 = vmatmul.mubr.bf16.vlgmr.msra.gmra.mrb[20].mxu1 %v11653_v4  ;;  %5845 = vmatmul.mubr.bf16.vlgmr.msra.gmra.mrb[0].mxu0 %v11448_v61  ;;  %v6183_v61 = vld [vmem:[%s12627_s6 + $0x20] sm:$0xff] }
 0x2c3   :  { %5854 = vmatpush1.bf16.msra.mxu0 %v9463_v14  ;;  %8382 = vmatpush1.bf16.msk.msra.mxu1 %vm12008_vm3, %v8380_v2  ;;  %v8384_v29 = vpack.c.bf16 %v6188_v19, %v6183_v61  ;;  %v9496_v14 = vld [vmem:[%s12625_s4 + $0x438] ss:$20 sps:$4 sm:$0xff]   ;;  %v9505_v61 = vld [vmem:[%s12625_s4 + $0x4b0] ss:$20 sps:$4 sm:$0xff]  }
 0x2c4   :  { %5855 = vmatprep.subr.bf16.mxu0 %v9468_v15  ;;  %6344 = vmatprep.mubr.f32.mxu1 %v9669_v28  ;;  %v9501_v2 = vld [vmem:[%s12625_s4 + $0x464] ss:$20 sps:$4 sm:$0xff]   ;;  %v9499_v15 = vld [vmem:[%s12625_s4 + $0x460] ss:$20 sps:$4 sm:$0xff]   ;;  %v9510_v19 = vld [vmem:[%s12625_s4 + $0x4dc] ss:$20 sps:$4 sm:$0xff]  }
 0x2c5   :  { %v12037_v20 = vpop.f32.mrb[4].mxu0  ;;  %8383 = vmatprep.subr.bf16.mxu1 %v9670_v50  ;;  %5885 = vmatprep.mubr.bf16.mxu0 %v11465_v0  ;;  %v12054_v0 = vld [vmem:[%s12629_s2] sm:$0xff] }
 0x2c6   :  { %v12040_v21 = vpop.f32.mrb[5].mxu0 }
 0x2c7   :  { %v4136_v24 = vpop.f32.mrb[6].mxu0  ;;  %5856 = vmatpush1.bf16.msra.mxu0 %v9466_v16  ;;  %v9502_v16 = vld [vmem:[%s12625_s4 + $0x488] ss:$20 sps:$4 sm:$0xff]  }
 0x2c8   :  { %v4137_v30 = vpop.f32.mrb[7].mxu0  ;;  %5857 = vmatprep.subr.bf16.mxu0 %v9471_v18  ;;  %v9507_v18 = vld [vmem:[%s12625_s4 + $0x4b4] ss:$20 sps:$4 sm:$0xff]   ;;  %v9516_v24 = vld [vmem:[%s12625_s4 + $0x52c] ss:$20 sps:$4 sm:$0xff]  }
 0x2ca   :  { %8090 = vmatmul.mubr.msk.f32.vlgmr.msra.gmra.mrb[24].mxu1 %vm6189_vm4, %v12054_v0 }
 0x2cb   :  { %5858 = vmatpush1.bf16.msra.mxu0 %v9469_v25  ;;  %8386 = vmatpush3.bf16.msk.msra.mxu1 %vm12008_vm3, %v8384_v29  ;;  %v9514_v25 = vld [vmem:[%s12625_s4 + $0x528] ss:$20 sps:$4 sm:$0xff]  }
 0x2cc   :  { %8361 = vmatprep.mubr.msk.f32.mxu1 %vm9671_vm7, %v9669_v28  ;;  %5859 = vmatprep.subr.bf16.mxu0 %v9474_v31  ;;  %v9519_v29 = vld [vmem:[%s12625_s4 + $0x554] ss:$20 sps:$4 sm:$0xff]  }
 0x2cd   :  { %8389 = vmatprep.subr.msk.bf16.mxu1 %vm12068_vm6, %v8387_v33 }
 0x2ce   :  { %8362 = vmatmul.mubr.msk.f32.vlgmr.msra.gmra.mrb[26].mxu1 %vm6189_vm4, %v12054_v0 }
 0x2cf   :  { %5860 = vmatpush1.bf16.msra.mxu0 %v9472_v37  ;;  %8392 = vmatpush1.bf16.msk.msra.mxu1 %vm12068_vm6, %v8390_v38  ;;  %v9520_v37 = vld [vmem:[%s12625_s4 + $0x578] ss:$20 sps:$4 sm:$0xff]  }
 0x2d0   :  { %6521 = vmatprep.mubr.f32.mxu1 %v9669_v28  ;;  %5861 = vmatprep.subr.bf16.mxu0 %v9477_v40  ;;  %v9525_v38 = vld [vmem:[%s12625_s4 + $0x5a4] ss:$20 sps:$4 sm:$0xff]   ;;  %v9523_v40 = vld [vmem:[%s12625_s4 + $0x5a0] ss:$20 sps:$4 sm:$0xff]  }
 0x2d1   :  { %8395 = vmatprep.subr.msk.bf16.mxu1 %vm12068_vm6, %v8393_v11  ;;  %v9529_v11 = vld [vmem:[%s12625_s4 + $0x5f0] ss:$20 sps:$4 sm:$0xff]  }
 0x2d2   :  { %8095 = vmatmul.mubr.msk.f32.vlgmr.msra.gmra.mrb[28].mxu1 %vm6437_vm8, %v6426_v45 }
 0x2d3   :  { %5862 = vmatpush1.bf16.msra.mxu0 %v9475_v44  ;;  %8398 = vmatpush1.bf16.msk.msra.mxu1 %vm12068_vm6, %v8396_v46  ;;  %v9534_v44 = vld [vmem:[%s12625_s4 + $0x61c] ss:$20 sps:$4 sm:$0xff]   ;;  %v9537_v46 = vld [vmem:[%s12625_s4 + $0x644] ss:$20 sps:$4 sm:$0xff]  }
 0x2d4   :  { %6592 = vmatprep.mubr.f32.mxu1 %v9669_v28  ;;  %5863 = vmatprep.subr.bf16.mxu0 %v9480_v26  ;;  %v9535_v26 = vld [vmem:[%s12625_s4 + $0x640] ss:$20 sps:$4 sm:$0xff]  }
 0x2d5   :  { %8399 = vmatprep.subr.bf16.mxu1 %v9670_v50  ;;  %v9508_v50 = vld [vmem:[%s12625_s4 + $0x4d8] ss:$20 sps:$4 sm:$0xff]  }
 0x2d6   :  { %8098 = vmatmul.mubr.msk.f32.vlgmr.msra.gmra.mrb[30].mxu1 %vm6437_vm8, %v6426_v45 }
 0x2d7   :  { %5864 = vmatpush1.bf16.msra.mxu0 %v9478_v49  ;;  %8368 = vmatprep.mubr.msk.f32.mxu1 %vm9671_vm7, %v9669_v28  ;;  %v9540_v49 = vld [vmem:[%s12625_s4 + $0x66c] ss:$20 sps:$4 sm:$0xff]  }
 0x2d8   :  { %5865 = vmatprep.subr.bf16.mxu0 %v9483_v51  ;;  %8402 = vmatpush3.bf16.msk.msra.mxu1 %vm12068_vm6, %v8400_v63  ;;  %v9538_v51 = vld [vmem:[%s12625_s4 + $0x668] ss:$20 sps:$4 sm:$0xff]  }
 0x2db   :  { %5866 = vmatpush1.bf16.msra.mxu0 %v9481_v54  ;;  %8369 = vmatmul.mubr.msk.f32.vlgmr.msra.gmra.mrb[32].mxu1 %vm6437_vm8, %v6426_v45  ;;  %v9532_v45 = vld [vmem:[%s12625_s4 + $0x618] ss:$20 sps:$4 sm:$0xff]   ;;  %v9543_v54 = vld [vmem:[%s12625_s4 + $0x694] ss:$20 sps:$4 sm:$0xff]  }
 0x2dc   :  { %5867 = vmatprep.subr.bf16.mxu0 %v9486_v55 }
 0x2df   :  { %5868 = vmatpush1.bf16.msra.mxu0 %v9484_v56 }
 0x2e0   :  { %5869 = vmatprep.subr.bf16.mxu0 %v9489_v57 }
 0x2e3   :  { %5870 = vmatpush1.bf16.msra.mxu0 %v9487_v58 }
 0x2e4   :  { %5871 = vmatprep.subr.bf16.mxu0 %v9492_v60  ;;  %v9541_v60 = vld [vmem:[%s12625_s4 + $0x690] ss:$20 sps:$4 sm:$0xff]  }
 0x2e5   :  { %v8191_v3 = vpop.f32.mrb[8].mxu0 }
 0x2e6   :  { %v8192_v5 = vpop.f32.mrb[9].mxu0 }
 0x2e7   :  { %v8193_v6 = vadd.f32 %v8192_v5, %v8191_v3  ;;  %v8194_v39 = vpop.f32.mrb[10].mxu0  ;;  %5872 = vmatpush1.bf16.msra.mxu0 %v9490_v1  ;;  %v9547_v3 = vld [vmem:[%s12625_s4 + $0x510] ss:$20 sps:$4 sm:$0xff]   ;;  %v9549_v5 = vld [vmem:[%s12625_s4 + $0x560] ss:$20 sps:$4 sm:$0xff]  }
 0x2e8   :  { %v8195_v9 = vpop.f32.mrb[11].mxu0  ;;  %5873 = vmatprep.subr.bf16.mxu0 %v9495_v52  ;;  %v9544_v52 = vld [vmem:[%s12625_s4 + $0x6b8] ss:$20 sps:$4 sm:$0xff]  }
 0x2e9   :  { %v4460_v43 = vadd.f32 %v11732_v27, %v8193_v6  ;;  %v9504_v27 = vld [vmem:[%s12625_s4 + $0x48c] ss:$20 sps:$4 sm:$0xff]   ;;  %v9550_v6 = vld [vmem:[%s12625_s4 + $0x588] ss:$20 sps:$4 sm:$0xff]  }
 0x2ea   :  { %v9552_v39 = vld [vmem:[%s12625_s4 + $0x5d8] ss:$20 sps:$4 sm:$0xff]   ;;  %v9554_v9 = vld [vmem:[%s12625_s4 + $0x628] ss:$20 sps:$4 sm:$0xff]  }
 0x2eb   :  { %5874 = vmatpush1.bf16.msra.mxu0 %v9493_v53  ;;  %v9553_v53 = vld [vmem:[%s12625_s4 + $0x600] ss:$20 sps:$4 sm:$0xff]  }
 0x2ec   :  { %5875 = vmatprep.subr.bf16.mxu0 %v9498_v12  ;;  %v9555_v12 = vld [vmem:[%s12625_s4 + $0x650] ss:$20 sps:$4 sm:$0xff]  }
 0x2ef   :  { %5876 = vmatpush1.bf16.msra.mxu0 %v9496_v14 }
 0x2f0   :  { %5877 = vmatprep.subr.bf16.mxu0 %v9501_v2 }
 0x2f3   :  { %5878 = vmatpush1.bf16.msra.mxu0 %v9499_v15 }
 0x2f4   :  { %5879 = vmatprep.subr.bf16.mxu0 %v9504_v27 }
 0x2f7   :  { %5880 = vmatpush1.bf16.msra.mxu0 %v9502_v16 }
 0x2f8   :  { %5881 = vmatprep.subr.bf16.mxu0 %v9507_v18  ;;  %v9557_v18 = vld [vmem:[%s12625_s4 + $0x6a0] ss:$20 sps:$4 sm:$0xff]  }
 0x2fb   :  { %5882 = vmatpush1.bf16.msra.mxu0 %v9505_v61 }
 0x2fc   :  { %5883 = vmatprep.subr.bf16.mxu0 %v9510_v19  ;;  %v6180_v19 = vld [vmem:[%s12627_s6 + $0x8] sm:$0xff] }
 0x2ff   :  { %5884 = vmatpush1.bf16.msra.mxu0 %v9508_v50 }
 0x300   :  { %5894 = vmatprep.subr.bf16.mxu0 %v9513_v22  ;;  %v6179_v22 = vld [vmem:[%s12627_s6] sm:$0xff] }
 0x302   :  { %5886 = vmatmul.mubr.bf16.vlgmr.msra.gmra.mrb[0].mxu0 %v11653_v4  ;;  %v9517_v4 = vld [vmem:[%s12625_s4 + $0x550] ss:$20 sps:$4 sm:$0xff]  }
 0x303   :  { %5895 = vmatpush1.bf16.msra.mxu0 %v9511_v23  ;;  %8082 = vmatprep.mubr.msk.bf16.mxu0 %vm3807_vm0, %v11668_v8  ;;  %v6184_v23 = vld [vmem:[%s12627_s6 + $0x28] sm:$0x7] }
 0x304   :  { %5896 = vmatprep.subr.bf16.mxu0 %v9516_v24  ;;  %v8374_v24 = vpack.c.bf16 %v6184_v23, %v6179_v22 }
 0x305   :  { %v8235_v30 = vpop.f32.mrb[12].mxu0 }
 0x306   :  { %v8236_v31 = vpop.f32.mrb[13].mxu0 }
 0x307   :  { %v8237_v32 = vadd.f32 %v8236_v31, %v8235_v30  ;;  %v8238_v48 = vpop.f32.mrb[14].mxu0  ;;  %5897 = vmatpush1.bf16.msra.mxu0 %v9514_v25 }
 0x308   :  { %v8239_v33 = vpop.f32.mrb[15].mxu0  ;;  %5898 = vmatprep.subr.bf16.mxu0 %v9519_v29 }
 0x309   :  { %v4500_v36 = vadd.f32 %v8237_v32, %v4460_v43  ;;  %v9556_v43 = vld [vmem:[%s12625_s4 + $0x678] ss:$20 sps:$4 sm:$0xff]   ;;  %v9565_v33 = vld [vmem:[%s12631_s9 + $0x20] ss:$8 sps:$4 sm:$0xff]  }
 0x30b   :  { %v4540_v17 = vadd.f32 %v11836_v10, %v4500_v36  ;;  %5899 = vmatpush1.bf16.msra.mxu0 %v9517_v4  ;;  %v9528_v10 = vld [vmem:[%s12625_s4 + $0x5cc] ss:$20 sps:$4 sm:$0xff]   ;;  %v9568_v36 = vld [vmem:[%s12631_s9 + $0x30] ss:$8 sps:$4 sm:$0xff]  }
 0x30c   :  { %5900 = vmatprep.subr.bf16.mxu0 %v9522_v35  ;;  %v9561_v4 = vld [vmem:[%s12631_s9 + $0x4] ss:$8 sps:$4 sm:$0xff]   ;;  %v9570_v35 = vld [vmem:[%s12631_s9 + $0x34] ss:$8 sps:$4 sm:$0xff]  }
 0x30d   :  { %7163 = vmatprep.subr.bf16.mxu1 %v9561_v4 }
 0x30f   :  { %5901 = vmatpush1.bf16.msra.mxu0 %v9520_v37 }
 0x310   :  { %5902 = vmatprep.subr.bf16.mxu0 %v9525_v38  ;;  %v9571_v38 = vld [vmem:[%s12631_s9 + $0x40] ss:$8 sps:$4 sm:$0xff]  }
 0x313   :  { %5903 = vmatpush1.bf16.msra.mxu0 %v9523_v40  ;;  %v9576_v40 = vld [vmem:[%s12631_s9 + $0x54] ss:$8 sps:$4 sm:$0xff]  }
 0x314   :  { %5904 = vmatprep.subr.bf16.mxu0 %v9528_v10 }
 0x317   :  { %5905 = vmatpush1.bf16.msra.mxu0 %v9526_v34 }
 0x318   :  { %5906 = vmatprep.subr.bf16.mxu0 %v9531_v41 }
 0x31b   :  { %5907 = vmatpush1.bf16.msra.mxu0 %v9529_v11 }
 0x31c   :  { %5908 = vmatprep.subr.bf16.mxu0 %v9534_v44  ;;  %v9574_v44 = vld [vmem:[%s12631_s9 + $0x50] ss:$8 sps:$4 sm:$0xff]  }
 0x31f   :  { %5909 = vmatpush1.bf16.msra.mxu0 %v9532_v45  ;;  %v9579_v45 = vld [vmem:[%s12631_s9 + $0x64] ss:$8 sps:$4 sm:$0xff]  }
 0x320   :  { %5910 = vmatprep.subr.bf16.mxu0 %v9537_v46 }
 0x323   :  { %5911 = vmatpush1.bf16.msra.mxu0 %v9535_v26  ;;  %v9577_v26 = vld [vmem:[%s12631_s9 + $0x60] ss:$8 sps:$4 sm:$0xff]  }
 0x324   :  { %5912 = vmatprep.subr.bf16.mxu0 %v9540_v49 }
 0x325   :  { %v8279_v55 = vpop.f32.mrb[16].mxu0 }
 0x326   :  { %v8280_v56 = vpop.f32.mrb[17].mxu0 }
 0x327   :  { %v8281_v57 = vadd.f32 %v8280_v56, %v8279_v55  ;;  %v8282_v58 = vpop.f32.mrb[18].mxu0  ;;  %5913 = vmatpush1.bf16.msra.mxu0 %v9538_v51  ;;  %v9582_v51 = vld [vmem:[%s12631_s9 + $0x74] ss:$8 sps:$4 sm:$0xff]  }
 0x328   :  { %v8283_v59 = vpop.f32.mrb[19].mxu0  ;;  %5914 = vmatprep.subr.bf16.mxu0 %v9543_v54 }
 0x329   :  { %v4580_v63 = vadd.f32 %v8281_v57, %v4540_v17  ;;  %v9573_v17 = vld [vmem:[%s12631_s9 + $0x44] ss:$8 sps:$4 sm:$0xff]   ;;  %v9580_v57 = vld [vmem:[%s12631_s9 + $0x70] ss:$8 sps:$4 sm:$0xff]  }
 0x32b   :  { %v12266_v1 = vadd.f32 %v11936_v42, %v4580_v63  ;;  %5915 = vmatpush1.bf16.msra.mxu0 %v9541_v60  ;;  %v9548_v42 = vld [vmem:[%s12625_s4 + $0x538] ss:$20 sps:$4 sm:$0xff]  }
 0x32c   :  { %5916 = vmatprep.subr.bf16.mxu0 %v9546_v62  ;;  %v9585_v60 = vld [vmem:[%s12631_s9 + $0x84] ss:$8 sps:$4 sm:$0xff]  }
 0x32f   :  { %5917 = vmatpush1.bf16.msra.mxu0 %v9544_v52  ;;  %v9588_v52 = vld [vmem:[%s12631_s9 + $0x94] ss:$8 sps:$4 sm:$0xff]  }
 0x330   :  { %6138 = vmatprep.subr.bf16.mxu0 %v9667_v7 }
 0x332   :  { %5927 = vmatmul.mubr.bf16.vlgmr.msra.gmra.mrb[0].mxu0 %v11794_v47 }
 0x333   :  { %6139 = vmatpush1.bf16.msra.mxu0 %v9547_v3  ;;  %8084 = vmatprep.mubr.msk.bf16.mxu0 %vm3807_vm0, %v11668_v8  ;;  %v9551_v8 = vld [vmem:[%s12625_s4 + $0x5b0] ss:$20 sps:$4 sm:$0xff]  }
 0x334   :  { %6140 = vmatprep.subr.bf16.mxu0 %v9667_v7 }
 0x337   :  { %6141 = vmatpush1.bf16.msra.mxu0 %v9548_v42 }
 0x338   :  { %6142 = vmatprep.subr.bf16.mxu0 %v9667_v7 }
 0x33b   :  { %6143 = vmatpush1.bf16.msra.mxu0 %v9549_v5 }
 0x33c   :  { %6144 = vmatprep.subr.bf16.mxu0 %v9667_v7 }
 0x33f   :  { %6145 = vmatpush1.bf16.msra.mxu0 %v9550_v6  ;;  %v9586_v6 = vld [vmem:[%s12631_s9 + $0x90] ss:$8 sps:$4 sm:$0xff]  }
 0x340   :  { %6146 = vmatprep.subr.bf16.mxu0 %v9667_v7 }
 0x343   :  { %6147 = vmatpush1.bf16.msra.mxu0 %v9551_v8 }
 0x344   :  { %6148 = vmatprep.subr.bf16.mxu0 %v9667_v7 }
 0x347   :  { %6149 = vmatpush1.bf16.msra.mxu0 %v9552_v39  ;;  %v9591_v39 = vld [vmem:[%s12631_s9 + $0xa4] ss:$8 sps:$4 sm:$0xff]  }
 0x348   :  { %6150 = vmatprep.subr.bf16.mxu0 %v9667_v7 }
 0x34b   :  { %6151 = vmatpush1.bf16.msra.mxu0 %v9553_v53  ;;  %v9589_v53 = vld [vmem:[%s12631_s9 + $0xa0] ss:$8 sps:$4 sm:$0xff]  }
 0x34c   :  { %6152 = vmatprep.subr.bf16.mxu0 %v9667_v7 }
 0x34f   :  { %6153 = vmatpush1.bf16.msra.mxu0 %v9554_v9  ;;  %v9594_v9 = vld [vmem:[%s12631_s9 + $0xb4] ss:$8 sps:$4 sm:$0xff]  }
 0x350   :  { %6154 = vmatprep.subr.bf16.mxu0 %v9667_v7 }
 0x353   :  { %6155 = vmatpush1.bf16.msra.mxu0 %v9555_v12  ;;  %v9592_v12 = vld [vmem:[%s12631_s9 + $0xb0] ss:$8 sps:$4 sm:$0xff]  }
 0x354   :  { %6156 = vmatprep.subr.bf16.mxu0 %v9667_v7 }
 0x355   :  { %v6051_v14 = vpop.f32.mrb[0].mxu1 }
 0x356   :  { %v12315_v2 = vadd.f32 %v6051_v14, %v12037_v20  ;;  %v6053_v15 = vpop.f32.mrb[1].mxu1  ;;  %v6185_v20 = vld [vmem:[%s12627_s6 + $0x30] sm:$0x7]  ;;  %v9595_v14 = vld [vmem:[%s12631_s9 + $0xc0] ss:$8 sps:$4 sm:$0xff]  }
 0x357   :  { %v12318_v27 = vadd.f32 %v6053_v15, %v12040_v21  ;;  %v6055_v16 = vpop.f32.mrb[2].mxu1  ;;  %6157 = vmatpush1.bf16.msra.mxu0 %v9556_v43  ;;  %v9558_v21 = vld [vmem:[%s12625_s4 + $0x6c8] ss:$20 sps:$4 sm:$0xff]   ;;  %v8371_v50 = vpack.c.bf16 %v6185_v20, %v6180_v19  ;;  %v9597_v43 = vld [vmem:[%s12631_s9 + $0xc4] ss:$8 sps:$4 sm:$0xff]  }
 0x358   :  { %v6056_v61 = vpop.f32.mrb[3].mxu1  ;;  %6158 = vmatprep.subr.bf16.mxu0 %v9667_v7  ;;  %v9598_v16 = vld [vmem:[%s12631_s9 + $0xd0] ss:$8 sps:$4 sm:$0xff]   ;;  %v9606_v19 = vld [vmem:[%s12631_s9 + $0xf4] ss:$8 sps:$4 sm:$0xff]  }
 0x359   :  { %v9601_v61 = vld [vmem:[%s12631_s9 + $0xe0] ss:$8 sps:$4 sm:$0xff]   ;;  %v9604_v20 = vld [vmem:[%s12631_s9 + $0xf0] ss:$8 sps:$4 sm:$0xff]  }
 0x35b   :  { %6159 = vmatpush1.bf16.msra.mxu0 %v9557_v18  ;;  %v9603_v18 = vld [vmem:[%s12631_s9 + $0xe4] ss:$8 sps:$4 sm:$0xff]  }
 0x35c   :  { %6160 = vmatprep.subr.bf16.mxu0 %v9667_v7 }
 0x35f   :  { %6161 = vmatpush1.bf16.msra.mxu0 %v9558_v21  ;;  %v9609_v21 = vld [vmem:[%s12631_s9 + $0x104] ss:$8 sps:$4 sm:$0xff]  }
 0x360   :  { %8373 = vmatprep.subr.msk.bf16.mxu0 %vm12008_vm3, %v8371_v50 }
 0x362   :  { %6171 = vmatmul.mubr.bf16.vlgmr.msra.gmra.mrb[20].mxu0 %v11794_v47  ;;  %v9559_v47 = vld [vmem:[%s12631_s9] ss:$8 sps:$4 sm:$0xff]  }
 0x363   :  { %8376 = vmatpush1.bf16.msk.msra.mxu0 %vm12008_vm3, %v8374_v24  ;;  %6273 = vmatprep.mubr.f32.mxu0 %v9669_v28  ;;  %v9562_v28 = vld [vmem:[%s12631_s9 + $0x10] ss:$8 sps:$4 sm:$0xff]  }
 0x364   :  { %7164 = vmatpush1.bf16.msra.mxu1 %v9559_v47 }
 0x365   :  { %7165 = vmatprep.subr.bf16.mxu1 %v9564_v13 }
 0x368   :  { %7166 = vmatpush1.bf16.msra.mxu1 %v9562_v28  ;;  %v12465_v28 = vld [vmem:[%s12632_s8] sm:$0x1f] }
 0x36a   :  { %8087 = vmatmul.mubr.msk.f32.vlgmr.msra.gmra.mrb[24].mxu0 %vm6189_vm4, %v12054_v0  ;;  %v9567_v0 = vld [vmem:[%s12631_s9 + $0x24] ss:$8 sps:$4 sm:$0xff]  }
 0x36b   :  { %7167 = vmatprep.subr.bf16.mxu1 %v9567_v0 }
 0x36c   :  { %7168 = vmatpush1.bf16.msra.mxu1 %v9565_v33 }
 0x36d   :  { %7169 = vmatprep.subr.bf16.mxu1 %v9570_v35 }
 0x370   :  { %7170 = vmatpush1.bf16.msra.mxu1 %v9568_v36 }
 0x371   :  { %7171 = vmatprep.subr.bf16.mxu1 %v9573_v17 }
 0x374   :  { %7172 = vmatpush1.bf16.msra.mxu1 %v9571_v38 }
 0x375   :  { %v8323_v25 = vpop.f32.mrb[16].mxu1  ;;  %7173 = vmatprep.subr.bf16.mxu1 %v9576_v40 }
 0x376   :  { %v8324_v29 = vpop.f32.mrb[17].mxu1 }
 0x377   :  { %v8325_v30 = vadd.f32 %v8324_v29, %v8323_v25  ;;  %v8326_v31 = vpop.f32.mrb[18].mxu1  ;;  %v6676_v25 = vlaneseq }
 0x378   :  { %v8327_v32 = vpop.f32.mrb[19].mxu1  ;;  %7174 = vmatpush1.bf16.msra.mxu1 %v9574_v44 }
 0x379   :  { %v8405_v48 = vadd.f32 %v8325_v30, %v12266_v1  ;;  %7175 = vmatprep.subr.bf16.mxu1 %v9579_v45  ;;  %v9583_v1 = vld [vmem:[%s12631_s9 + $0x80] ss:$8 sps:$4 sm:$0xff]   ;;  %v12458_v29 = vshrl.u32 %v6676_v25, 7 }
 0x37b   :  { %v6690_v13 = vsub.s32 3, %v12458_v29  ;;  %v12470_v33 = vsub.s32 0, %v12458_v29  ;;  %v12473_v35 = vsub.s32 1, %v12458_v29 }
 0x37c   :  { %7176 = vmatpush1.bf16.msra.mxu1 %v9577_v26 }
 0x37d   :  { %7177 = vmatprep.subr.bf16.mxu1 %v9582_v51  ;;  %v6691_v36 = vrot.slane %v12465_v28, %v6690_v13  ;;  %v6679_v38 = vrot.slane %v12465_v28, %v12470_v33  ;;  %v9660_v13 = vld [vmem:[%s12631_s9 + $0x214] ss:$8 sps:$4 sm:$0xff]  }
 0x380   :  { %7178 = vmatpush1.bf16.msra.mxu1 %v9580_v57  ;;  %v9612_v57 = vld [vmem:[%s12631_s9 + $0x114] ss:$8 sps:$4 sm:$0xff]  }
 0x381   :  { %7179 = vmatprep.subr.bf16.mxu1 %v9585_v60  ;;  %v9610_v60 = vld [vmem:[%s12631_s9 + $0x110] ss:$8 sps:$4 sm:$0xff]  }
 0x384   :  { %7180 = vmatpush1.bf16.msra.mxu1 %v9583_v1  ;;  %v9616_v1 = vld [vmem:[%s12631_s9 + $0x130] ss:$8 sps:$4 sm:$0xff]  }
 0x385   :  { %7181 = vmatprep.subr.bf16.mxu1 %v9588_v52  ;;  %v9621_v52 = vld [vmem:[%s12631_s9 + $0x144] ss:$8 sps:$4 sm:$0xff]  }
 0x388   :  { %7182 = vmatpush1.bf16.msra.mxu1 %v9586_v6  ;;  %v9622_v6 = vld [vmem:[%s12631_s9 + $0x150] ss:$8 sps:$4 sm:$0xff]  }
 0x389   :  { %7183 = vmatprep.subr.bf16.mxu1 %v9591_v39  ;;  %v9625_v39 = vld [vmem:[%s12631_s9 + $0x160] ss:$8 sps:$4 sm:$0xff]  }
 0x38c   :  { %7184 = vmatpush1.bf16.msra.mxu1 %v9589_v53  ;;  %v9630_v53 = vld [vmem:[%s12631_s9 + $0x174] ss:$8 sps:$4 sm:$0xff]  }
 0x38d   :  { %7185 = vmatprep.subr.bf16.mxu1 %v9594_v9  ;;  %v9628_v9 = vld [vmem:[%s12631_s9 + $0x170] ss:$8 sps:$4 sm:$0xff]  }
 0x390   :  { %7186 = vmatpush1.bf16.msra.mxu1 %v9592_v12  ;;  %v9633_v12 = vld [vmem:[%s12631_s9 + $0x184] ss:$8 sps:$4 sm:$0xff]  }
 0x391   :  { %7187 = vmatprep.subr.bf16.mxu1 %v9597_v43  ;;  %v9631_v43 = vld [vmem:[%s12631_s9 + $0x180] ss:$8 sps:$4 sm:$0xff]  }
 0x394   :  { %7188 = vmatpush1.bf16.msra.mxu1 %v9595_v14  ;;  %v9636_v14 = vld [vmem:[%s12631_s9 + $0x194] ss:$8 sps:$4 sm:$0xff]  }
 0x395   :  { %v8345_v37 = vpop.f32.mrb[20].mxu1 }
 0x396   :  { %v8346_v10 = vpop.f32.mrb[21].mxu1 }
 0x397   :  { %v8347_v34 = vadd.f32 %v8346_v10, %v8345_v37  ;;  %v8348_v41 = vpop.f32.mrb[22].mxu1 }
 0x398   :  { %v8349_v11 = vpop.f32.mrb[23].mxu1 }
 0x399   :  { %v12388_v46 = vadd.f32 %v8405_v48, %v8347_v34  ;;  %v6683_v34 = vrot.slane %v12465_v28, %v12473_v35 }
 0x39d   :  { %v6346_v49 = vpop.f32.mrb[24].mxu1 }
 0x39e   :  { %v6423_v54 = vadd.f32 %v12315_v2, %v6346_v49  ;;  %v6348_v55 = vpop.f32.mrb[25].mxu1 }
 0x39f   :  { %v6424_v56 = vadd.f32 %v12318_v27, %v6348_v55  ;;  %v9600_v27 = vld [vmem:[%s12631_s9 + $0xd4] ss:$8 sps:$4 sm:$0xff]   ;;  %v9607_v55 = vld [vmem:[%s12631_s9 + $0x100] ss:$8 sps:$4 sm:$0xff]  }
 0x3a0   :  { %7189 = vmatprep.subr.bf16.mxu1 %v9600_v27  ;;  %v9637_v27 = vld [vmem:[%s12631_s9 + $0x1a0] ss:$8 sps:$4 sm:$0xff]  }
 0x3a1   :  { %v6417_v58 = vpop.f32.mrb[26].mxu1  ;;  %7190 = vmatpush1.bf16.msra.mxu1 %v9598_v16  ;;  %v9642_v16 = vld [vmem:[%s12631_s9 + $0x1b4] ss:$8 sps:$4 sm:$0xff]  }
 0x3a2   :  { %v8363_v59 = vpop.f32.mrb[27].mxu1  ;;  %7191 = vmatprep.subr.bf16.mxu1 %v9603_v18  ;;  %v9640_v18 = vld [vmem:[%s12631_s9 + $0x1b0] ss:$8 sps:$4 sm:$0xff]  }
 0x3a3   :  { %v9615_v59 = vld [vmem:[%s12631_s9 + $0x124] ss:$8 sps:$4 sm:$0xff]  }
 0x3a5   :  { %v12404_v62 = vpop.f32.mrb[28].mxu1  ;;  %7192 = vmatpush1.bf16.msra.mxu1 %v9601_v61  ;;  %v9645_v61 = vld [vmem:[%s12631_s9 + $0x1c4] ss:$8 sps:$4 sm:$0xff]  }
 0x3a6   :  { %v12406_v63 = vpop.f32.mrb[29].mxu1  ;;  %7193 = vmatprep.subr.bf16.mxu1 %v9606_v19  ;;  %v9643_v19 = vld [vmem:[%s12631_s9 + $0x1c0] ss:$8 sps:$4 sm:$0xff]  }
 0x3a9   :  { %v6594_v3 = vpop.f32.mrb[30].mxu1  ;;  %7194 = vmatpush1.bf16.msra.mxu1 %v9604_v20  ;;  %v6686_v20 = vsub.s32 2, %v12458_v29 }
 0x3aa   :  { %v12414_v42 = vadd.f32 %v6594_v3, %v6423_v54  ;;  %v6596_v5 = vpop.f32.mrb[31].mxu1  ;;  %7204 = vmatprep.subr.bf16.mxu1 %v9609_v21  ;;  %v9619_v3 = vld [vmem:[%s12631_s9 + $0x140] ss:$8 sps:$4 sm:$0xff]   ;;  %v9648_v21 = vld [vmem:[%s12631_s9 + $0x1d4] ss:$8 sps:$4 sm:$0xff]  }
 0x3ab   :  { %v6672_v8 = vadd.f32 %v6596_v5, %v6424_v56  ;;  %v9624_v5 = vld [vmem:[%s12631_s9 + $0x154] ss:$8 sps:$4 sm:$0xff]  }
 0x3ad   :  { %v6704_v11 = vadd.f32 %v6691_v36, %v6672_v8  ;;  %v9627_v8 = vld [vmem:[%s12631_s9 + $0x164] ss:$8 sps:$4 sm:$0xff]   ;;  %v9658_v36 = vld [vmem:[%s12631_s9 + $0x210] ss:$8 sps:$4 sm:$0xff]  }
 0x3ae   :  { %v6665_v2 = vpop.f32.mrb[32].mxu1 }
 0x3af   :  { %v8370_v15 = vpop.f32.mrb[33].mxu1  ;;  %v6709_v49 = vmax.f32 %v6704_v11, 0.0 }
 0x3b0   :  { %v9639_v15 = vld [vmem:[%s12631_s9 + $0x1a4] ss:$8 sps:$4 sm:$0xff]  }
 0x405   :  { %v5928_v50 = vpop.f32.mrb[0].mxu0 }
 0x406   :  { %v5930_v22 = vpop.f32.mrb[1].mxu0 }
 0x407   :  { %v5932_v23 = vpop.f32.mrb[2].mxu0 }
 0x408   :  { %v5933_v24 = vpop.f32.mrb[3].mxu0  ;;  %v9651_v23 = vld [vmem:[%s12631_s9 + $0x1e4] ss:$8 sps:$4 sm:$0xff]  }
 0x409   :  { %v9649_v24 = vld [vmem:[%s12631_s9 + $0x1e0] ss:$8 sps:$4 sm:$0xff]  }
 0x435   :  { %v6172_v30 = vpop.f32.mrb[20].mxu0 }
 0x436   :  { %v8407_v31 = vadd.f32 %v12388_v46, %v6172_v30  ;;  %v6174_v32 = vpop.f32.mrb[21].mxu0  ;;  %v9654_v30 = vld [vmem:[%s12631_s9 + $0x1f4] ss:$8 sps:$4 sm:$0xff]  }
 0x437   :  { %v6175_v48 = vpop.f32.mrb[22].mxu0 }
 0x438   :  { %v6176_v4 = vpop.f32.mrb[23].mxu0  ;;  %v6425_v47 = vadd.f32 %v8407_v31, %v6417_v58  ;;  %v6714_v58 = vpack.c.bf16 %v6709_v49, %v6709_v49  ;;  %v9652_v31 = vld [vmem:[%s12631_s9 + $0x1f0] ss:$8 sps:$4 sm:$0xff]   ;;  %v9657_v48 = vld [vmem:[%s12631_s9 + $0x204] ss:$8 sps:$4 sm:$0xff]  }
 0x43a   :  { %v12467_v0 = vadd.f32 %v6665_v2, %v6425_v47  ;;  %v9634_v2 = vld [vmem:[%s12631_s9 + $0x190] ss:$8 sps:$4 sm:$0xff]   ;;  %v6694_v47 = vsub.s32 4, %v12458_v29  ;;  %v9663_v29 = vld [vmem:[%s12631_s9 + $0x224] ss:$8 sps:$4 sm:$0xff]  }
 0x43d   :  { %v6275_v17 = vpop.f32.mrb[24].mxu0 }
 0x43e   :  { %v6421_v37 = vadd.f32 %v6275_v17, %v5928_v50  ;;  %v6277_v40 = vpop.f32.mrb[25].mxu0  ;;  %v9646_v50 = vld [vmem:[%s12631_s9 + $0x1d0] ss:$8 sps:$4 sm:$0xff]   ;;  %v6695_v17 = vrot.slane %v12465_v28, %v6694_v47 }
 0x43f   :  { %v6422_v10 = vadd.f32 %v6277_v40, %v5930_v22  ;;  %v6687_v22 = vrot.slane %v12465_v28, %v6686_v20  ;;  %v9666_v40 = vld [vmem:[%s12631_s9 + $0x234] ss:$8 sps:$4 sm:$0xff]  }
 0x440   :  { %v6669_v41 = vadd.f32 %v12404_v62, %v6421_v37  ;;  %v9613_v62 = vld [vmem:[%s12631_s9 + $0x120] ss:$8 sps:$4 sm:$0xff]  }
 0x441   :  { %v6670_v44 = vadd.f32 %v12406_v63, %v6422_v10  ;;  %v9618_v63 = vld [vmem:[%s12631_s9 + $0x134] ss:$8 sps:$4 sm:$0xff]   ;;  %v6703_v25 = vadd.f32 %v6687_v22, %v12414_v42  ;;  %v9655_v42 = vld [vmem:[%s12631_s9 + $0x200] ss:$8 sps:$4 sm:$0xff]  }
 0x442   :  { %v6701_v45 = vadd.f32 %v6679_v38, %v6669_v41  ;;  %v9661_v37 = vld [vmem:[%s12631_s9 + $0x220] ss:$8 sps:$4 sm:$0xff]   ;;  %v6705_v38 = vadd.f32 %v6695_v17, %v12467_v0  ;;  %v18_v0 = vstv %s12633_s12 }
 0x443   :  { %v6702_v46 = vadd.f32 %v6683_v34, %v6670_v44  ;;  %v6708_v32 = vmax.f32 %v6703_v25, 0.0  ;;  %19 = vst [vmem:[#allocation2] sm:$0x1] %v18_v0  ;;  %v6788_v34 = vld [vmem:[%s12634_s10] sm:$0x3] }
 0x444   :  { %v6706_v26 = vmax.f32 %v6701_v45, 0.0  ;;  %v6710_v28 = vmax.f32 %v6705_v38, 0.0  ;;  %v6793_v41 = vrot.slane %v6788_v34, %v12470_v33  ;;  %v6797_v11 = vrot.slane %v6788_v34, %v12473_v35  ;;  %v7288_v44 = vld [vmem:[%s12635_s11] sm:$0x3] }
 0x445   :  { %v6707_v51 = vmax.f32 %v6702_v46, 0.0  ;;  %v6713_v4 = vpack.c.bf16 %v6708_v32, %v6708_v32  ;;  %v7293_v49 = vrot.slane %v7288_v44, %v12470_v33 }
 0x446   :  { %v6711_v56 = vpack.c.bf16 %v6706_v26, %v6706_v26  ;;  %v6715_v10 = vpack.c.bf16 %v6710_v28, %v6710_v28 }
 0x447   :  { %v6712_v54 = vpack.c.bf16 %v6707_v51, %v6707_v51 }
 0x449   :  { %7195 = vmatprep.mubr.bf16.mxu1 %v6712_v54 }
 0x44a   :  { %7196 = vmatmul.mubr.bf16.vlgmr.msra.gmra.mrb[36].mxu1 %v6711_v56 }
 0x44b   :  { %7205 = vmatpush1.bf16.msra.mxu1 %v9607_v55  ;;  %7236 = vmatprep.mubr.bf16.mxu1 %v6714_v58  ;;  %v7297_v55 = vrot.slane %v7288_v44, %v12473_v35 }
 0x44c   :  { %7206 = vmatprep.subr.bf16.mxu1 %v9612_v57 }
 0x44f   :  { %7207 = vmatpush1.bf16.msra.mxu1 %v9610_v60 }
 0x450   :  { %7208 = vmatprep.subr.bf16.mxu1 %v9615_v59 }
 0x453   :  { %7209 = vmatpush1.bf16.msra.mxu1 %v9613_v62 }
 0x454   :  { %7210 = vmatprep.subr.bf16.mxu1 %v9618_v63  ;;  %v8174_v63 = vld [vmem:[#allocation2] ss:$0 sm:$0xff] }
 0x457   :  { %7211 = vmatpush1.bf16.msra.mxu1 %v9616_v1 }
 0x458   :  { %7212 = vmatprep.subr.bf16.mxu1 %v9621_v52 }
 0x45b   :  { %7213 = vmatpush1.bf16.msra.mxu1 %v9619_v3 }
 0x45c   :  { %7214 = vmatprep.subr.bf16.mxu1 %v9624_v5 }
 0x45f   :  { %7215 = vmatpush1.bf16.msra.mxu1 %v9622_v6 }
 0x460   :  { %7216 = vmatprep.subr.bf16.mxu1 %v9627_v8 }
 0x463   :  { %7217 = vmatpush1.bf16.msra.mxu1 %v9625_v39 }
 0x464   :  { %7218 = vmatprep.subr.bf16.mxu1 %v9630_v53 }
 0x467   :  { %7219 = vmatpush1.bf16.msra.mxu1 %v9628_v9 }
 0x468   :  { %7220 = vmatprep.subr.bf16.mxu1 %v9633_v12 }
 0x46b   :  { %7221 = vmatpush1.bf16.msra.mxu1 %v9631_v43 }
 0x46c   :  { %7222 = vmatprep.subr.bf16.mxu1 %v9636_v14 }
 0x46f   :  { %7223 = vmatpush1.bf16.msra.mxu1 %v9634_v2 }
 0x470   :  { %7224 = vmatprep.subr.bf16.mxu1 %v9639_v15 }
 0x473   :  { %7225 = vmatpush1.bf16.msra.mxu1 %v9637_v27 }
 0x474   :  { %7226 = vmatprep.subr.bf16.mxu1 %v9642_v16 }
 0x477   :  { %7227 = vmatpush1.bf16.msra.mxu1 %v9640_v18 }
 0x478   :  { %7228 = vmatprep.subr.bf16.mxu1 %v9645_v61 }
 0x47b   :  { %7229 = vmatpush1.bf16.msra.mxu1 %v9643_v19 }
 0x47c   :  { %7230 = vmatprep.subr.bf16.mxu1 %v9648_v21 }
 0x47f   :  { %7231 = vmatpush1.bf16.msra.mxu1 %v9646_v50 }
 0x480   :  { %7232 = vmatprep.subr.bf16.mxu1 %v9651_v23 }
 0x483   :  { %7233 = vmatpush1.bf16.msra.mxu1 %v9649_v24 }
 0x484   :  { %7234 = vmatprep.subr.bf16.mxu1 %v9654_v30 }
 0x487   :  { %7235 = vmatpush1.bf16.msra.mxu1 %v9652_v31 }
 0x488   :  { %7245 = vmatprep.subr.bf16.mxu1 %v9657_v48 }
 0x48a   :  { %7237 = vmatmul.mubr.bf16.vlgmr.msra.gmra.mrb[36].mxu1 %v6713_v4 }
 0x48b   :  { %7246 = vmatpush1.bf16.msra.mxu1 %v9655_v42  ;;  %7277 = vmatprep.mubr.bf16.mxu1 %v9667_v7  ;;  %v9664_v7 = vld [vmem:[%s12631_s9 + $0x230] ss:$8 sps:$4 sm:$0xff]  }
 0x48c   :  { %7247 = vmatprep.subr.bf16.mxu1 %v9660_v13 }
 0x48f   :  { %7248 = vmatpush1.bf16.msra.mxu1 %v9658_v36 }
 0x490   :  { %7249 = vmatprep.subr.bf16.mxu1 %v9663_v29 }
 0x493   :  { %7250 = vmatpush1.bf16.msra.mxu1 %v9661_v37 }
 0x494   :  { %7251 = vmatprep.subr.bf16.mxu1 %v9666_v40 }
 0x497   :  { %7252 = vmatpush1.bf16.msra.mxu1 %v9664_v7 }
 0x49a   :  { %8173 = vmatmul.mubr.msk.bf16.vlgmr.msra.gmra.mrb[36].mxu1 %vm3807_vm0, %v6715_v10 }
 0x56d   :  { %v7279_v45 = vpop.f32.mrb[36].mxu1 }
 0x56e   :  { %v8408_v46 = vadd.f32 %v7279_v45, %v6793_v41  ;;  %v7281_v26 = vpop.f32.mrb[37].mxu1 }
 0x56f   :  { %v8409_v51 = vadd.f32 %v7281_v26, %v6797_v11  ;;  %v7283_v54 = vpop.f32.mrb[38].mxu1 }
 0x570   :  { %v7286_v56 = vmax.f32 %v8408_v46, 0.0  ;;  %v7284_v57 = vpop.f32.mrb[39].mxu1 }
 0x571   :  { %v7287_v58 = vmax.f32 %v8409_v51, 0.0 }
 0x572   :  { %v7300_v60 = vmul.f32 %v7293_v49, %v7286_v56 }
 0x573   :  { %v7301_v59 = vmul.f32 %v7297_v55, %v7287_v58 }
 0x575   :  { %v7302_v62 = vadd.f32 %v7301_v59, %v7300_v60 }
 0x577   :  { %7303 = vadd.xlane.f32.xlu0 %v7302_v62 }
 0x604   :  { %v7304_v1 = vpop.xlane.xlu0 %7303 }
 0x605   :  { %v7312_v52 = vadd.f32 %v8174_v63, %v7304_v1 }
 0x607   :  { %7314 = vst.msk [vmem:[%s12636_s13] sm:$0xff] %vm7313_vm9, %v7312_v52 }

</bundles_post_ra>
